<compile_context>
chip_gen: v5e
topology: v5e:2x2
jax: 0.10.0
libtpu: 0.0.40
codegen_flags: <defaults>
</compile_context>

<pallas_src>
import functools

import numpy as np
import jax
import jax.numpy as jnp
from jax import lax
from jax.experimental import pallas as pl
from jax.experimental.pallas import tpu as pltpu

EPS = 1e-5
NORM_GROUPS = 2      # UNetModel(norm_groups=2)
LANES = 128
TB_CAP = 512         # max batch rows per grid step (sweepable; 256 may suit v5e)


# ----------------------------- in-kernel math -----------------------------

def _mish(x):
    # x * tanh(softplus(x)) with softplus threshold=20, using a single exp:
    # tanh(log(u)) = 1 - 2/(u^2 + 1), u = 1 + exp(x); divide -> EUP reciprocal.
    u = 1.0 + jnp.exp(jnp.minimum(x, 20.0))
    u2 = u * u
    t = 1.0 - 2.0 * pl.reciprocal(u2 + 1.0, approx=True)
    return jnp.where(x > 20.0, x, x * t)


def _group_norm(x, gamma, beta, m0, m1, inv):
    # 2-group GroupNorm over the real channels of a lane-padded (TB,128) f32
    # activation.  Padding lanes of x are exactly 0 (zero-padded weight tiles
    # and bias rows), so the unmasked all-lane sums equal the real-lane sums
    # and group-1 statistics are derived by subtraction.
    xm0 = x * m0
    s0 = jnp.sum(xm0, axis=1, keepdims=True)
    sa = jnp.sum(x, axis=1, keepdims=True)
    q0 = jnp.sum(xm0 * x, axis=1, keepdims=True)
    qa = jnp.sum(x * x, axis=1, keepdims=True)
    mu0 = s0 * inv
    mu1 = (sa - s0) * inv
    v0 = q0 * inv - mu0 * mu0
    v1 = (qa - q0) * inv - mu1 * mu1
    r0 = lax.rsqrt(v0 + EPS)
    r1 = lax.rsqrt(v1 + EPS)
    mu_l = mu0 * m0 + mu1 * m1
    r_l = r0 * m0 + r1 * m1
    # gamma/beta rows are zero beyond the real channels -> padding lanes stay 0.
    return (x - mu_l) * r_l * gamma + beta


# ----------------------------- kernel -----------------------------

def unet_kernel(idx, x_ref, w_ref, w2_ref, v_ref, out_ref):
    bf16 = jnp.bfloat16

    def mm(x, wi):                    # (TB,128) @ 128x128 bf16 tile -> f32
        return jnp.dot(x.astype(bf16), w_ref[wi],
                       preferred_element_type=jnp.float32)

    def mm2(x, wi):                   # (TB,256) @ 256x128 bf16 tile -> f32
        return jnp.dot(x.astype(bf16), w2_ref[wi],
                       preferred_element_type=jnp.float32)

    def vrow(vi):                     # (1,128) f32 bias / gamma / beta / mask row
        return v_ref[vi:vi + 1, :]

    def gn(x, blk, which):
        return _group_norm(x, vrow(blk["g" + which]), vrow(blk["be" + which]),
                           vrow(blk["m0"]), vrow(blk["m1"]), blk["inv"])

    def block_single(x, blk):
        # ConvBlock1D with L=1: conv -> GN -> Mish -> conv -> GN -> (+res) -> Mish
        out = mm(x, blk["w1"]) + vrow(blk["b1"])
        out = _mish(gn(out, blk, "1"))
        out = mm(out, blk["w2"]) + vrow(blk["b2"])
        out = gn(out, blk, "2")
        if "wr" in blk:
            res = mm(x, blk["wr"]) + vrow(blk["br"])
        else:                          # Identity residual (bottleneck)
            res = x
        return _mish(out + res).astype(bf16)

    def block_cat(xcat, blk):
        # Same block, but the input is the [up | skip] concat (TB,256) and the
        # first conv / res conv hit K=256 weight tiles.
        out = mm2(xcat, blk["w1"]) + vrow(blk["b1"])
        out = _mish(gn(out, blk, "1"))
        out = mm(out, blk["w2"]) + vrow(blk["b2"])
        out = gn(out, blk, "2")
        res = mm2(xcat, blk["wr"]) + vrow(blk["br"])
        return _mish(out + res).astype(bf16)

    xin = x_ref[...]                  # (TB,128) bf16: lane0=t, then state, then action

    # Fused input heads: one matmul yields [time1 | state | action] features
    # (disjoint output lanes, biases included); one K=256 matmul on [h|mish(h)]
    # realizes time2 + concat([sf,af]) + concat([tf,tf]) + initial_expand.
    h = mm(xin, idx["head_w"]) + vrow(idx["head_b"])
    hm = _mish(h)
    hcat = jnp.concatenate([h.astype(bf16), hm.astype(bf16)], axis=1)
    x = (mm2(hcat, idx["ie_w"]) + vrow(idx["ie_b"])).astype(bf16)

    d1 = block_single(x, idx["down1"])
    d2 = block_single(d1, idx["down2"])
    mid = block_single(d2, idx["bottleneck"])

    # upconv (ConvTranspose1d k=2 s=2 cropped back to L=1 -> tap-0 matmul),
    # then the skip concat at a 128-lane boundary feeds a K=256 block.
    u2 = (mm(mid, idx["up2_w"]) + vrow(idx["up2_b"])).astype(bf16)
    x = block_cat(jnp.concatenate([u2, d2], axis=1), idx["upblock2"])

    u1 = (mm(x, idx["up1_w"]) + vrow(idx["up1_b"])).astype(bf16)
    x = block_cat(jnp.concatenate([u1, d1], axis=1), idx["upblock1"])

    # final_conv (k=3 center tap) and final_linear composed into one affine map.
    out_ref[...] = mm(x, idx["final_w"]) + vrow(idx["final_b"])


# ----------------------------- parameter packing -----------------------------

def pack_params(params, embed_dim, action_dim):
    """Pack all parameters host-side into:
         W1: (NW1,128,128) bf16  - K=128 weight tiles
         W2: (NW2,256,128) bf16  - K=256 (concat-input) weight tiles
         V : (NV, 128)     f32   - bias / gamma / beta / GN-mask rows
       Invariant relied on by the kernel: every tile / row is ZERO outside the
       real (rows, cols) region of the parameter it holds, so lane-padded
       activations stay exactly 0 through every layer.
    """
    p = jax.tree_util.tree_map(lambda a: np.asarray(a, np.float32), params)
    C = p["state_proj"]["w"].shape[1]

    mats, mats2, vecs, idx = [], [], [], {}

    def put(tile, w, r0, c0):
        assert r0 + w.shape[0] <= tile.shape[0], "weight does not fit tile rows"
        assert c0 + w.shape[1] <= tile.shape[1], "weight does not fit tile cols"
        tile[r0:r0 + w.shape[0], c0:c0 + w.shape[1]] = w
        return tile

    def add_mat(w, r0=0):
        mats.append(put(np.zeros((LANES, LANES), np.float32), w, r0, 0))
        return len(mats) - 1

    def add_mat2(w_top, w_bot, r_top=0, r_bot=0):
        tile = np.zeros((2 * LANES, LANES), np.float32)
        put(tile, w_top, r_top, 0)
        put(tile, w_bot, LANES + r_bot, 0)
        mats2.append(tile)
        return len(mats2) - 1

    def add_vec(v):
        v = np.asarray(v, np.float32).reshape(-1)
        assert v.shape[0] <= LANES
        row = np.zeros(LANES, np.float32)
        row[:v.shape[0]] = v
        vecs.append(row)
        return len(vecs) - 1

    # ---- fused input head: [time1 | state_proj | action_proj] ----
    # x_in layout: lane 0 = t, lanes [1,1+E) = state, lanes [1+E,1+E+A) = action.
    head = np.zeros((LANES, LANES), np.float32)
    put(head, p["time1"]["w"], 0, 0)                       # -> lanes [0, C)
    put(head, p["state_proj"]["w"], 1, C)                  # -> lanes [C, 2C)
    put(head, p["action_proj"]["w"], 1 + embed_dim, 2 * C) # -> lanes [2C, 3C)
    mats.append(head)
    idx["head_w"] = len(mats) - 1
    hb = np.zeros(LANES, np.float32)
    hb[0:C] = p["time1"]["b"].reshape(-1)
    hb[C:2 * C] = p["state_proj"]["b"].reshape(-1)
    hb[2 * C:3 * C] = p["action_proj"]["b"].reshape(-1)
    vecs.append(hb)
    idx["head_b"] = len(vecs) - 1

    # ---- time2 + concat([sf,af]) + concat([tf,tf]) + initial_expand (fused) ----
    wie = p["initial_expand"]["w"]                 # (2C, 2C): rows [sf | af]
    wtop, wbot = wie[:C], wie[C:2 * C]
    comp_w = p["time2"]["w"] @ (wtop + wbot)       # (C, 2C)
    tie = np.zeros((2 * LANES, LANES), np.float32)
    put(tie, wtop, C, 0)                           # consumes h lanes [C,2C)   = sf
    put(tie, wbot, 2 * C, 0)                       # consumes h lanes [2C,3C)  = af
    put(tie, comp_w, LANES, 0)                     # consumes mish(h) lanes [0,C)
    mats2.append(tie)
    idx["ie_w"] = len(mats2) - 1
    idx["ie_b"] = add_vec(p["initial_expand"]["b"].reshape(-1)
                          + (p["time2"]["b"].reshape(1, -1) @ (wtop + wbot)).reshape(-1))

    def add_gn_masks(d, co):
        cg = co // 2
        m0 = np.zeros(LANES, np.float32); m0[:cg] = 1.0
        m1 = np.zeros(LANES, np.float32); m1[cg:co] = 1.0
        d["m0"] = add_vec(m0)
        d["m1"] = add_vec(m1)
        d["inv"] = 1.0 / float(cg)

    def add_common(bp, d):
        d["b1"] = add_vec(bp["b1"]); d["g1"] = add_vec(bp["g1"]); d["be1"] = add_vec(bp["be1"])
        d["w2"] = add_mat(bp["w2"])
        d["b2"] = add_vec(bp["b2"]); d["g2"] = add_vec(bp["g2"]); d["be2"] = add_vec(bp["be2"])
        add_gn_masks(d, int(bp["w2"].shape[1]))

    def add_block_single(bp):
        d = {"w1": add_mat(bp["w1"])}
        add_common(bp, d)
        if "wr" in bp:
            d["wr"] = add_mat(bp["wr"]); d["br"] = add_vec(bp["br"])
        return d

    def add_block_cat(bp, split):
        # Input is [up (split real channels) | skip]; w1/wr become K=256 tiles.
        d = {"w1": add_mat2(bp["w1"][:split], bp["w1"][split:])}
        add_common(bp, d)
        d["wr"] = add_mat2(bp["wr"][:split], bp["wr"][split:])
        d["br"] = add_vec(bp["br"])
        return d

    idx["down1"] = add_block_single(p["down1"])
    idx["down2"] = add_block_single(p["down2"])
    idx["bottleneck"] = add_block_single(p["bottleneck"])

    idx["up2_w"] = add_mat(p["upconv2"]["w"]); idx["up2_b"] = add_vec(p["upconv2"]["b"])
    idx["upblock2"] = add_block_cat(p["upblock2"], split=int(p["upconv2"]["w"].shape[1]))
    idx["up1_w"] = add_mat(p["upconv1"]["w"]); idx["up1_b"] = add_vec(p["upconv1"]["b"])
    idx["upblock1"] = add_block_cat(p["upblock1"], split=int(p["upconv1"]["w"].shape[1]))

    # final_conv (center tap) ∘ final_linear composed into one affine map.
    wf = p["final_conv"]["w"] @ p["final_linear"]["w"]
    bf = (p["final_conv"]["b"].reshape(1, -1) @ p["final_linear"]["w"]).reshape(-1) \
         + p["final_linear"]["b"].reshape(-1)
    idx["final_w"] = add_mat(wf)
    idx["final_b"] = add_vec(bf)

    nv_pad = ((len(vecs) + 7) // 8) * 8
    vecs += [np.zeros(LANES, np.float32)] * (nv_pad - len(vecs))

    W1 = jnp.asarray(np.stack(mats), dtype=jnp.bfloat16)   # bf16: MXU-native, half the DMA
    W2 = jnp.asarray(np.stack(mats2), dtype=jnp.bfloat16)
    V = jnp.asarray(np.stack(vecs), dtype=jnp.float32)
    return W1, W2, V, idx


# ----------------------------- wrapper / params -----------------------------

def _choose_tiling(batch):
    b_pad = max(8, ((batch + 7) // 8) * 8)
    if b_pad > TB_CAP:
        tb = TB_CAP
        b_pad = ((b_pad + tb - 1) // tb) * tb
    elif b_pad >= 16:
        # >= 2 grid steps so the "parallel" batch axis can shard across the two
        # TensorCores of a v7x chip; weights stay VMEM-resident across steps.
        tb = ((b_pad + 15) // 16) * 8
        b_pad = 2 * tb
    else:
        tb = b_pad
    return b_pad, tb


def build_unet_forward(params, embed_dim, action_dim):
    """Pack parameters once (host-side) and return a jitted forward function."""
    C = int(params["state_proj"]["w"].shape[1])
    assert 8 * C <= LANES, "channel widths above 128 would need K/N tiling"
    assert 1 + embed_dim + action_dim <= LANES

    W1, W2, V, idx = pack_params(params, embed_dim, action_dim)
    kernel = functools.partial(unet_kernel, idx)

    @jax.jit
    def forward(action, state, t):
        B = state.shape[0]
        b_pad, tb = _choose_tiling(B)
        # One lane-dense input slab: lane 0 = t, then state, then action, rest 0.
        x_in = jnp.zeros((b_pad, LANES), jnp.float32)
        x_in = x_in.at[:B, 0:1].set(t.reshape(B, 1).astype(jnp.float32))
        x_in = x_in.at[:B, 1:1 + embed_dim].set(state.astype(jnp.float32))
        x_in = x_in.at[:B, 1 + embed_dim:1 + embed_dim + action_dim].set(
            action.astype(jnp.float32))
        x_in = x_in.astype(jnp.bfloat16)   # it is only ever an MXU operand

        out = pl.pallas_call(
            kernel,
            out_shape=jax.ShapeDtypeStruct((b_pad, LANES), jnp.float32),
            grid=(b_pad // tb,),
            in_specs=[
                pl.BlockSpec((tb, LANES), lambda i: (i, 0)),
                pl.BlockSpec(W1.shape, lambda i: (0, 0, 0)),  # grid-resident weights
                pl.BlockSpec(W2.shape, lambda i: (0, 0, 0)),
                pl.BlockSpec(V.shape, lambda i: (0, 0)),
            ],
            out_specs=pl.BlockSpec((tb, LANES), lambda i: (i, 0)),
            compiler_params=pltpu.CompilerParams(
                dimension_semantics=("parallel",)),
        )(x_in, W1, W2, V)
        return out[:B, :action_dim]

    return forward


def unet_forward(params, action, state, t):
    # Convenience one-shot wrapper (re-packs every call; prefer build_unet_forward
    # in a loop).
    return build_unet_forward(params, state.shape[1], action.shape[1])(action, state, t)


def init_params(key, embed_dim, action_dim, base_channels):
    C = base_channels
    keys = iter(jax.random.split(key, 128))

    def w(shape, scale=0.1):
        return scale * jax.random.normal(next(keys), shape, jnp.float32)

    def lin(i, o):
        return {"w": w((i, o)), "b": w((1, o))}

    def block(i, o, has_res):
        d = {"w1": w((i, o)), "b1": w((1, o)),
             "g1": 1.0 + w((1, o)), "be1": w((1, o)),
             "w2": w((o, o)), "b2": w((1, o)),
             "g2": 1.0 + w((1, o)), "be2": w((1, o))}
        if has_res:
            d["wr"] = w((i, o))
            d["br"] = w((1, o))
        return d

    return {
        "state_proj": lin(embed_dim, C),
        "action_proj": lin(action_dim, C),
        "time1": lin(1, C),
        "time2": lin(C, C),
        "initial_expand": lin(2 * C, 2 * C),       # center tap of k=3 conv
        "down1": block(2 * C, 4 * C, True),        # stride-2 conv on L=1: same matmul
        "down2": block(4 * C, 8 * C, True),
        "bottleneck": block(8 * C, 8 * C, False),  # res_conv = Identity
        "upconv2": lin(8 * C, 4 * C),              # transposed-conv tap 0
        "upblock2": block(12 * C, 4 * C, True),
        "upconv1": lin(4 * C, 2 * C),
        "upblock1": block(6 * C, 2 * C, True),
        "final_conv": lin(2 * C, C),
        "final_linear": lin(C, action_dim),
    }


# ----------------------------- pure-JAX reference -----------------------------

def unet_reference(params, action, state, t):
    def softplus(x):
        return jnp.where(x > 20.0, x, jnp.log1p(jnp.exp(jnp.minimum(x, 20.0))))

    def mish(x):
        return x * jnp.tanh(softplus(x))

    def lin(x, lp):
        return x @ lp["w"] + lp["b"]

    def gn(x, gamma, beta):
        B, Cc = x.shape
        xr = x.reshape(B, NORM_GROUPS, Cc // NORM_GROUPS)
        mu = xr.mean(axis=2, keepdims=True)
        var = ((xr - mu) ** 2).mean(axis=2, keepdims=True)
        xn = ((xr - mu) / jnp.sqrt(var + EPS)).reshape(B, Cc)
        return xn * gamma + beta

    def blockf(x, bp):
        res = x
        out = mish(gn(lin(x, {"w": bp["w1"], "b": bp["b1"]}), bp["g1"], bp["be1"]))
        out = gn(lin(out, {"w": bp["w2"], "b": bp["b2"]}), bp["g2"], bp["be2"])
        if "wr" in bp:
            res = res @ bp["wr"] + bp["br"]
        return mish(out + res)

    p = params
    t2d = t.reshape(-1, 1).astype(jnp.float32)
    sf = lin(state, p["state_proj"])
    af = lin(action, p["action_proj"])
    tf = lin(mish(lin(t2d, p["time1"])), p["time2"])
    x = jnp.concatenate([sf, af], axis=1) + jnp.concatenate([tf, tf], axis=1)
    x = lin(x, p["initial_expand"])
    d1 = blockf(x, p["down1"])
    d2 = blockf(d1, p["down2"])
    mid = blockf(d2, p["bottleneck"])
    x = lin(mid, p["upconv2"])
    x = jnp.concatenate([x, d2], axis=1)
    x = blockf(x, p["upblock2"])
    x = lin(x, p["upconv1"])
    x = jnp.concatenate([x, d1], axis=1)
    x = blockf(x, p["upblock1"])
    x = lin(x, p["final_conv"])
    return lin(x, p["final_linear"])


# ----------------------------- main -----------------------------

if __name__ == "__main__":
    B, embed_dim, action_dim, base_channels = 4, 32, 8, 16

    key = jax.random.PRNGKey(0)
    k1, k2, k3, kp = jax.random.split(key, 4)
    state = jax.random.normal(k1, (B, embed_dim), jnp.float32)
    action = jax.random.normal(k2, (B, action_dim), jnp.float32)
    t = jax.random.uniform(k3, (B,), jnp.float32)

    params = init_params(kp, embed_dim, action_dim, base_channels)

    # Pack once, jit once, then call (inference-loop friendly).
    forward = build_unet_forward(params, embed_dim, action_dim)
    out = jax.block_until_ready(forward(action, state, t))

    ref = unet_reference(params, action, state, t)
    # bf16 matmul operands + approx reciprocal give ~1e-3-level deviation from
    # the f32 reference; 1e-2 leaves margin while still catching structural bugs.
    np.testing.assert_allclose(np.asarray(out), np.asarray(ref), rtol=1e-2, atol=1e-2)

    print("KERNEL_OK")
</pallas_src>

<mosaic_0001>
module attributes {stable_mosaic.version = 11 : i64} {
  func.func @unet_kernel(%arg0: i32, %arg1: memref<8x128xbf16, #tpu.memory_space<vmem>>, %arg2: memref<14x128x128xbf16, #tpu.memory_space<vmem>>, %arg3: memref<5x256x128xbf16, #tpu.memory_space<vmem>>, %arg4: memref<56x128xf32, #tpu.memory_space<vmem>>, %arg5: memref<8x128xf32, #tpu.memory_space<vmem>>) attributes {dimension_semantics = [#tpu.dimension_semantics<parallel>], iteration_bounds = array<i64: 1>, scalar_prefetch = 0 : i64, scratch_operands = 0 : i64, tpu.core_type = #tpu.core_type<tc>, window_params = [{transform_indices = @transform_0, window_bounds = array<i64: 8, 128>}, {pipeline_mode = #tpu.pipeline_mode<synchronous>, transform_indices = @transform_1, window_bounds = array<i64: 14, 128, 128>}, {pipeline_mode = #tpu.pipeline_mode<synchronous>, transform_indices = @transform_2, window_bounds = array<i64: 5, 256, 128>}, {pipeline_mode = #tpu.pipeline_mode<synchronous>, transform_indices = @transform_3, window_bounds = array<i64: 56, 128>}, {transform_indices = @transform_4, window_bounds = array<i64: 8, 128>}]} {
    %c0 = arith.constant 0 : index
    %c0_0 = arith.constant 0 : index
    %0 = vector.load %arg1[%c0, %c0_0] : memref<8x128xbf16, #tpu.memory_space<vmem>>, vector<8x128xbf16>
    %c0_1 = arith.constant 0 : index
    %c0_2 = arith.constant 0 : index
    %c0_3 = arith.constant 0 : index
    %1 = vector.load %arg2[%c0_1, %c0_2, %c0_3] : memref<14x128x128xbf16, #tpu.memory_space<vmem>>, vector<1x128x128xbf16>
    %2 = vector.shape_cast %1 : vector<1x128x128xbf16> to vector<128x128xbf16>
    %cst = arith.constant dense<0.000000e+00> : vector<8x128xf32>
    %3 = tpu.matmul %0, %2, %cst {dimension_numbers = #tpu.dot_dimension_numbers<[1], [0], [0], [1], [0, 0, 1, 1], [], []>} : vector<8x128xbf16>, vector<128x128xbf16>, vector<8x128xf32> -> vector<8x128xf32>
    %c0_4 = arith.constant 0 : index
    %c0_5 = arith.constant 0 : index
    %4 = vector.load %arg4[%c0_4, %c0_5] : memref<56x128xf32, #tpu.memory_space<vmem>>, vector<1x128xf32>
    %5 = vector.broadcast %4 : vector<1x128xf32> to vector<8x128xf32>
    %6 = arith.addf %3, %5 : vector<8x128xf32>
    %cst_6 = arith.constant 2.000000e+01 : f32
    %7 = vector.broadcast %cst_6 : f32 to vector<8x128xf32>
    %8 = arith.minimumf %6, %7 : vector<8x128xf32>
    %9 = math.exp %8 : vector<8x128xf32>
    %cst_7 = arith.constant 1.000000e+00 : f32
    %10 = vector.broadcast %cst_7 : f32 to vector<8x128xf32>
    %11 = arith.addf %10, %9 : vector<8x128xf32>
    %12 = arith.mulf %11, %11 : vector<8x128xf32>
    %cst_8 = arith.constant 1.000000e+00 : f32
    %13 = vector.broadcast %cst_8 : f32 to vector<8x128xf32>
    %14 = arith.addf %12, %13 : vector<8x128xf32>
    %15 = tpu.reciprocal %14 {approx = true} : vector<8x128xf32> -> vector<8x128xf32>
    %cst_9 = arith.constant 2.000000e+00 : f32
    %16 = vector.broadcast %cst_9 : f32 to vector<8x128xf32>
    %17 = arith.mulf %16, %15 : vector<8x128xf32>
    %cst_10 = arith.constant 1.000000e+00 : f32
    %18 = vector.broadcast %cst_10 : f32 to vector<8x128xf32>
    %19 = arith.subf %18, %17 : vector<8x128xf32>
    %cst_11 = arith.constant 2.000000e+01 : f32
    %20 = vector.broadcast %cst_11 : f32 to vector<8x128xf32>
    %21 = arith.cmpf ogt, %6, %20 : vector<8x128xf32>
    %22 = arith.mulf %6, %19 : vector<8x128xf32>
    %23 = arith.select %21, %6, %22 : vector<8x128xi1>, vector<8x128xf32>
    %24 = arith.truncf %6 : vector<8x128xf32> to vector<8x128xbf16>
    %25 = arith.truncf %23 : vector<8x128xf32> to vector<8x128xbf16>
    %26 = tpu.concatenate %24, %25 in 1 : vector<8x128xbf16>, vector<8x128xbf16> -> vector<8x256xbf16>
    %c0_12 = arith.constant 0 : index
    %c0_13 = arith.constant 0 : index
    %c0_14 = arith.constant 0 : index
    %27 = vector.load %arg3[%c0_12, %c0_13, %c0_14] : memref<5x256x128xbf16, #tpu.memory_space<vmem>>, vector<1x256x128xbf16>
    %28 = vector.shape_cast %27 : vector<1x256x128xbf16> to vector<256x128xbf16>
    %cst_15 = arith.constant dense<0.000000e+00> : vector<8x128xf32>
    %29 = tpu.matmul %26, %28, %cst_15 {dimension_numbers = #tpu.dot_dimension_numbers<[1], [0], [0], [1], [0, 0, 1, 1], [], []>} : vector<8x256xbf16>, vector<256x128xbf16>, vector<8x128xf32> -> vector<8x128xf32>
    %c1 = arith.constant 1 : index
    %c0_16 = arith.constant 0 : index
    %30 = vector.load %arg4[%c1, %c0_16] : memref<56x128xf32, #tpu.memory_space<vmem>>, vector<1x128xf32>
    %31 = vector.broadcast %30 : vector<1x128xf32> to vector<8x128xf32>
    %32 = arith.addf %29, %31 : vector<8x128xf32>
    %33 = arith.truncf %32 : vector<8x128xf32> to vector<8x128xbf16>
    %c1_17 = arith.constant 1 : index
    %c0_18 = arith.constant 0 : index
    %c0_19 = arith.constant 0 : index
    %34 = vector.load %arg2[%c1_17, %c0_18, %c0_19] : memref<14x128x128xbf16, #tpu.memory_space<vmem>>, vector<1x128x128xbf16>
    %35 = vector.shape_cast %34 : vector<1x128x128xbf16> to vector<128x128xbf16>
    %cst_20 = arith.constant dense<0.000000e+00> : vector<8x128xf32>
    %36 = tpu.matmul %33, %35, %cst_20 {dimension_numbers = #tpu.dot_dimension_numbers<[1], [0], [0], [1], [0, 0, 1, 1], [], []>} : vector<8x128xbf16>, vector<128x128xbf16>, vector<8x128xf32> -> vector<8x128xf32>
    %c2 = arith.constant 2 : index
    %c0_21 = arith.constant 0 : index
    %37 = vector.load %arg4[%c2, %c0_21] : memref<56x128xf32, #tpu.memory_space<vmem>>, vector<1x128xf32>
    %38 = vector.broadcast %37 : vector<1x128xf32> to vector<8x128xf32>
    %39 = arith.addf %36, %38 : vector<8x128xf32>
    %c3 = arith.constant 3 : index
    %c0_22 = arith.constant 0 : index
    %40 = vector.load %arg4[%c3, %c0_22] : memref<56x128xf32, #tpu.memory_space<vmem>>, vector<1x128xf32>
    %c4 = arith.constant 4 : index
    %c0_23 = arith.constant 0 : index
    %41 = vector.load %arg4[%c4, %c0_23] : memref<56x128xf32, #tpu.memory_space<vmem>>, vector<1x128xf32>
    %c8 = arith.constant 8 : index
    %c0_24 = arith.constant 0 : index
    %42 = vector.load %arg4[%c8, %c0_24] : memref<56x128xf32, #tpu.memory_space<vmem>>, vector<1x128xf32>
    %c9 = arith.constant 9 : index
    %c0_25 = arith.constant 0 : index
    %43 = vector.load %arg4[%c9, %c0_25] : memref<56x128xf32, #tpu.memory_space<vmem>>, vector<1x128xf32>
    %44 = vector.broadcast %42 : vector<1x128xf32> to vector<8x128xf32>
    %45 = arith.mulf %39, %44 : vector<8x128xf32>
    %cst_26 = arith.constant dense<0.000000e+00> : vector<8xf32>
    %46 = vector.multi_reduction <add>, %45, %cst_26 [1] : vector<8x128xf32> to vector<8xf32>
    %47 = vector.shape_cast %46 : vector<8xf32> to vector<8x1xf32>
    %cst_27 = arith.constant dense<0.000000e+00> : vector<8xf32>
    %48 = vector.multi_reduction <add>, %39, %cst_27 [1] : vector<8x128xf32> to vector<8xf32>
    %49 = vector.shape_cast %48 : vector<8xf32> to vector<8x1xf32>
    %50 = arith.mulf %45, %39 : vector<8x128xf32>
    %cst_28 = arith.constant dense<0.000000e+00> : vector<8xf32>
    %51 = vector.multi_reduction <add>, %50, %cst_28 [1] : vector<8x128xf32> to vector<8xf32>
    %52 = vector.shape_cast %51 : vector<8xf32> to vector<8x1xf32>
    %53 = arith.mulf %39, %39 : vector<8x128xf32>
    %cst_29 = arith.constant dense<0.000000e+00> : vector<8xf32>
    %54 = vector.multi_reduction <add>, %53, %cst_29 [1] : vector<8x128xf32> to vector<8xf32>
    %55 = vector.shape_cast %54 : vector<8xf32> to vector<8x1xf32>
    %cst_30 = arith.constant 3.125000e-02 : f32
    %56 = vector.broadcast %cst_30 : f32 to vector<8x1xf32>
    %57 = arith.mulf %47, %56 : vector<8x1xf32>
    %58 = arith.subf %49, %47 : vector<8x1xf32>
    %cst_31 = arith.constant 3.125000e-02 : f32
    %59 = vector.broadcast %cst_31 : f32 to vector<8x1xf32>
    %60 = arith.mulf %58, %59 : vector<8x1xf32>
    %cst_32 = arith.constant 3.125000e-02 : f32
    %61 = vector.broadcast %cst_32 : f32 to vector<8x1xf32>
    %62 = arith.mulf %52, %61 : vector<8x1xf32>
    %63 = arith.mulf %57, %57 : vector<8x1xf32>
    %64 = arith.subf %62, %63 : vector<8x1xf32>
    %65 = arith.subf %55, %52 : vector<8x1xf32>
    %cst_33 = arith.constant 3.125000e-02 : f32
    %66 = vector.broadcast %cst_33 : f32 to vector<8x1xf32>
    %67 = arith.mulf %65, %66 : vector<8x1xf32>
    %68 = arith.mulf %60, %60 : vector<8x1xf32>
    %69 = arith.subf %67, %68 : vector<8x1xf32>
    %cst_34 = arith.constant 9.99999974E-6 : f32
    %70 = vector.broadcast %cst_34 : f32 to vector<8x1xf32>
    %71 = arith.addf %64, %70 : vector<8x1xf32>
    %72 = math.rsqrt %71 : vector<8x1xf32>
    %cst_35 = arith.constant 9.99999974E-6 : f32
    %73 = vector.broadcast %cst_35 : f32 to vector<8x1xf32>
    %74 = arith.addf %69, %73 : vector<8x1xf32>
    %75 = math.rsqrt %74 : vector<8x1xf32>
    %76 = vector.broadcast %57 : vector<8x1xf32> to vector<8x128xf32>
    %77 = vector.broadcast %42 : vector<1x128xf32> to vector<8x128xf32>
    %78 = arith.mulf %76, %77 : vector<8x128xf32>
    %79 = vector.broadcast %60 : vector<8x1xf32> to vector<8x128xf32>
    %80 = vector.broadcast %43 : vector<1x128xf32> to vector<8x128xf32>
    %81 = arith.mulf %79, %80 : vector<8x128xf32>
    %82 = arith.addf %78, %81 : vector<8x128xf32>
    %83 = vector.broadcast %72 : vector<8x1xf32> to vector<8x128xf32>
    %84 = vector.broadcast %42 : vector<1x128xf32> to vector<8x128xf32>
    %85 = arith.mulf %83, %84 : vector<8x128xf32>
    %86 = vector.broadcast %75 : vector<8x1xf32> to vector<8x128xf32>
    %87 = vector.broadcast %43 : vector<1x128xf32> to vector<8x128xf32>
    %88 = arith.mulf %86, %87 : vector<8x128xf32>
    %89 = arith.addf %85, %88 : vector<8x128xf32>
    %90 = arith.subf %39, %82 : vector<8x128xf32>
    %91 = arith.mulf %90, %89 : vector<8x128xf32>
    %92 = vector.broadcast %40 : vector<1x128xf32> to vector<8x128xf32>
    %93 = arith.mulf %91, %92 : vector<8x128xf32>
    %94 = vector.broadcast %41 : vector<1x128xf32> to vector<8x128xf32>
    %95 = arith.addf %93, %94 : vector<8x128xf32>
    %cst_36 = arith.constant 2.000000e+01 : f32
    %96 = vector.broadcast %cst_36 : f32 to vector<8x128xf32>
    %97 = arith.minimumf %95, %96 : vector<8x128xf32>
    %98 = math.exp %97 : vector<8x128xf32>
    %cst_37 = arith.constant 1.000000e+00 : f32
    %99 = vector.broadcast %cst_37 : f32 to vector<8x128xf32>
    %100 = arith.addf %99, %98 : vector<8x128xf32>
    %101 = arith.mulf %100, %100 : vector<8x128xf32>
    %cst_38 = arith.constant 1.000000e+00 : f32
    %102 = vector.broadcast %cst_38 : f32 to vector<8x128xf32>
    %103 = arith.addf %101, %102 : vector<8x128xf32>
    %104 = tpu.reciprocal %103 {approx = true} : vector<8x128xf32> -> vector<8x128xf32>
    %cst_39 = arith.constant 2.000000e+00 : f32
    %105 = vector.broadcast %cst_39 : f32 to vector<8x128xf32>
    %106 = arith.mulf %105, %104 : vector<8x128xf32>
    %cst_40 = arith.constant 1.000000e+00 : f32
    %107 = vector.broadcast %cst_40 : f32 to vector<8x128xf32>
    %108 = arith.subf %107, %106 : vector<8x128xf32>
    %cst_41 = arith.constant 2.000000e+01 : f32
    %109 = vector.broadcast %cst_41 : f32 to vector<8x128xf32>
    %110 = arith.cmpf ogt, %95, %109 : vector<8x128xf32>
    %111 = arith.mulf %95, %108 : vector<8x128xf32>
    %112 = arith.select %110, %95, %111 : vector<8x128xi1>, vector<8x128xf32>
    %113 = arith.truncf %112 : vector<8x128xf32> to vector<8x128xbf16>
    %c2_42 = arith.constant 2 : index
    %c0_43 = arith.constant 0 : index
    %c0_44 = arith.constant 0 : index
    %114 = vector.load %arg2[%c2_42, %c0_43, %c0_44] : memref<14x128x128xbf16, #tpu.memory_space<vmem>>, vector<1x128x128xbf16>
    %115 = vector.shape_cast %114 : vector<1x128x128xbf16> to vector<128x128xbf16>
    %cst_45 = arith.constant dense<0.000000e+00> : vector<8x128xf32>
    %116 = tpu.matmul %113, %115, %cst_45 {dimension_numbers = #tpu.dot_dimension_numbers<[1], [0], [0], [1], [0, 0, 1, 1], [], []>} : vector<8x128xbf16>, vector<128x128xbf16>, vector<8x128xf32> -> vector<8x128xf32>
    %c5 = arith.constant 5 : index
    %c0_46 = arith.constant 0 : index
    %117 = vector.load %arg4[%c5, %c0_46] : memref<56x128xf32, #tpu.memory_space<vmem>>, vector<1x128xf32>
    %118 = vector.broadcast %117 : vector<1x128xf32> to vector<8x128xf32>
    %119 = arith.addf %116, %118 : vector<8x128xf32>
    %c6 = arith.constant 6 : index
    %c0_47 = arith.constant 0 : index
    %120 = vector.load %arg4[%c6, %c0_47] : memref<56x128xf32, #tpu.memory_space<vmem>>, vector<1x128xf32>
    %c7 = arith.constant 7 : index
    %c0_48 = arith.constant 0 : index
    %121 = vector.load %arg4[%c7, %c0_48] : memref<56x128xf32, #tpu.memory_space<vmem>>, vector<1x128xf32>
    %c8_49 = arith.constant 8 : index
    %c0_50 = arith.constant 0 : index
    %122 = vector.load %arg4[%c8_49, %c0_50] : memref<56x128xf32, #tpu.memory_space<vmem>>, vector<1x128xf32>
    %c9_51 = arith.constant 9 : index
    %c0_52 = arith.constant 0 : index
    %123 = vector.load %arg4[%c9_51, %c0_52] : memref<56x128xf32, #tpu.memory_space<vmem>>, vector<1x128xf32>
    %124 = vector.broadcast %122 : vector<1x128xf32> to vector<8x128xf32>
    %125 = arith.mulf %119, %124 : vector<8x128xf32>
    %cst_53 = arith.constant dense<0.000000e+00> : vector<8xf32>
    %126 = vector.multi_reduction <add>, %125, %cst_53 [1] : vector<8x128xf32> to vector<8xf32>
    %127 = vector.shape_cast %126 : vector<8xf32> to vector<8x1xf32>
    %cst_54 = arith.constant dense<0.000000e+00> : vector<8xf32>
    %128 = vector.multi_reduction <add>, %119, %cst_54 [1] : vector<8x128xf32> to vector<8xf32>
    %129 = vector.shape_cast %128 : vector<8xf32> to vector<8x1xf32>
    %130 = arith.mulf %125, %119 : vector<8x128xf32>
    %cst_55 = arith.constant dense<0.000000e+00> : vector<8xf32>
    %131 = vector.multi_reduction <add>, %130, %cst_55 [1] : vector<8x128xf32> to vector<8xf32>
    %132 = vector.shape_cast %131 : vector<8xf32> to vector<8x1xf32>
    %133 = arith.mulf %119, %119 : vector<8x128xf32>
    %cst_56 = arith.constant dense<0.000000e+00> : vector<8xf32>
    %134 = vector.multi_reduction <add>, %133, %cst_56 [1] : vector<8x128xf32> to vector<8xf32>
    %135 = vector.shape_cast %134 : vector<8xf32> to vector<8x1xf32>
    %cst_57 = arith.constant 3.125000e-02 : f32
    %136 = vector.broadcast %cst_57 : f32 to vector<8x1xf32>
    %137 = arith.mulf %127, %136 : vector<8x1xf32>
    %138 = arith.subf %129, %127 : vector<8x1xf32>
    %cst_58 = arith.constant 3.125000e-02 : f32
    %139 = vector.broadcast %cst_58 : f32 to vector<8x1xf32>
    %140 = arith.mulf %138, %139 : vector<8x1xf32>
    %cst_59 = arith.constant 3.125000e-02 : f32
    %141 = vector.broadcast %cst_59 : f32 to vector<8x1xf32>
    %142 = arith.mulf %132, %141 : vector<8x1xf32>
    %143 = arith.mulf %137, %137 : vector<8x1xf32>
    %144 = arith.subf %142, %143 : vector<8x1xf32>
    %145 = arith.subf %135, %132 : vector<8x1xf32>
    %cst_60 = arith.constant 3.125000e-02 : f32
    %146 = vector.broadcast %cst_60 : f32 to vector<8x1xf32>
    %147 = arith.mulf %145, %146 : vector<8x1xf32>
    %148 = arith.mulf %140, %140 : vector<8x1xf32>
    %149 = arith.subf %147, %148 : vector<8x1xf32>
    %cst_61 = arith.constant 9.99999974E-6 : f32
    %150 = vector.broadcast %cst_61 : f32 to vector<8x1xf32>
    %151 = arith.addf %144, %150 : vector<8x1xf32>
    %152 = math.rsqrt %151 : vector<8x1xf32>
    %cst_62 = arith.constant 9.99999974E-6 : f32
    %153 = vector.broadcast %cst_62 : f32 to vector<8x1xf32>
    %154 = arith.addf %149, %153 : vector<8x1xf32>
    %155 = math.rsqrt %154 : vector<8x1xf32>
    %156 = vector.broadcast %137 : vector<8x1xf32> to vector<8x128xf32>
    %157 = vector.broadcast %122 : vector<1x128xf32> to vector<8x128xf32>
    %158 = arith.mulf %156, %157 : vector<8x128xf32>
    %159 = vector.broadcast %140 : vector<8x1xf32> to vector<8x128xf32>
    %160 = vector.broadcast %123 : vector<1x128xf32> to vector<8x128xf32>
    %161 = arith.mulf %159, %160 : vector<8x128xf32>
    %162 = arith.addf %158, %161 : vector<8x128xf32>
    %163 = vector.broadcast %152 : vector<8x1xf32> to vector<8x128xf32>
    %164 = vector.broadcast %122 : vector<1x128xf32> to vector<8x128xf32>
    %165 = arith.mulf %163, %164 : vector<8x128xf32>
    %166 = vector.broadcast %155 : vector<8x1xf32> to vector<8x128xf32>
    %167 = vector.broadcast %123 : vector<1x128xf32> to vector<8x128xf32>
    %168 = arith.mulf %166, %167 : vector<8x128xf32>
    %169 = arith.addf %165, %168 : vector<8x128xf32>
    %170 = arith.subf %119, %162 : vector<8x128xf32>
    %171 = arith.mulf %170, %169 : vector<8x128xf32>
    %172 = vector.broadcast %120 : vector<1x128xf32> to vector<8x128xf32>
    %173 = arith.mulf %171, %172 : vector<8x128xf32>
    %174 = vector.broadcast %121 : vector<1x128xf32> to vector<8x128xf32>
    %175 = arith.addf %173, %174 : vector<8x128xf32>
    %c3_63 = arith.constant 3 : index
    %c0_64 = arith.constant 0 : index
    %c0_65 = arith.constant 0 : index
    %176 = vector.load %arg2[%c3_63, %c0_64, %c0_65] : memref<14x128x128xbf16, #tpu.memory_space<vmem>>, vector<1x128x128xbf16>
    %177 = vector.shape_cast %176 : vector<1x128x128xbf16> to vector<128x128xbf16>
    %cst_66 = arith.constant dense<0.000000e+00> : vector<8x128xf32>
    %178 = tpu.matmul %33, %177, %cst_66 {dimension_numbers = #tpu.dot_dimension_numbers<[1], [0], [0], [1], [0, 0, 1, 1], [], []>} : vector<8x128xbf16>, vector<128x128xbf16>, vector<8x128xf32> -> vector<8x128xf32>
    %c10 = arith.constant 10 : index
    %c0_67 = arith.constant 0 : index
    %179 = vector.load %arg4[%c10, %c0_67] : memref<56x128xf32, #tpu.memory_space<vmem>>, vector<1x128xf32>
    %180 = vector.broadcast %179 : vector<1x128xf32> to vector<8x128xf32>
    %181 = arith.addf %178, %180 : vector<8x128xf32>
    %182 = arith.addf %175, %181 : vector<8x128xf32>
    %cst_68 = arith.constant 2.000000e+01 : f32
    %183 = vector.broadcast %cst_68 : f32 to vector<8x128xf32>
    %184 = arith.minimumf %182, %183 : vector<8x128xf32>
    %185 = math.exp %184 : vector<8x128xf32>
    %cst_69 = arith.constant 1.000000e+00 : f32
    %186 = vector.broadcast %cst_69 : f32 to vector<8x128xf32>
    %187 = arith.addf %186, %185 : vector<8x128xf32>
    %188 = arith.mulf %187, %187 : vector<8x128xf32>
    %cst_70 = arith.constant 1.000000e+00 : f32
    %189 = vector.broadcast %cst_70 : f32 to vector<8x128xf32>
    %190 = arith.addf %188, %189 : vector<8x128xf32>
    %191 = tpu.reciprocal %190 {approx = true} : vector<8x128xf32> -> vector<8x128xf32>
    %cst_71 = arith.constant 2.000000e+00 : f32
    %192 = vector.broadcast %cst_71 : f32 to vector<8x128xf32>
    %193 = arith.mulf %192, %191 : vector<8x128xf32>
    %cst_72 = arith.constant 1.000000e+00 : f32
    %194 = vector.broadcast %cst_72 : f32 to vector<8x128xf32>
    %195 = arith.subf %194, %193 : vector<8x128xf32>
    %cst_73 = arith.constant 2.000000e+01 : f32
    %196 = vector.broadcast %cst_73 : f32 to vector<8x128xf32>
    %197 = arith.cmpf ogt, %182, %196 : vector<8x128xf32>
    %198 = arith.mulf %182, %195 : vector<8x128xf32>
    %199 = arith.select %197, %182, %198 : vector<8x128xi1>, vector<8x128xf32>
    %200 = arith.truncf %199 : vector<8x128xf32> to vector<8x128xbf16>
    %c4_74 = arith.constant 4 : index
    %c0_75 = arith.constant 0 : index
    %c0_76 = arith.constant 0 : index
    %201 = vector.load %arg2[%c4_74, %c0_75, %c0_76] : memref<14x128x128xbf16, #tpu.memory_space<vmem>>, vector<1x128x128xbf16>
    %202 = vector.shape_cast %201 : vector<1x128x128xbf16> to vector<128x128xbf16>
    %cst_77 = arith.constant dense<0.000000e+00> : vector<8x128xf32>
    %203 = tpu.matmul %200, %202, %cst_77 {dimension_numbers = #tpu.dot_dimension_numbers<[1], [0], [0], [1], [0, 0, 1, 1], [], []>} : vector<8x128xbf16>, vector<128x128xbf16>, vector<8x128xf32> -> vector<8x128xf32>
    %c11 = arith.constant 11 : index
    %c0_78 = arith.constant 0 : index
    %204 = vector.load %arg4[%c11, %c0_78] : memref<56x128xf32, #tpu.memory_space<vmem>>, vector<1x128xf32>
    %205 = vector.broadcast %204 : vector<1x128xf32> to vector<8x128xf32>
    %206 = arith.addf %203, %205 : vector<8x128xf32>
    %c12 = arith.constant 12 : index
    %c0_79 = arith.constant 0 : index
    %207 = vector.load %arg4[%c12, %c0_79] : memref<56x128xf32, #tpu.memory_space<vmem>>, vector<1x128xf32>
    %c13 = arith.constant 13 : index
    %c0_80 = arith.constant 0 : index
    %208 = vector.load %arg4[%c13, %c0_80] : memref<56x128xf32, #tpu.memory_space<vmem>>, vector<1x128xf32>
    %c17 = arith.constant 17 : index
    %c0_81 = arith.constant 0 : index
    %209 = vector.load %arg4[%c17, %c0_81] : memref<56x128xf32, #tpu.memory_space<vmem>>, vector<1x128xf32>
    %c18 = arith.constant 18 : index
    %c0_82 = arith.constant 0 : index
    %210 = vector.load %arg4[%c18, %c0_82] : memref<56x128xf32, #tpu.memory_space<vmem>>, vector<1x128xf32>
    %211 = vector.broadcast %209 : vector<1x128xf32> to vector<8x128xf32>
    %212 = arith.mulf %206, %211 : vector<8x128xf32>
    %cst_83 = arith.constant dense<0.000000e+00> : vector<8xf32>
    %213 = vector.multi_reduction <add>, %212, %cst_83 [1] : vector<8x128xf32> to vector<8xf32>
    %214 = vector.shape_cast %213 : vector<8xf32> to vector<8x1xf32>
    %cst_84 = arith.constant dense<0.000000e+00> : vector<8xf32>
    %215 = vector.multi_reduction <add>, %206, %cst_84 [1] : vector<8x128xf32> to vector<8xf32>
    %216 = vector.shape_cast %215 : vector<8xf32> to vector<8x1xf32>
    %217 = arith.mulf %212, %206 : vector<8x128xf32>
    %cst_85 = arith.constant dense<0.000000e+00> : vector<8xf32>
    %218 = vector.multi_reduction <add>, %217, %cst_85 [1] : vector<8x128xf32> to vector<8xf32>
    %219 = vector.shape_cast %218 : vector<8xf32> to vector<8x1xf32>
    %220 = arith.mulf %206, %206 : vector<8x128xf32>
    %cst_86 = arith.constant dense<0.000000e+00> : vector<8xf32>
    %221 = vector.multi_reduction <add>, %220, %cst_86 [1] : vector<8x128xf32> to vector<8xf32>
    %222 = vector.shape_cast %221 : vector<8xf32> to vector<8x1xf32>
    %cst_87 = arith.constant 1.562500e-02 : f32
    %223 = vector.broadcast %cst_87 : f32 to vector<8x1xf32>
    %224 = arith.mulf %214, %223 : vector<8x1xf32>
    %225 = arith.subf %216, %214 : vector<8x1xf32>
    %cst_88 = arith.constant 1.562500e-02 : f32
    %226 = vector.broadcast %cst_88 : f32 to vector<8x1xf32>
    %227 = arith.mulf %225, %226 : vector<8x1xf32>
    %cst_89 = arith.constant 1.562500e-02 : f32
    %228 = vector.broadcast %cst_89 : f32 to vector<8x1xf32>
    %229 = arith.mulf %219, %228 : vector<8x1xf32>
    %230 = arith.mulf %224, %224 : vector<8x1xf32>
    %231 = arith.subf %229, %230 : vector<8x1xf32>
    %232 = arith.subf %222, %219 : vector<8x1xf32>
    %cst_90 = arith.constant 1.562500e-02 : f32
    %233 = vector.broadcast %cst_90 : f32 to vector<8x1xf32>
    %234 = arith.mulf %232, %233 : vector<8x1xf32>
    %235 = arith.mulf %227, %227 : vector<8x1xf32>
    %236 = arith.subf %234, %235 : vector<8x1xf32>
    %cst_91 = arith.constant 9.99999974E-6 : f32
    %237 = vector.broadcast %cst_91 : f32 to vector<8x1xf32>
    %238 = arith.addf %231, %237 : vector<8x1xf32>
    %239 = math.rsqrt %238 : vector<8x1xf32>
    %cst_92 = arith.constant 9.99999974E-6 : f32
    %240 = vector.broadcast %cst_92 : f32 to vector<8x1xf32>
    %241 = arith.addf %236, %240 : vector<8x1xf32>
    %242 = math.rsqrt %241 : vector<8x1xf32>
    %243 = vector.broadcast %224 : vector<8x1xf32> to vector<8x128xf32>
    %244 = vector.broadcast %209 : vector<1x128xf32> to vector<8x128xf32>
    %245 = arith.mulf %243, %244 : vector<8x128xf32>
    %246 = vector.broadcast %227 : vector<8x1xf32> to vector<8x128xf32>
    %247 = vector.broadcast %210 : vector<1x128xf32> to vector<8x128xf32>
    %248 = arith.mulf %246, %247 : vector<8x128xf32>
    %249 = arith.addf %245, %248 : vector<8x128xf32>
    %250 = vector.broadcast %239 : vector<8x1xf32> to vector<8x128xf32>
    %251 = vector.broadcast %209 : vector<1x128xf32> to vector<8x128xf32>
    %252 = arith.mulf %250, %251 : vector<8x128xf32>
    %253 = vector.broadcast %242 : vector<8x1xf32> to vector<8x128xf32>
    %254 = vector.broadcast %210 : vector<1x128xf32> to vector<8x128xf32>
    %255 = arith.mulf %253, %254 : vector<8x128xf32>
    %256 = arith.addf %252, %255 : vector<8x128xf32>
    %257 = arith.subf %206, %249 : vector<8x128xf32>
    %258 = arith.mulf %257, %256 : vector<8x128xf32>
    %259 = vector.broadcast %207 : vector<1x128xf32> to vector<8x128xf32>
    %260 = arith.mulf %258, %259 : vector<8x128xf32>
    %261 = vector.broadcast %208 : vector<1x128xf32> to vector<8x128xf32>
    %262 = arith.addf %260, %261 : vector<8x128xf32>
    %cst_93 = arith.constant 2.000000e+01 : f32
    %263 = vector.broadcast %cst_93 : f32 to vector<8x128xf32>
    %264 = arith.minimumf %262, %263 : vector<8x128xf32>
    %265 = math.exp %264 : vector<8x128xf32>
    %cst_94 = arith.constant 1.000000e+00 : f32
    %266 = vector.broadcast %cst_94 : f32 to vector<8x128xf32>
    %267 = arith.addf %266, %265 : vector<8x128xf32>
    %268 = arith.mulf %267, %267 : vector<8x128xf32>
    %cst_95 = arith.constant 1.000000e+00 : f32
    %269 = vector.broadcast %cst_95 : f32 to vector<8x128xf32>
    %270 = arith.addf %268, %269 : vector<8x128xf32>
    %271 = tpu.reciprocal %270 {approx = true} : vector<8x128xf32> -> vector<8x128xf32>
    %cst_96 = arith.constant 2.000000e+00 : f32
    %272 = vector.broadcast %cst_96 : f32 to vector<8x128xf32>
    %273 = arith.mulf %272, %271 : vector<8x128xf32>
    %cst_97 = arith.constant 1.000000e+00 : f32
    %274 = vector.broadcast %cst_97 : f32 to vector<8x128xf32>
    %275 = arith.subf %274, %273 : vector<8x128xf32>
    %cst_98 = arith.constant 2.000000e+01 : f32
    %276 = vector.broadcast %cst_98 : f32 to vector<8x128xf32>
    %277 = arith.cmpf ogt, %262, %276 : vector<8x128xf32>
    %278 = arith.mulf %262, %275 : vector<8x128xf32>
    %279 = arith.select %277, %262, %278 : vector<8x128xi1>, vector<8x128xf32>
    %280 = arith.truncf %279 : vector<8x128xf32> to vector<8x128xbf16>
    %c5_99 = arith.constant 5 : index
    %c0_100 = arith.constant 0 : index
    %c0_101 = arith.constant 0 : index
    %281 = vector.load %arg2[%c5_99, %c0_100, %c0_101] : memref<14x128x128xbf16, #tpu.memory_space<vmem>>, vector<1x128x128xbf16>
    %282 = vector.shape_cast %281 : vector<1x128x128xbf16> to vector<128x128xbf16>
    %cst_102 = arith.constant dense<0.000000e+00> : vector<8x128xf32>
    %283 = tpu.matmul %280, %282, %cst_102 {dimension_numbers = #tpu.dot_dimension_numbers<[1], [0], [0], [1], [0, 0, 1, 1], [], []>} : vector<8x128xbf16>, vector<128x128xbf16>, vector<8x128xf32> -> vector<8x128xf32>
    %c14 = arith.constant 14 : index
    %c0_103 = arith.constant 0 : index
    %284 = vector.load %arg4[%c14, %c0_103] : memref<56x128xf32, #tpu.memory_space<vmem>>, vector<1x128xf32>
    %285 = vector.broadcast %284 : vector<1x128xf32> to vector<8x128xf32>
    %286 = arith.addf %283, %285 : vector<8x128xf32>
    %c15 = arith.constant 15 : index
    %c0_104 = arith.constant 0 : index
    %287 = vector.load %arg4[%c15, %c0_104] : memref<56x128xf32, #tpu.memory_space<vmem>>, vector<1x128xf32>
    %c16 = arith.constant 16 : index
    %c0_105 = arith.constant 0 : index
    %288 = vector.load %arg4[%c16, %c0_105] : memref<56x128xf32, #tpu.memory_space<vmem>>, vector<1x128xf32>
    %c17_106 = arith.constant 17 : index
    %c0_107 = arith.constant 0 : index
    %289 = vector.load %arg4[%c17_106, %c0_107] : memref<56x128xf32, #tpu.memory_space<vmem>>, vector<1x128xf32>
    %c18_108 = arith.constant 18 : index
    %c0_109 = arith.constant 0 : index
    %290 = vector.load %arg4[%c18_108, %c0_109] : memref<56x128xf32, #tpu.memory_space<vmem>>, vector<1x128xf32>
    %291 = vector.broadcast %289 : vector<1x128xf32> to vector<8x128xf32>
    %292 = arith.mulf %286, %291 : vector<8x128xf32>
    %cst_110 = arith.constant dense<0.000000e+00> : vector<8xf32>
    %293 = vector.multi_reduction <add>, %292, %cst_110 [1] : vector<8x128xf32> to vector<8xf32>
    %294 = vector.shape_cast %293 : vector<8xf32> to vector<8x1xf32>
    %cst_111 = arith.constant dense<0.000000e+00> : vector<8xf32>
    %295 = vector.multi_reduction <add>, %286, %cst_111 [1] : vector<8x128xf32> to vector<8xf32>
    %296 = vector.shape_cast %295 : vector<8xf32> to vector<8x1xf32>
    %297 = arith.mulf %292, %286 : vector<8x128xf32>
    %cst_112 = arith.constant dense<0.000000e+00> : vector<8xf32>
    %298 = vector.multi_reduction <add>, %297, %cst_112 [1] : vector<8x128xf32> to vector<8xf32>
    %299 = vector.shape_cast %298 : vector<8xf32> to vector<8x1xf32>
    %300 = arith.mulf %286, %286 : vector<8x128xf32>
    %cst_113 = arith.constant dense<0.000000e+00> : vector<8xf32>
    %301 = vector.multi_reduction <add>, %300, %cst_113 [1] : vector<8x128xf32> to vector<8xf32>
    %302 = vector.shape_cast %301 : vector<8xf32> to vector<8x1xf32>
    %cst_114 = arith.constant 1.562500e-02 : f32
    %303 = vector.broadcast %cst_114 : f32 to vector<8x1xf32>
    %304 = arith.mulf %294, %303 : vector<8x1xf32>
    %305 = arith.subf %296, %294 : vector<8x1xf32>
    %cst_115 = arith.constant 1.562500e-02 : f32
    %306 = vector.broadcast %cst_115 : f32 to vector<8x1xf32>
    %307 = arith.mulf %305, %306 : vector<8x1xf32>
    %cst_116 = arith.constant 1.562500e-02 : f32
    %308 = vector.broadcast %cst_116 : f32 to vector<8x1xf32>
    %309 = arith.mulf %299, %308 : vector<8x1xf32>
    %310 = arith.mulf %304, %304 : vector<8x1xf32>
    %311 = arith.subf %309, %310 : vector<8x1xf32>
    %312 = arith.subf %302, %299 : vector<8x1xf32>
    %cst_117 = arith.constant 1.562500e-02 : f32
    %313 = vector.broadcast %cst_117 : f32 to vector<8x1xf32>
    %314 = arith.mulf %312, %313 : vector<8x1xf32>
    %315 = arith.mulf %307, %307 : vector<8x1xf32>
    %316 = arith.subf %314, %315 : vector<8x1xf32>
    %cst_118 = arith.constant 9.99999974E-6 : f32
    %317 = vector.broadcast %cst_118 : f32 to vector<8x1xf32>
    %318 = arith.addf %311, %317 : vector<8x1xf32>
    %319 = math.rsqrt %318 : vector<8x1xf32>
    %cst_119 = arith.constant 9.99999974E-6 : f32
    %320 = vector.broadcast %cst_119 : f32 to vector<8x1xf32>
    %321 = arith.addf %316, %320 : vector<8x1xf32>
    %322 = math.rsqrt %321 : vector<8x1xf32>
    %323 = vector.broadcast %304 : vector<8x1xf32> to vector<8x128xf32>
    %324 = vector.broadcast %289 : vector<1x128xf32> to vector<8x128xf32>
    %325 = arith.mulf %323, %324 : vector<8x128xf32>
    %326 = vector.broadcast %307 : vector<8x1xf32> to vector<8x128xf32>
    %327 = vector.broadcast %290 : vector<1x128xf32> to vector<8x128xf32>
    %328 = arith.mulf %326, %327 : vector<8x128xf32>
    %329 = arith.addf %325, %328 : vector<8x128xf32>
    %330 = vector.broadcast %319 : vector<8x1xf32> to vector<8x128xf32>
    %331 = vector.broadcast %289 : vector<1x128xf32> to vector<8x128xf32>
    %332 = arith.mulf %330, %331 : vector<8x128xf32>
    %333 = vector.broadcast %322 : vector<8x1xf32> to vector<8x128xf32>
    %334 = vector.broadcast %290 : vector<1x128xf32> to vector<8x128xf32>
    %335 = arith.mulf %333, %334 : vector<8x128xf32>
    %336 = arith.addf %332, %335 : vector<8x128xf32>
    %337 = arith.subf %286, %329 : vector<8x128xf32>
    %338 = arith.mulf %337, %336 : vector<8x128xf32>
    %339 = vector.broadcast %287 : vector<1x128xf32> to vector<8x128xf32>
    %340 = arith.mulf %338, %339 : vector<8x128xf32>
    %341 = vector.broadcast %288 : vector<1x128xf32> to vector<8x128xf32>
    %342 = arith.addf %340, %341 : vector<8x128xf32>
    %c6_120 = arith.constant 6 : index
    %c0_121 = arith.constant 0 : index
    %c0_122 = arith.constant 0 : index
    %343 = vector.load %arg2[%c6_120, %c0_121, %c0_122] : memref<14x128x128xbf16, #tpu.memory_space<vmem>>, vector<1x128x128xbf16>
    %344 = vector.shape_cast %343 : vector<1x128x128xbf16> to vector<128x128xbf16>
    %cst_123 = arith.constant dense<0.000000e+00> : vector<8x128xf32>
    %345 = tpu.matmul %200, %344, %cst_123 {dimension_numbers = #tpu.dot_dimension_numbers<[1], [0], [0], [1], [0, 0, 1, 1], [], []>} : vector<8x128xbf16>, vector<128x128xbf16>, vector<8x128xf32> -> vector<8x128xf32>
    %c19 = arith.constant 19 : index
    %c0_124 = arith.constant 0 : index
    %346 = vector.load %arg4[%c19, %c0_124] : memref<56x128xf32, #tpu.memory_space<vmem>>, vector<1x128xf32>
    %347 = vector.broadcast %346 : vector<1x128xf32> to vector<8x128xf32>
    %348 = arith.addf %345, %347 : vector<8x128xf32>
    %349 = arith.addf %342, %348 : vector<8x128xf32>
    %cst_125 = arith.constant 2.000000e+01 : f32
    %350 = vector.broadcast %cst_125 : f32 to vector<8x128xf32>
    %351 = arith.minimumf %349, %350 : vector<8x128xf32>
    %352 = math.exp %351 : vector<8x128xf32>
    %cst_126 = arith.constant 1.000000e+00 : f32
    %353 = vector.broadcast %cst_126 : f32 to vector<8x128xf32>
    %354 = arith.addf %353, %352 : vector<8x128xf32>
    %355 = arith.mulf %354, %354 : vector<8x128xf32>
    %cst_127 = arith.constant 1.000000e+00 : f32
    %356 = vector.broadcast %cst_127 : f32 to vector<8x128xf32>
    %357 = arith.addf %355, %356 : vector<8x128xf32>
    %358 = tpu.reciprocal %357 {approx = true} : vector<8x128xf32> -> vector<8x128xf32>
    %cst_128 = arith.constant 2.000000e+00 : f32
    %359 = vector.broadcast %cst_128 : f32 to vector<8x128xf32>
    %360 = arith.mulf %359, %358 : vector<8x128xf32>
    %cst_129 = arith.constant 1.000000e+00 : f32
    %361 = vector.broadcast %cst_129 : f32 to vector<8x128xf32>
    %362 = arith.subf %361, %360 : vector<8x128xf32>
    %cst_130 = arith.constant 2.000000e+01 : f32
    %363 = vector.broadcast %cst_130 : f32 to vector<8x128xf32>
    %364 = arith.cmpf ogt, %349, %363 : vector<8x128xf32>
    %365 = arith.mulf %349, %362 : vector<8x128xf32>
    %366 = arith.select %364, %349, %365 : vector<8x128xi1>, vector<8x128xf32>
    %367 = arith.truncf %366 : vector<8x128xf32> to vector<8x128xbf16>
    %c7_131 = arith.constant 7 : index
    %c0_132 = arith.constant 0 : index
    %c0_133 = arith.constant 0 : index
    %368 = vector.load %arg2[%c7_131, %c0_132, %c0_133] : memref<14x128x128xbf16, #tpu.memory_space<vmem>>, vector<1x128x128xbf16>
    %369 = vector.shape_cast %368 : vector<1x128x128xbf16> to vector<128x128xbf16>
    %cst_134 = arith.constant dense<0.000000e+00> : vector<8x128xf32>
    %370 = tpu.matmul %367, %369, %cst_134 {dimension_numbers = #tpu.dot_dimension_numbers<[1], [0], [0], [1], [0, 0, 1, 1], [], []>} : vector<8x128xbf16>, vector<128x128xbf16>, vector<8x128xf32> -> vector<8x128xf32>
    %c20 = arith.constant 20 : index
    %c0_135 = arith.constant 0 : index
    %371 = vector.load %arg4[%c20, %c0_135] : memref<56x128xf32, #tpu.memory_space<vmem>>, vector<1x128xf32>
    %372 = vector.broadcast %371 : vector<1x128xf32> to vector<8x128xf32>
    %373 = arith.addf %370, %372 : vector<8x128xf32>
    %c21 = arith.constant 21 : index
    %c0_136 = arith.constant 0 : index
    %374 = vector.load %arg4[%c21, %c0_136] : memref<56x128xf32, #tpu.memory_space<vmem>>, vector<1x128xf32>
    %c22 = arith.constant 22 : index
    %c0_137 = arith.constant 0 : index
    %375 = vector.load %arg4[%c22, %c0_137] : memref<56x128xf32, #tpu.memory_space<vmem>>, vector<1x128xf32>
    %c26 = arith.constant 26 : index
    %c0_138 = arith.constant 0 : index
    %376 = vector.load %arg4[%c26, %c0_138] : memref<56x128xf32, #tpu.memory_space<vmem>>, vector<1x128xf32>
    %c27 = arith.constant 27 : index
    %c0_139 = arith.constant 0 : index
    %377 = vector.load %arg4[%c27, %c0_139] : memref<56x128xf32, #tpu.memory_space<vmem>>, vector<1x128xf32>
    %378 = vector.broadcast %376 : vector<1x128xf32> to vector<8x128xf32>
    %379 = arith.mulf %373, %378 : vector<8x128xf32>
    %cst_140 = arith.constant dense<0.000000e+00> : vector<8xf32>
    %380 = vector.multi_reduction <add>, %379, %cst_140 [1] : vector<8x128xf32> to vector<8xf32>
    %381 = vector.shape_cast %380 : vector<8xf32> to vector<8x1xf32>
    %cst_141 = arith.constant dense<0.000000e+00> : vector<8xf32>
    %382 = vector.multi_reduction <add>, %373, %cst_141 [1] : vector<8x128xf32> to vector<8xf32>
    %383 = vector.shape_cast %382 : vector<8xf32> to vector<8x1xf32>
    %384 = arith.mulf %379, %373 : vector<8x128xf32>
    %cst_142 = arith.constant dense<0.000000e+00> : vector<8xf32>
    %385 = vector.multi_reduction <add>, %384, %cst_142 [1] : vector<8x128xf32> to vector<8xf32>
    %386 = vector.shape_cast %385 : vector<8xf32> to vector<8x1xf32>
    %387 = arith.mulf %373, %373 : vector<8x128xf32>
    %cst_143 = arith.constant dense<0.000000e+00> : vector<8xf32>
    %388 = vector.multi_reduction <add>, %387, %cst_143 [1] : vector<8x128xf32> to vector<8xf32>
    %389 = vector.shape_cast %388 : vector<8xf32> to vector<8x1xf32>
    %cst_144 = arith.constant 1.562500e-02 : f32
    %390 = vector.broadcast %cst_144 : f32 to vector<8x1xf32>
    %391 = arith.mulf %381, %390 : vector<8x1xf32>
    %392 = arith.subf %383, %381 : vector<8x1xf32>
    %cst_145 = arith.constant 1.562500e-02 : f32
    %393 = vector.broadcast %cst_145 : f32 to vector<8x1xf32>
    %394 = arith.mulf %392, %393 : vector<8x1xf32>
    %cst_146 = arith.constant 1.562500e-02 : f32
    %395 = vector.broadcast %cst_146 : f32 to vector<8x1xf32>
    %396 = arith.mulf %386, %395 : vector<8x1xf32>
    %397 = arith.mulf %391, %391 : vector<8x1xf32>
    %398 = arith.subf %396, %397 : vector<8x1xf32>
    %399 = arith.subf %389, %386 : vector<8x1xf32>
    %cst_147 = arith.constant 1.562500e-02 : f32
    %400 = vector.broadcast %cst_147 : f32 to vector<8x1xf32>
    %401 = arith.mulf %399, %400 : vector<8x1xf32>
    %402 = arith.mulf %394, %394 : vector<8x1xf32>
    %403 = arith.subf %401, %402 : vector<8x1xf32>
    %cst_148 = arith.constant 9.99999974E-6 : f32
    %404 = vector.broadcast %cst_148 : f32 to vector<8x1xf32>
    %405 = arith.addf %398, %404 : vector<8x1xf32>
    %406 = math.rsqrt %405 : vector<8x1xf32>
    %cst_149 = arith.constant 9.99999974E-6 : f32
    %407 = vector.broadcast %cst_149 : f32 to vector<8x1xf32>
    %408 = arith.addf %403, %407 : vector<8x1xf32>
    %409 = math.rsqrt %408 : vector<8x1xf32>
    %410 = vector.broadcast %391 : vector<8x1xf32> to vector<8x128xf32>
    %411 = vector.broadcast %376 : vector<1x128xf32> to vector<8x128xf32>
    %412 = arith.mulf %410, %411 : vector<8x128xf32>
    %413 = vector.broadcast %394 : vector<8x1xf32> to vector<8x128xf32>
    %414 = vector.broadcast %377 : vector<1x128xf32> to vector<8x128xf32>
    %415 = arith.mulf %413, %414 : vector<8x128xf32>
    %416 = arith.addf %412, %415 : vector<8x128xf32>
    %417 = vector.broadcast %406 : vector<8x1xf32> to vector<8x128xf32>
    %418 = vector.broadcast %376 : vector<1x128xf32> to vector<8x128xf32>
    %419 = arith.mulf %417, %418 : vector<8x128xf32>
    %420 = vector.broadcast %409 : vector<8x1xf32> to vector<8x128xf32>
    %421 = vector.broadcast %377 : vector<1x128xf32> to vector<8x128xf32>
    %422 = arith.mulf %420, %421 : vector<8x128xf32>
    %423 = arith.addf %419, %422 : vector<8x128xf32>
    %424 = arith.subf %373, %416 : vector<8x128xf32>
    %425 = arith.mulf %424, %423 : vector<8x128xf32>
    %426 = vector.broadcast %374 : vector<1x128xf32> to vector<8x128xf32>
    %427 = arith.mulf %425, %426 : vector<8x128xf32>
    %428 = vector.broadcast %375 : vector<1x128xf32> to vector<8x128xf32>
    %429 = arith.addf %427, %428 : vector<8x128xf32>
    %cst_150 = arith.constant 2.000000e+01 : f32
    %430 = vector.broadcast %cst_150 : f32 to vector<8x128xf32>
    %431 = arith.minimumf %429, %430 : vector<8x128xf32>
    %432 = math.exp %431 : vector<8x128xf32>
    %cst_151 = arith.constant 1.000000e+00 : f32
    %433 = vector.broadcast %cst_151 : f32 to vector<8x128xf32>
    %434 = arith.addf %433, %432 : vector<8x128xf32>
    %435 = arith.mulf %434, %434 : vector<8x128xf32>
    %cst_152 = arith.constant 1.000000e+00 : f32
    %436 = vector.broadcast %cst_152 : f32 to vector<8x128xf32>
    %437 = arith.addf %435, %436 : vector<8x128xf32>
    %438 = tpu.reciprocal %437 {approx = true} : vector<8x128xf32> -> vector<8x128xf32>
    %cst_153 = arith.constant 2.000000e+00 : f32
    %439 = vector.broadcast %cst_153 : f32 to vector<8x128xf32>
    %440 = arith.mulf %439, %438 : vector<8x128xf32>
    %cst_154 = arith.constant 1.000000e+00 : f32
    %441 = vector.broadcast %cst_154 : f32 to vector<8x128xf32>
    %442 = arith.subf %441, %440 : vector<8x128xf32>
    %cst_155 = arith.constant 2.000000e+01 : f32
    %443 = vector.broadcast %cst_155 : f32 to vector<8x128xf32>
    %444 = arith.cmpf ogt, %429, %443 : vector<8x128xf32>
    %445 = arith.mulf %429, %442 : vector<8x128xf32>
    %446 = arith.select %444, %429, %445 : vector<8x128xi1>, vector<8x128xf32>
    %447 = arith.truncf %446 : vector<8x128xf32> to vector<8x128xbf16>
    %c8_156 = arith.constant 8 : index
    %c0_157 = arith.constant 0 : index
    %c0_158 = arith.constant 0 : index
    %448 = vector.load %arg2[%c8_156, %c0_157, %c0_158] : memref<14x128x128xbf16, #tpu.memory_space<vmem>>, vector<1x128x128xbf16>
    %449 = vector.shape_cast %448 : vector<1x128x128xbf16> to vector<128x128xbf16>
    %cst_159 = arith.constant dense<0.000000e+00> : vector<8x128xf32>
    %450 = tpu.matmul %447, %449, %cst_159 {dimension_numbers = #tpu.dot_dimension_numbers<[1], [0], [0], [1], [0, 0, 1, 1], [], []>} : vector<8x128xbf16>, vector<128x128xbf16>, vector<8x128xf32> -> vector<8x128xf32>
    %c23 = arith.constant 23 : index
    %c0_160 = arith.constant 0 : index
    %451 = vector.load %arg4[%c23, %c0_160] : memref<56x128xf32, #tpu.memory_space<vmem>>, vector<1x128xf32>
    %452 = vector.broadcast %451 : vector<1x128xf32> to vector<8x128xf32>
    %453 = arith.addf %450, %452 : vector<8x128xf32>
    %c24 = arith.constant 24 : index
    %c0_161 = arith.constant 0 : index
    %454 = vector.load %arg4[%c24, %c0_161] : memref<56x128xf32, #tpu.memory_space<vmem>>, vector<1x128xf32>
    %c25 = arith.constant 25 : index
    %c0_162 = arith.constant 0 : index
    %455 = vector.load %arg4[%c25, %c0_162] : memref<56x128xf32, #tpu.memory_space<vmem>>, vector<1x128xf32>
    %c26_163 = arith.constant 26 : index
    %c0_164 = arith.constant 0 : index
    %456 = vector.load %arg4[%c26_163, %c0_164] : memref<56x128xf32, #tpu.memory_space<vmem>>, vector<1x128xf32>
    %c27_165 = arith.constant 27 : index
    %c0_166 = arith.constant 0 : index
    %457 = vector.load %arg4[%c27_165, %c0_166] : memref<56x128xf32, #tpu.memory_space<vmem>>, vector<1x128xf32>
    %458 = vector.broadcast %456 : vector<1x128xf32> to vector<8x128xf32>
    %459 = arith.mulf %453, %458 : vector<8x128xf32>
    %cst_167 = arith.constant dense<0.000000e+00> : vector<8xf32>
    %460 = vector.multi_reduction <add>, %459, %cst_167 [1] : vector<8x128xf32> to vector<8xf32>
    %461 = vector.shape_cast %460 : vector<8xf32> to vector<8x1xf32>
    %cst_168 = arith.constant dense<0.000000e+00> : vector<8xf32>
    %462 = vector.multi_reduction <add>, %453, %cst_168 [1] : vector<8x128xf32> to vector<8xf32>
    %463 = vector.shape_cast %462 : vector<8xf32> to vector<8x1xf32>
    %464 = arith.mulf %459, %453 : vector<8x128xf32>
    %cst_169 = arith.constant dense<0.000000e+00> : vector<8xf32>
    %465 = vector.multi_reduction <add>, %464, %cst_169 [1] : vector<8x128xf32> to vector<8xf32>
    %466 = vector.shape_cast %465 : vector<8xf32> to vector<8x1xf32>
    %467 = arith.mulf %453, %453 : vector<8x128xf32>
    %cst_170 = arith.constant dense<0.000000e+00> : vector<8xf32>
    %468 = vector.multi_reduction <add>, %467, %cst_170 [1] : vector<8x128xf32> to vector<8xf32>
    %469 = vector.shape_cast %468 : vector<8xf32> to vector<8x1xf32>
    %cst_171 = arith.constant 1.562500e-02 : f32
    %470 = vector.broadcast %cst_171 : f32 to vector<8x1xf32>
    %471 = arith.mulf %461, %470 : vector<8x1xf32>
    %472 = arith.subf %463, %461 : vector<8x1xf32>
    %cst_172 = arith.constant 1.562500e-02 : f32
    %473 = vector.broadcast %cst_172 : f32 to vector<8x1xf32>
    %474 = arith.mulf %472, %473 : vector<8x1xf32>
    %cst_173 = arith.constant 1.562500e-02 : f32
    %475 = vector.broadcast %cst_173 : f32 to vector<8x1xf32>
    %476 = arith.mulf %466, %475 : vector<8x1xf32>
    %477 = arith.mulf %471, %471 : vector<8x1xf32>
    %478 = arith.subf %476, %477 : vector<8x1xf32>
    %479 = arith.subf %469, %466 : vector<8x1xf32>
    %cst_174 = arith.constant 1.562500e-02 : f32
    %480 = vector.broadcast %cst_174 : f32 to vector<8x1xf32>
    %481 = arith.mulf %479, %480 : vector<8x1xf32>
    %482 = arith.mulf %474, %474 : vector<8x1xf32>
    %483 = arith.subf %481, %482 : vector<8x1xf32>
    %cst_175 = arith.constant 9.99999974E-6 : f32
    %484 = vector.broadcast %cst_175 : f32 to vector<8x1xf32>
    %485 = arith.addf %478, %484 : vector<8x1xf32>
    %486 = math.rsqrt %485 : vector<8x1xf32>
    %cst_176 = arith.constant 9.99999974E-6 : f32
    %487 = vector.broadcast %cst_176 : f32 to vector<8x1xf32>
    %488 = arith.addf %483, %487 : vector<8x1xf32>
    %489 = math.rsqrt %488 : vector<8x1xf32>
    %490 = vector.broadcast %471 : vector<8x1xf32> to vector<8x128xf32>
    %491 = vector.broadcast %456 : vector<1x128xf32> to vector<8x128xf32>
    %492 = arith.mulf %490, %491 : vector<8x128xf32>
    %493 = vector.broadcast %474 : vector<8x1xf32> to vector<8x128xf32>
    %494 = vector.broadcast %457 : vector<1x128xf32> to vector<8x128xf32>
    %495 = arith.mulf %493, %494 : vector<8x128xf32>
    %496 = arith.addf %492, %495 : vector<8x128xf32>
    %497 = vector.broadcast %486 : vector<8x1xf32> to vector<8x128xf32>
    %498 = vector.broadcast %456 : vector<1x128xf32> to vector<8x128xf32>
    %499 = arith.mulf %497, %498 : vector<8x128xf32>
    %500 = vector.broadcast %489 : vector<8x1xf32> to vector<8x128xf32>
    %501 = vector.broadcast %457 : vector<1x128xf32> to vector<8x128xf32>
    %502 = arith.mulf %500, %501 : vector<8x128xf32>
    %503 = arith.addf %499, %502 : vector<8x128xf32>
    %504 = arith.subf %453, %496 : vector<8x128xf32>
    %505 = arith.mulf %504, %503 : vector<8x128xf32>
    %506 = vector.broadcast %454 : vector<1x128xf32> to vector<8x128xf32>
    %507 = arith.mulf %505, %506 : vector<8x128xf32>
    %508 = vector.broadcast %455 : vector<1x128xf32> to vector<8x128xf32>
    %509 = arith.addf %507, %508 : vector<8x128xf32>
    %510 = arith.extf %367 : vector<8x128xbf16> to vector<8x128xf32>
    %511 = arith.addf %509, %510 : vector<8x128xf32>
    %cst_177 = arith.constant 2.000000e+01 : f32
    %512 = vector.broadcast %cst_177 : f32 to vector<8x128xf32>
    %513 = arith.minimumf %511, %512 : vector<8x128xf32>
    %514 = math.exp %513 : vector<8x128xf32>
    %cst_178 = arith.constant 1.000000e+00 : f32
    %515 = vector.broadcast %cst_178 : f32 to vector<8x128xf32>
    %516 = arith.addf %515, %514 : vector<8x128xf32>
    %517 = arith.mulf %516, %516 : vector<8x128xf32>
    %cst_179 = arith.constant 1.000000e+00 : f32
    %518 = vector.broadcast %cst_179 : f32 to vector<8x128xf32>
    %519 = arith.addf %517, %518 : vector<8x128xf32>
    %520 = tpu.reciprocal %519 {approx = true} : vector<8x128xf32> -> vector<8x128xf32>
    %cst_180 = arith.constant 2.000000e+00 : f32
    %521 = vector.broadcast %cst_180 : f32 to vector<8x128xf32>
    %522 = arith.mulf %521, %520 : vector<8x128xf32>
    %cst_181 = arith.constant 1.000000e+00 : f32
    %523 = vector.broadcast %cst_181 : f32 to vector<8x128xf32>
    %524 = arith.subf %523, %522 : vector<8x128xf32>
    %cst_182 = arith.constant 2.000000e+01 : f32
    %525 = vector.broadcast %cst_182 : f32 to vector<8x128xf32>
    %526 = arith.cmpf ogt, %511, %525 : vector<8x128xf32>
    %527 = arith.mulf %511, %524 : vector<8x128xf32>
    %528 = arith.select %526, %511, %527 : vector<8x128xi1>, vector<8x128xf32>
    %529 = arith.truncf %528 : vector<8x128xf32> to vector<8x128xbf16>
    %c9_183 = arith.constant 9 : index
    %c0_184 = arith.constant 0 : index
    %c0_185 = arith.constant 0 : index
    %530 = vector.load %arg2[%c9_183, %c0_184, %c0_185] : memref<14x128x128xbf16, #tpu.memory_space<vmem>>, vector<1x128x128xbf16>
    %531 = vector.shape_cast %530 : vector<1x128x128xbf16> to vector<128x128xbf16>
    %cst_186 = arith.constant dense<0.000000e+00> : vector<8x128xf32>
    %532 = tpu.matmul %529, %531, %cst_186 {dimension_numbers = #tpu.dot_dimension_numbers<[1], [0], [0], [1], [0, 0, 1, 1], [], []>} : vector<8x128xbf16>, vector<128x128xbf16>, vector<8x128xf32> -> vector<8x128xf32>
    %c28 = arith.constant 28 : index
    %c0_187 = arith.constant 0 : index
    %533 = vector.load %arg4[%c28, %c0_187] : memref<56x128xf32, #tpu.memory_space<vmem>>, vector<1x128xf32>
    %534 = vector.broadcast %533 : vector<1x128xf32> to vector<8x128xf32>
    %535 = arith.addf %532, %534 : vector<8x128xf32>
    %536 = arith.truncf %535 : vector<8x128xf32> to vector<8x128xbf16>
    %537 = tpu.concatenate %536, %367 in 1 : vector<8x128xbf16>, vector<8x128xbf16> -> vector<8x256xbf16>
    %c1_188 = arith.constant 1 : index
    %c0_189 = arith.constant 0 : index
    %c0_190 = arith.constant 0 : index
    %538 = vector.load %arg3[%c1_188, %c0_189, %c0_190] : memref<5x256x128xbf16, #tpu.memory_space<vmem>>, vector<1x256x128xbf16>
    %539 = vector.shape_cast %538 : vector<1x256x128xbf16> to vector<256x128xbf16>
    %cst_191 = arith.constant dense<0.000000e+00> : vector<8x128xf32>
    %540 = tpu.matmul %537, %539, %cst_191 {dimension_numbers = #tpu.dot_dimension_numbers<[1], [0], [0], [1], [0, 0, 1, 1], [], []>} : vector<8x256xbf16>, vector<256x128xbf16>, vector<8x128xf32> -> vector<8x128xf32>
    %c29 = arith.constant 29 : index
    %c0_192 = arith.constant 0 : index
    %541 = vector.load %arg4[%c29, %c0_192] : memref<56x128xf32, #tpu.memory_space<vmem>>, vector<1x128xf32>
    %542 = vector.broadcast %541 : vector<1x128xf32> to vector<8x128xf32>
    %543 = arith.addf %540, %542 : vector<8x128xf32>
    %c30 = arith.constant 30 : index
    %c0_193 = arith.constant 0 : index
    %544 = vector.load %arg4[%c30, %c0_193] : memref<56x128xf32, #tpu.memory_space<vmem>>, vector<1x128xf32>
    %c31 = arith.constant 31 : index
    %c0_194 = arith.constant 0 : index
    %545 = vector.load %arg4[%c31, %c0_194] : memref<56x128xf32, #tpu.memory_space<vmem>>, vector<1x128xf32>
    %c35 = arith.constant 35 : index
    %c0_195 = arith.constant 0 : index
    %546 = vector.load %arg4[%c35, %c0_195] : memref<56x128xf32, #tpu.memory_space<vmem>>, vector<1x128xf32>
    %c36 = arith.constant 36 : index
    %c0_196 = arith.constant 0 : index
    %547 = vector.load %arg4[%c36, %c0_196] : memref<56x128xf32, #tpu.memory_space<vmem>>, vector<1x128xf32>
    %548 = vector.broadcast %546 : vector<1x128xf32> to vector<8x128xf32>
    %549 = arith.mulf %543, %548 : vector<8x128xf32>
    %cst_197 = arith.constant dense<0.000000e+00> : vector<8xf32>
    %550 = vector.multi_reduction <add>, %549, %cst_197 [1] : vector<8x128xf32> to vector<8xf32>
    %551 = vector.shape_cast %550 : vector<8xf32> to vector<8x1xf32>
    %cst_198 = arith.constant dense<0.000000e+00> : vector<8xf32>
    %552 = vector.multi_reduction <add>, %543, %cst_198 [1] : vector<8x128xf32> to vector<8xf32>
    %553 = vector.shape_cast %552 : vector<8xf32> to vector<8x1xf32>
    %554 = arith.mulf %549, %543 : vector<8x128xf32>
    %cst_199 = arith.constant dense<0.000000e+00> : vector<8xf32>
    %555 = vector.multi_reduction <add>, %554, %cst_199 [1] : vector<8x128xf32> to vector<8xf32>
    %556 = vector.shape_cast %555 : vector<8xf32> to vector<8x1xf32>
    %557 = arith.mulf %543, %543 : vector<8x128xf32>
    %cst_200 = arith.constant dense<0.000000e+00> : vector<8xf32>
    %558 = vector.multi_reduction <add>, %557, %cst_200 [1] : vector<8x128xf32> to vector<8xf32>
    %559 = vector.shape_cast %558 : vector<8xf32> to vector<8x1xf32>
    %cst_201 = arith.constant 3.125000e-02 : f32
    %560 = vector.broadcast %cst_201 : f32 to vector<8x1xf32>
    %561 = arith.mulf %551, %560 : vector<8x1xf32>
    %562 = arith.subf %553, %551 : vector<8x1xf32>
    %cst_202 = arith.constant 3.125000e-02 : f32
    %563 = vector.broadcast %cst_202 : f32 to vector<8x1xf32>
    %564 = arith.mulf %562, %563 : vector<8x1xf32>
    %cst_203 = arith.constant 3.125000e-02 : f32
    %565 = vector.broadcast %cst_203 : f32 to vector<8x1xf32>
    %566 = arith.mulf %556, %565 : vector<8x1xf32>
    %567 = arith.mulf %561, %561 : vector<8x1xf32>
    %568 = arith.subf %566, %567 : vector<8x1xf32>
    %569 = arith.subf %559, %556 : vector<8x1xf32>
    %cst_204 = arith.constant 3.125000e-02 : f32
    %570 = vector.broadcast %cst_204 : f32 to vector<8x1xf32>
    %571 = arith.mulf %569, %570 : vector<8x1xf32>
    %572 = arith.mulf %564, %564 : vector<8x1xf32>
    %573 = arith.subf %571, %572 : vector<8x1xf32>
    %cst_205 = arith.constant 9.99999974E-6 : f32
    %574 = vector.broadcast %cst_205 : f32 to vector<8x1xf32>
    %575 = arith.addf %568, %574 : vector<8x1xf32>
    %576 = math.rsqrt %575 : vector<8x1xf32>
    %cst_206 = arith.constant 9.99999974E-6 : f32
    %577 = vector.broadcast %cst_206 : f32 to vector<8x1xf32>
    %578 = arith.addf %573, %577 : vector<8x1xf32>
    %579 = math.rsqrt %578 : vector<8x1xf32>
    %580 = vector.broadcast %561 : vector<8x1xf32> to vector<8x128xf32>
    %581 = vector.broadcast %546 : vector<1x128xf32> to vector<8x128xf32>
    %582 = arith.mulf %580, %581 : vector<8x128xf32>
    %583 = vector.broadcast %564 : vector<8x1xf32> to vector<8x128xf32>
    %584 = vector.broadcast %547 : vector<1x128xf32> to vector<8x128xf32>
    %585 = arith.mulf %583, %584 : vector<8x128xf32>
    %586 = arith.addf %582, %585 : vector<8x128xf32>
    %587 = vector.broadcast %576 : vector<8x1xf32> to vector<8x128xf32>
    %588 = vector.broadcast %546 : vector<1x128xf32> to vector<8x128xf32>
    %589 = arith.mulf %587, %588 : vector<8x128xf32>
    %590 = vector.broadcast %579 : vector<8x1xf32> to vector<8x128xf32>
    %591 = vector.broadcast %547 : vector<1x128xf32> to vector<8x128xf32>
    %592 = arith.mulf %590, %591 : vector<8x128xf32>
    %593 = arith.addf %589, %592 : vector<8x128xf32>
    %594 = arith.subf %543, %586 : vector<8x128xf32>
    %595 = arith.mulf %594, %593 : vector<8x128xf32>
    %596 = vector.broadcast %544 : vector<1x128xf32> to vector<8x128xf32>
    %597 = arith.mulf %595, %596 : vector<8x128xf32>
    %598 = vector.broadcast %545 : vector<1x128xf32> to vector<8x128xf32>
    %599 = arith.addf %597, %598 : vector<8x128xf32>
    %cst_207 = arith.constant 2.000000e+01 : f32
    %600 = vector.broadcast %cst_207 : f32 to vector<8x128xf32>
    %601 = arith.minimumf %599, %600 : vector<8x128xf32>
    %602 = math.exp %601 : vector<8x128xf32>
    %cst_208 = arith.constant 1.000000e+00 : f32
    %603 = vector.broadcast %cst_208 : f32 to vector<8x128xf32>
    %604 = arith.addf %603, %602 : vector<8x128xf32>
    %605 = arith.mulf %604, %604 : vector<8x128xf32>
    %cst_209 = arith.constant 1.000000e+00 : f32
    %606 = vector.broadcast %cst_209 : f32 to vector<8x128xf32>
    %607 = arith.addf %605, %606 : vector<8x128xf32>
    %608 = tpu.reciprocal %607 {approx = true} : vector<8x128xf32> -> vector<8x128xf32>
    %cst_210 = arith.constant 2.000000e+00 : f32
    %609 = vector.broadcast %cst_210 : f32 to vector<8x128xf32>
    %610 = arith.mulf %609, %608 : vector<8x128xf32>
    %cst_211 = arith.constant 1.000000e+00 : f32
    %611 = vector.broadcast %cst_211 : f32 to vector<8x128xf32>
    %612 = arith.subf %611, %610 : vector<8x128xf32>
    %cst_212 = arith.constant 2.000000e+01 : f32
    %613 = vector.broadcast %cst_212 : f32 to vector<8x128xf32>
    %614 = arith.cmpf ogt, %599, %613 : vector<8x128xf32>
    %615 = arith.mulf %599, %612 : vector<8x128xf32>
    %616 = arith.select %614, %599, %615 : vector<8x128xi1>, vector<8x128xf32>
    %617 = arith.truncf %616 : vector<8x128xf32> to vector<8x128xbf16>
    %c10_213 = arith.constant 10 : index
    %c0_214 = arith.constant 0 : index
    %c0_215 = arith.constant 0 : index
    %618 = vector.load %arg2[%c10_213, %c0_214, %c0_215] : memref<14x128x128xbf16, #tpu.memory_space<vmem>>, vector<1x128x128xbf16>
    %619 = vector.shape_cast %618 : vector<1x128x128xbf16> to vector<128x128xbf16>
    %cst_216 = arith.constant dense<0.000000e+00> : vector<8x128xf32>
    %620 = tpu.matmul %617, %619, %cst_216 {dimension_numbers = #tpu.dot_dimension_numbers<[1], [0], [0], [1], [0, 0, 1, 1], [], []>} : vector<8x128xbf16>, vector<128x128xbf16>, vector<8x128xf32> -> vector<8x128xf32>
    %c32 = arith.constant 32 : index
    %c0_217 = arith.constant 0 : index
    %621 = vector.load %arg4[%c32, %c0_217] : memref<56x128xf32, #tpu.memory_space<vmem>>, vector<1x128xf32>
    %622 = vector.broadcast %621 : vector<1x128xf32> to vector<8x128xf32>
    %623 = arith.addf %620, %622 : vector<8x128xf32>
    %c33 = arith.constant 33 : index
    %c0_218 = arith.constant 0 : index
    %624 = vector.load %arg4[%c33, %c0_218] : memref<56x128xf32, #tpu.memory_space<vmem>>, vector<1x128xf32>
    %c34 = arith.constant 34 : index
    %c0_219 = arith.constant 0 : index
    %625 = vector.load %arg4[%c34, %c0_219] : memref<56x128xf32, #tpu.memory_space<vmem>>, vector<1x128xf32>
    %c35_220 = arith.constant 35 : index
    %c0_221 = arith.constant 0 : index
    %626 = vector.load %arg4[%c35_220, %c0_221] : memref<56x128xf32, #tpu.memory_space<vmem>>, vector<1x128xf32>
    %c36_222 = arith.constant 36 : index
    %c0_223 = arith.constant 0 : index
    %627 = vector.load %arg4[%c36_222, %c0_223] : memref<56x128xf32, #tpu.memory_space<vmem>>, vector<1x128xf32>
    %628 = vector.broadcast %626 : vector<1x128xf32> to vector<8x128xf32>
    %629 = arith.mulf %623, %628 : vector<8x128xf32>
    %cst_224 = arith.constant dense<0.000000e+00> : vector<8xf32>
    %630 = vector.multi_reduction <add>, %629, %cst_224 [1] : vector<8x128xf32> to vector<8xf32>
    %631 = vector.shape_cast %630 : vector<8xf32> to vector<8x1xf32>
    %cst_225 = arith.constant dense<0.000000e+00> : vector<8xf32>
    %632 = vector.multi_reduction <add>, %623, %cst_225 [1] : vector<8x128xf32> to vector<8xf32>
    %633 = vector.shape_cast %632 : vector<8xf32> to vector<8x1xf32>
    %634 = arith.mulf %629, %623 : vector<8x128xf32>
    %cst_226 = arith.constant dense<0.000000e+00> : vector<8xf32>
    %635 = vector.multi_reduction <add>, %634, %cst_226 [1] : vector<8x128xf32> to vector<8xf32>
    %636 = vector.shape_cast %635 : vector<8xf32> to vector<8x1xf32>
    %637 = arith.mulf %623, %623 : vector<8x128xf32>
    %cst_227 = arith.constant dense<0.000000e+00> : vector<8xf32>
    %638 = vector.multi_reduction <add>, %637, %cst_227 [1] : vector<8x128xf32> to vector<8xf32>
    %639 = vector.shape_cast %638 : vector<8xf32> to vector<8x1xf32>
    %cst_228 = arith.constant 3.125000e-02 : f32
    %640 = vector.broadcast %cst_228 : f32 to vector<8x1xf32>
    %641 = arith.mulf %631, %640 : vector<8x1xf32>
    %642 = arith.subf %633, %631 : vector<8x1xf32>
    %cst_229 = arith.constant 3.125000e-02 : f32
    %643 = vector.broadcast %cst_229 : f32 to vector<8x1xf32>
    %644 = arith.mulf %642, %643 : vector<8x1xf32>
    %cst_230 = arith.constant 3.125000e-02 : f32
    %645 = vector.broadcast %cst_230 : f32 to vector<8x1xf32>
    %646 = arith.mulf %636, %645 : vector<8x1xf32>
    %647 = arith.mulf %641, %641 : vector<8x1xf32>
    %648 = arith.subf %646, %647 : vector<8x1xf32>
    %649 = arith.subf %639, %636 : vector<8x1xf32>
    %cst_231 = arith.constant 3.125000e-02 : f32
    %650 = vector.broadcast %cst_231 : f32 to vector<8x1xf32>
    %651 = arith.mulf %649, %650 : vector<8x1xf32>
    %652 = arith.mulf %644, %644 : vector<8x1xf32>
    %653 = arith.subf %651, %652 : vector<8x1xf32>
    %cst_232 = arith.constant 9.99999974E-6 : f32
    %654 = vector.broadcast %cst_232 : f32 to vector<8x1xf32>
    %655 = arith.addf %648, %654 : vector<8x1xf32>
    %656 = math.rsqrt %655 : vector<8x1xf32>
    %cst_233 = arith.constant 9.99999974E-6 : f32
    %657 = vector.broadcast %cst_233 : f32 to vector<8x1xf32>
    %658 = arith.addf %653, %657 : vector<8x1xf32>
    %659 = math.rsqrt %658 : vector<8x1xf32>
    %660 = vector.broadcast %641 : vector<8x1xf32> to vector<8x128xf32>
    %661 = vector.broadcast %626 : vector<1x128xf32> to vector<8x128xf32>
    %662 = arith.mulf %660, %661 : vector<8x128xf32>
    %663 = vector.broadcast %644 : vector<8x1xf32> to vector<8x128xf32>
    %664 = vector.broadcast %627 : vector<1x128xf32> to vector<8x128xf32>
    %665 = arith.mulf %663, %664 : vector<8x128xf32>
    %666 = arith.addf %662, %665 : vector<8x128xf32>
    %667 = vector.broadcast %656 : vector<8x1xf32> to vector<8x128xf32>
    %668 = vector.broadcast %626 : vector<1x128xf32> to vector<8x128xf32>
    %669 = arith.mulf %667, %668 : vector<8x128xf32>
    %670 = vector.broadcast %659 : vector<8x1xf32> to vector<8x128xf32>
    %671 = vector.broadcast %627 : vector<1x128xf32> to vector<8x128xf32>
    %672 = arith.mulf %670, %671 : vector<8x128xf32>
    %673 = arith.addf %669, %672 : vector<8x128xf32>
    %674 = arith.subf %623, %666 : vector<8x128xf32>
    %675 = arith.mulf %674, %673 : vector<8x128xf32>
    %676 = vector.broadcast %624 : vector<1x128xf32> to vector<8x128xf32>
    %677 = arith.mulf %675, %676 : vector<8x128xf32>
    %678 = vector.broadcast %625 : vector<1x128xf32> to vector<8x128xf32>
    %679 = arith.addf %677, %678 : vector<8x128xf32>
    %c2_234 = arith.constant 2 : index
    %c0_235 = arith.constant 0 : index
    %c0_236 = arith.constant 0 : index
    %680 = vector.load %arg3[%c2_234, %c0_235, %c0_236] : memref<5x256x128xbf16, #tpu.memory_space<vmem>>, vector<1x256x128xbf16>
    %681 = vector.shape_cast %680 : vector<1x256x128xbf16> to vector<256x128xbf16>
    %cst_237 = arith.constant dense<0.000000e+00> : vector<8x128xf32>
    %682 = tpu.matmul %537, %681, %cst_237 {dimension_numbers = #tpu.dot_dimension_numbers<[1], [0], [0], [1], [0, 0, 1, 1], [], []>} : vector<8x256xbf16>, vector<256x128xbf16>, vector<8x128xf32> -> vector<8x128xf32>
    %c37 = arith.constant 37 : index
    %c0_238 = arith.constant 0 : index
    %683 = vector.load %arg4[%c37, %c0_238] : memref<56x128xf32, #tpu.memory_space<vmem>>, vector<1x128xf32>
    %684 = vector.broadcast %683 : vector<1x128xf32> to vector<8x128xf32>
    %685 = arith.addf %682, %684 : vector<8x128xf32>
    %686 = arith.addf %679, %685 : vector<8x128xf32>
    %cst_239 = arith.constant 2.000000e+01 : f32
    %687 = vector.broadcast %cst_239 : f32 to vector<8x128xf32>
    %688 = arith.minimumf %686, %687 : vector<8x128xf32>
    %689 = math.exp %688 : vector<8x128xf32>
    %cst_240 = arith.constant 1.000000e+00 : f32
    %690 = vector.broadcast %cst_240 : f32 to vector<8x128xf32>
    %691 = arith.addf %690, %689 : vector<8x128xf32>
    %692 = arith.mulf %691, %691 : vector<8x128xf32>
    %cst_241 = arith.constant 1.000000e+00 : f32
    %693 = vector.broadcast %cst_241 : f32 to vector<8x128xf32>
    %694 = arith.addf %692, %693 : vector<8x128xf32>
    %695 = tpu.reciprocal %694 {approx = true} : vector<8x128xf32> -> vector<8x128xf32>
    %cst_242 = arith.constant 2.000000e+00 : f32
    %696 = vector.broadcast %cst_242 : f32 to vector<8x128xf32>
    %697 = arith.mulf %696, %695 : vector<8x128xf32>
    %cst_243 = arith.constant 1.000000e+00 : f32
    %698 = vector.broadcast %cst_243 : f32 to vector<8x128xf32>
    %699 = arith.subf %698, %697 : vector<8x128xf32>
    %cst_244 = arith.constant 2.000000e+01 : f32
    %700 = vector.broadcast %cst_244 : f32 to vector<8x128xf32>
    %701 = arith.cmpf ogt, %686, %700 : vector<8x128xf32>
    %702 = arith.mulf %686, %699 : vector<8x128xf32>
    %703 = arith.select %701, %686, %702 : vector<8x128xi1>, vector<8x128xf32>
    %704 = arith.truncf %703 : vector<8x128xf32> to vector<8x128xbf16>
    %c11_245 = arith.constant 11 : index
    %c0_246 = arith.constant 0 : index
    %c0_247 = arith.constant 0 : index
    %705 = vector.load %arg2[%c11_245, %c0_246, %c0_247] : memref<14x128x128xbf16, #tpu.memory_space<vmem>>, vector<1x128x128xbf16>
    %706 = vector.shape_cast %705 : vector<1x128x128xbf16> to vector<128x128xbf16>
    %cst_248 = arith.constant dense<0.000000e+00> : vector<8x128xf32>
    %707 = tpu.matmul %704, %706, %cst_248 {dimension_numbers = #tpu.dot_dimension_numbers<[1], [0], [0], [1], [0, 0, 1, 1], [], []>} : vector<8x128xbf16>, vector<128x128xbf16>, vector<8x128xf32> -> vector<8x128xf32>
    %c38 = arith.constant 38 : index
    %c0_249 = arith.constant 0 : index
    %708 = vector.load %arg4[%c38, %c0_249] : memref<56x128xf32, #tpu.memory_space<vmem>>, vector<1x128xf32>
    %709 = vector.broadcast %708 : vector<1x128xf32> to vector<8x128xf32>
    %710 = arith.addf %707, %709 : vector<8x128xf32>
    %711 = arith.truncf %710 : vector<8x128xf32> to vector<8x128xbf16>
    %712 = tpu.concatenate %711, %200 in 1 : vector<8x128xbf16>, vector<8x128xbf16> -> vector<8x256xbf16>
    %c3_250 = arith.constant 3 : index
    %c0_251 = arith.constant 0 : index
    %c0_252 = arith.constant 0 : index
    %713 = vector.load %arg3[%c3_250, %c0_251, %c0_252] : memref<5x256x128xbf16, #tpu.memory_space<vmem>>, vector<1x256x128xbf16>
    %714 = vector.shape_cast %713 : vector<1x256x128xbf16> to vector<256x128xbf16>
    %cst_253 = arith.constant dense<0.000000e+00> : vector<8x128xf32>
    %715 = tpu.matmul %712, %714, %cst_253 {dimension_numbers = #tpu.dot_dimension_numbers<[1], [0], [0], [1], [0, 0, 1, 1], [], []>} : vector<8x256xbf16>, vector<256x128xbf16>, vector<8x128xf32> -> vector<8x128xf32>
    %c39 = arith.constant 39 : index
    %c0_254 = arith.constant 0 : index
    %716 = vector.load %arg4[%c39, %c0_254] : memref<56x128xf32, #tpu.memory_space<vmem>>, vector<1x128xf32>
    %717 = vector.broadcast %716 : vector<1x128xf32> to vector<8x128xf32>
    %718 = arith.addf %715, %717 : vector<8x128xf32>
    %c40 = arith.constant 40 : index
    %c0_255 = arith.constant 0 : index
    %719 = vector.load %arg4[%c40, %c0_255] : memref<56x128xf32, #tpu.memory_space<vmem>>, vector<1x128xf32>
    %c41 = arith.constant 41 : index
    %c0_256 = arith.constant 0 : index
    %720 = vector.load %arg4[%c41, %c0_256] : memref<56x128xf32, #tpu.memory_space<vmem>>, vector<1x128xf32>
    %c45 = arith.constant 45 : index
    %c0_257 = arith.constant 0 : index
    %721 = vector.load %arg4[%c45, %c0_257] : memref<56x128xf32, #tpu.memory_space<vmem>>, vector<1x128xf32>
    %c46 = arith.constant 46 : index
    %c0_258 = arith.constant 0 : index
    %722 = vector.load %arg4[%c46, %c0_258] : memref<56x128xf32, #tpu.memory_space<vmem>>, vector<1x128xf32>
    %723 = vector.broadcast %721 : vector<1x128xf32> to vector<8x128xf32>
    %724 = arith.mulf %718, %723 : vector<8x128xf32>
    %cst_259 = arith.constant dense<0.000000e+00> : vector<8xf32>
    %725 = vector.multi_reduction <add>, %724, %cst_259 [1] : vector<8x128xf32> to vector<8xf32>
    %726 = vector.shape_cast %725 : vector<8xf32> to vector<8x1xf32>
    %cst_260 = arith.constant dense<0.000000e+00> : vector<8xf32>
    %727 = vector.multi_reduction <add>, %718, %cst_260 [1] : vector<8x128xf32> to vector<8xf32>
    %728 = vector.shape_cast %727 : vector<8xf32> to vector<8x1xf32>
    %729 = arith.mulf %724, %718 : vector<8x128xf32>
    %cst_261 = arith.constant dense<0.000000e+00> : vector<8xf32>
    %730 = vector.multi_reduction <add>, %729, %cst_261 [1] : vector<8x128xf32> to vector<8xf32>
    %731 = vector.shape_cast %730 : vector<8xf32> to vector<8x1xf32>
    %732 = arith.mulf %718, %718 : vector<8x128xf32>
    %cst_262 = arith.constant dense<0.000000e+00> : vector<8xf32>
    %733 = vector.multi_reduction <add>, %732, %cst_262 [1] : vector<8x128xf32> to vector<8xf32>
    %734 = vector.shape_cast %733 : vector<8xf32> to vector<8x1xf32>
    %cst_263 = arith.constant 6.250000e-02 : f32
    %735 = vector.broadcast %cst_263 : f32 to vector<8x1xf32>
    %736 = arith.mulf %726, %735 : vector<8x1xf32>
    %737 = arith.subf %728, %726 : vector<8x1xf32>
    %cst_264 = arith.constant 6.250000e-02 : f32
    %738 = vector.broadcast %cst_264 : f32 to vector<8x1xf32>
    %739 = arith.mulf %737, %738 : vector<8x1xf32>
    %cst_265 = arith.constant 6.250000e-02 : f32
    %740 = vector.broadcast %cst_265 : f32 to vector<8x1xf32>
    %741 = arith.mulf %731, %740 : vector<8x1xf32>
    %742 = arith.mulf %736, %736 : vector<8x1xf32>
    %743 = arith.subf %741, %742 : vector<8x1xf32>
    %744 = arith.subf %734, %731 : vector<8x1xf32>
    %cst_266 = arith.constant 6.250000e-02 : f32
    %745 = vector.broadcast %cst_266 : f32 to vector<8x1xf32>
    %746 = arith.mulf %744, %745 : vector<8x1xf32>
    %747 = arith.mulf %739, %739 : vector<8x1xf32>
    %748 = arith.subf %746, %747 : vector<8x1xf32>
    %cst_267 = arith.constant 9.99999974E-6 : f32
    %749 = vector.broadcast %cst_267 : f32 to vector<8x1xf32>
    %750 = arith.addf %743, %749 : vector<8x1xf32>
    %751 = math.rsqrt %750 : vector<8x1xf32>
    %cst_268 = arith.constant 9.99999974E-6 : f32
    %752 = vector.broadcast %cst_268 : f32 to vector<8x1xf32>
    %753 = arith.addf %748, %752 : vector<8x1xf32>
    %754 = math.rsqrt %753 : vector<8x1xf32>
    %755 = vector.broadcast %736 : vector<8x1xf32> to vector<8x128xf32>
    %756 = vector.broadcast %721 : vector<1x128xf32> to vector<8x128xf32>
    %757 = arith.mulf %755, %756 : vector<8x128xf32>
    %758 = vector.broadcast %739 : vector<8x1xf32> to vector<8x128xf32>
    %759 = vector.broadcast %722 : vector<1x128xf32> to vector<8x128xf32>
    %760 = arith.mulf %758, %759 : vector<8x128xf32>
    %761 = arith.addf %757, %760 : vector<8x128xf32>
    %762 = vector.broadcast %751 : vector<8x1xf32> to vector<8x128xf32>
    %763 = vector.broadcast %721 : vector<1x128xf32> to vector<8x128xf32>
    %764 = arith.mulf %762, %763 : vector<8x128xf32>
    %765 = vector.broadcast %754 : vector<8x1xf32> to vector<8x128xf32>
    %766 = vector.broadcast %722 : vector<1x128xf32> to vector<8x128xf32>
    %767 = arith.mulf %765, %766 : vector<8x128xf32>
    %768 = arith.addf %764, %767 : vector<8x128xf32>
    %769 = arith.subf %718, %761 : vector<8x128xf32>
    %770 = arith.mulf %769, %768 : vector<8x128xf32>
    %771 = vector.broadcast %719 : vector<1x128xf32> to vector<8x128xf32>
    %772 = arith.mulf %770, %771 : vector<8x128xf32>
    %773 = vector.broadcast %720 : vector<1x128xf32> to vector<8x128xf32>
    %774 = arith.addf %772, %773 : vector<8x128xf32>
    %cst_269 = arith.constant 2.000000e+01 : f32
    %775 = vector.broadcast %cst_269 : f32 to vector<8x128xf32>
    %776 = arith.minimumf %774, %775 : vector<8x128xf32>
    %777 = math.exp %776 : vector<8x128xf32>
    %cst_270 = arith.constant 1.000000e+00 : f32
    %778 = vector.broadcast %cst_270 : f32 to vector<8x128xf32>
    %779 = arith.addf %778, %777 : vector<8x128xf32>
    %780 = arith.mulf %779, %779 : vector<8x128xf32>
    %cst_271 = arith.constant 1.000000e+00 : f32
    %781 = vector.broadcast %cst_271 : f32 to vector<8x128xf32>
    %782 = arith.addf %780, %781 : vector<8x128xf32>
    %783 = tpu.reciprocal %782 {approx = true} : vector<8x128xf32> -> vector<8x128xf32>
    %cst_272 = arith.constant 2.000000e+00 : f32
    %784 = vector.broadcast %cst_272 : f32 to vector<8x128xf32>
    %785 = arith.mulf %784, %783 : vector<8x128xf32>
    %cst_273 = arith.constant 1.000000e+00 : f32
    %786 = vector.broadcast %cst_273 : f32 to vector<8x128xf32>
    %787 = arith.subf %786, %785 : vector<8x128xf32>
    %cst_274 = arith.constant 2.000000e+01 : f32
    %788 = vector.broadcast %cst_274 : f32 to vector<8x128xf32>
    %789 = arith.cmpf ogt, %774, %788 : vector<8x128xf32>
    %790 = arith.mulf %774, %787 : vector<8x128xf32>
    %791 = arith.select %789, %774, %790 : vector<8x128xi1>, vector<8x128xf32>
    %792 = arith.truncf %791 : vector<8x128xf32> to vector<8x128xbf16>
    %c12_275 = arith.constant 12 : index
    %c0_276 = arith.constant 0 : index
    %c0_277 = arith.constant 0 : index
    %793 = vector.load %arg2[%c12_275, %c0_276, %c0_277] : memref<14x128x128xbf16, #tpu.memory_space<vmem>>, vector<1x128x128xbf16>
    %794 = vector.shape_cast %793 : vector<1x128x128xbf16> to vector<128x128xbf16>
    %cst_278 = arith.constant dense<0.000000e+00> : vector<8x128xf32>
    %795 = tpu.matmul %792, %794, %cst_278 {dimension_numbers = #tpu.dot_dimension_numbers<[1], [0], [0], [1], [0, 0, 1, 1], [], []>} : vector<8x128xbf16>, vector<128x128xbf16>, vector<8x128xf32> -> vector<8x128xf32>
    %c42 = arith.constant 42 : index
    %c0_279 = arith.constant 0 : index
    %796 = vector.load %arg4[%c42, %c0_279] : memref<56x128xf32, #tpu.memory_space<vmem>>, vector<1x128xf32>
    %797 = vector.broadcast %796 : vector<1x128xf32> to vector<8x128xf32>
    %798 = arith.addf %795, %797 : vector<8x128xf32>
    %c43 = arith.constant 43 : index
    %c0_280 = arith.constant 0 : index
    %799 = vector.load %arg4[%c43, %c0_280] : memref<56x128xf32, #tpu.memory_space<vmem>>, vector<1x128xf32>
    %c44 = arith.constant 44 : index
    %c0_281 = arith.constant 0 : index
    %800 = vector.load %arg4[%c44, %c0_281] : memref<56x128xf32, #tpu.memory_space<vmem>>, vector<1x128xf32>
    %c45_282 = arith.constant 45 : index
    %c0_283 = arith.constant 0 : index
    %801 = vector.load %arg4[%c45_282, %c0_283] : memref<56x128xf32, #tpu.memory_space<vmem>>, vector<1x128xf32>
    %c46_284 = arith.constant 46 : index
    %c0_285 = arith.constant 0 : index
    %802 = vector.load %arg4[%c46_284, %c0_285] : memref<56x128xf32, #tpu.memory_space<vmem>>, vector<1x128xf32>
    %803 = vector.broadcast %801 : vector<1x128xf32> to vector<8x128xf32>
    %804 = arith.mulf %798, %803 : vector<8x128xf32>
    %cst_286 = arith.constant dense<0.000000e+00> : vector<8xf32>
    %805 = vector.multi_reduction <add>, %804, %cst_286 [1] : vector<8x128xf32> to vector<8xf32>
    %806 = vector.shape_cast %805 : vector<8xf32> to vector<8x1xf32>
    %cst_287 = arith.constant dense<0.000000e+00> : vector<8xf32>
    %807 = vector.multi_reduction <add>, %798, %cst_287 [1] : vector<8x128xf32> to vector<8xf32>
    %808 = vector.shape_cast %807 : vector<8xf32> to vector<8x1xf32>
    %809 = arith.mulf %804, %798 : vector<8x128xf32>
    %cst_288 = arith.constant dense<0.000000e+00> : vector<8xf32>
    %810 = vector.multi_reduction <add>, %809, %cst_288 [1] : vector<8x128xf32> to vector<8xf32>
    %811 = vector.shape_cast %810 : vector<8xf32> to vector<8x1xf32>
    %812 = arith.mulf %798, %798 : vector<8x128xf32>
    %cst_289 = arith.constant dense<0.000000e+00> : vector<8xf32>
    %813 = vector.multi_reduction <add>, %812, %cst_289 [1] : vector<8x128xf32> to vector<8xf32>
    %814 = vector.shape_cast %813 : vector<8xf32> to vector<8x1xf32>
    %cst_290 = arith.constant 6.250000e-02 : f32
    %815 = vector.broadcast %cst_290 : f32 to vector<8x1xf32>
    %816 = arith.mulf %806, %815 : vector<8x1xf32>
    %817 = arith.subf %808, %806 : vector<8x1xf32>
    %cst_291 = arith.constant 6.250000e-02 : f32
    %818 = vector.broadcast %cst_291 : f32 to vector<8x1xf32>
    %819 = arith.mulf %817, %818 : vector<8x1xf32>
    %cst_292 = arith.constant 6.250000e-02 : f32
    %820 = vector.broadcast %cst_292 : f32 to vector<8x1xf32>
    %821 = arith.mulf %811, %820 : vector<8x1xf32>
    %822 = arith.mulf %816, %816 : vector<8x1xf32>
    %823 = arith.subf %821, %822 : vector<8x1xf32>
    %824 = arith.subf %814, %811 : vector<8x1xf32>
    %cst_293 = arith.constant 6.250000e-02 : f32
    %825 = vector.broadcast %cst_293 : f32 to vector<8x1xf32>
    %826 = arith.mulf %824, %825 : vector<8x1xf32>
    %827 = arith.mulf %819, %819 : vector<8x1xf32>
    %828 = arith.subf %826, %827 : vector<8x1xf32>
    %cst_294 = arith.constant 9.99999974E-6 : f32
    %829 = vector.broadcast %cst_294 : f32 to vector<8x1xf32>
    %830 = arith.addf %823, %829 : vector<8x1xf32>
    %831 = math.rsqrt %830 : vector<8x1xf32>
    %cst_295 = arith.constant 9.99999974E-6 : f32
    %832 = vector.broadcast %cst_295 : f32 to vector<8x1xf32>
    %833 = arith.addf %828, %832 : vector<8x1xf32>
    %834 = math.rsqrt %833 : vector<8x1xf32>
    %835 = vector.broadcast %816 : vector<8x1xf32> to vector<8x128xf32>
    %836 = vector.broadcast %801 : vector<1x128xf32> to vector<8x128xf32>
    %837 = arith.mulf %835, %836 : vector<8x128xf32>
    %838 = vector.broadcast %819 : vector<8x1xf32> to vector<8x128xf32>
    %839 = vector.broadcast %802 : vector<1x128xf32> to vector<8x128xf32>
    %840 = arith.mulf %838, %839 : vector<8x128xf32>
    %841 = arith.addf %837, %840 : vector<8x128xf32>
    %842 = vector.broadcast %831 : vector<8x1xf32> to vector<8x128xf32>
    %843 = vector.broadcast %801 : vector<1x128xf32> to vector<8x128xf32>
    %844 = arith.mulf %842, %843 : vector<8x128xf32>
    %845 = vector.broadcast %834 : vector<8x1xf32> to vector<8x128xf32>
    %846 = vector.broadcast %802 : vector<1x128xf32> to vector<8x128xf32>
    %847 = arith.mulf %845, %846 : vector<8x128xf32>
    %848 = arith.addf %844, %847 : vector<8x128xf32>
    %849 = arith.subf %798, %841 : vector<8x128xf32>
    %850 = arith.mulf %849, %848 : vector<8x128xf32>
    %851 = vector.broadcast %799 : vector<1x128xf32> to vector<8x128xf32>
    %852 = arith.mulf %850, %851 : vector<8x128xf32>
    %853 = vector.broadcast %800 : vector<1x128xf32> to vector<8x128xf32>
    %854 = arith.addf %852, %853 : vector<8x128xf32>
    %c4_296 = arith.constant 4 : index
    %c0_297 = arith.constant 0 : index
    %c0_298 = arith.constant 0 : index
    %855 = vector.load %arg3[%c4_296, %c0_297, %c0_298] : memref<5x256x128xbf16, #tpu.memory_space<vmem>>, vector<1x256x128xbf16>
    %856 = vector.shape_cast %855 : vector<1x256x128xbf16> to vector<256x128xbf16>
    %cst_299 = arith.constant dense<0.000000e+00> : vector<8x128xf32>
    %857 = tpu.matmul %712, %856, %cst_299 {dimension_numbers = #tpu.dot_dimension_numbers<[1], [0], [0], [1], [0, 0, 1, 1], [], []>} : vector<8x256xbf16>, vector<256x128xbf16>, vector<8x128xf32> -> vector<8x128xf32>
    %c47 = arith.constant 47 : index
    %c0_300 = arith.constant 0 : index
    %858 = vector.load %arg4[%c47, %c0_300] : memref<56x128xf32, #tpu.memory_space<vmem>>, vector<1x128xf32>
    %859 = vector.broadcast %858 : vector<1x128xf32> to vector<8x128xf32>
    %860 = arith.addf %857, %859 : vector<8x128xf32>
    %861 = arith.addf %854, %860 : vector<8x128xf32>
    %cst_301 = arith.constant 2.000000e+01 : f32
    %862 = vector.broadcast %cst_301 : f32 to vector<8x128xf32>
    %863 = arith.minimumf %861, %862 : vector<8x128xf32>
    %864 = math.exp %863 : vector<8x128xf32>
    %cst_302 = arith.constant 1.000000e+00 : f32
    %865 = vector.broadcast %cst_302 : f32 to vector<8x128xf32>
    %866 = arith.addf %865, %864 : vector<8x128xf32>
    %867 = arith.mulf %866, %866 : vector<8x128xf32>
    %cst_303 = arith.constant 1.000000e+00 : f32
    %868 = vector.broadcast %cst_303 : f32 to vector<8x128xf32>
    %869 = arith.addf %867, %868 : vector<8x128xf32>
    %870 = tpu.reciprocal %869 {approx = true} : vector<8x128xf32> -> vector<8x128xf32>
    %cst_304 = arith.constant 2.000000e+00 : f32
    %871 = vector.broadcast %cst_304 : f32 to vector<8x128xf32>
    %872 = arith.mulf %871, %870 : vector<8x128xf32>
    %cst_305 = arith.constant 1.000000e+00 : f32
    %873 = vector.broadcast %cst_305 : f32 to vector<8x128xf32>
    %874 = arith.subf %873, %872 : vector<8x128xf32>
    %cst_306 = arith.constant 2.000000e+01 : f32
    %875 = vector.broadcast %cst_306 : f32 to vector<8x128xf32>
    %876 = arith.cmpf ogt, %861, %875 : vector<8x128xf32>
    %877 = arith.mulf %861, %874 : vector<8x128xf32>
    %878 = arith.select %876, %861, %877 : vector<8x128xi1>, vector<8x128xf32>
    %879 = arith.truncf %878 : vector<8x128xf32> to vector<8x128xbf16>
    %c13_307 = arith.constant 13 : index
    %c0_308 = arith.constant 0 : index
    %c0_309 = arith.constant 0 : index
    %880 = vector.load %arg2[%c13_307, %c0_308, %c0_309] : memref<14x128x128xbf16, #tpu.memory_space<vmem>>, vector<1x128x128xbf16>
    %881 = vector.shape_cast %880 : vector<1x128x128xbf16> to vector<128x128xbf16>
    %cst_310 = arith.constant dense<0.000000e+00> : vector<8x128xf32>
    %882 = tpu.matmul %879, %881, %cst_310 {dimension_numbers = #tpu.dot_dimension_numbers<[1], [0], [0], [1], [0, 0, 1, 1], [], []>} : vector<8x128xbf16>, vector<128x128xbf16>, vector<8x128xf32> -> vector<8x128xf32>
    %c48 = arith.constant 48 : index
    %c0_311 = arith.constant 0 : index
    %883 = vector.load %arg4[%c48, %c0_311] : memref<56x128xf32, #tpu.memory_space<vmem>>, vector<1x128xf32>
    %884 = vector.broadcast %883 : vector<1x128xf32> to vector<8x128xf32>
    %885 = arith.addf %882, %884 : vector<8x128xf32>
    %c0_312 = arith.constant 0 : index
    %c0_313 = arith.constant 0 : index
    %886 = vector.load %arg5[%c0_312, %c0_313] : memref<8x128xf32, #tpu.memory_space<vmem>>, vector<8x128xf32>
    tpu.vector_store %arg5[%c0_312, %c0_313], %885 {strides = array<i32>} : memref<8x128xf32, #tpu.memory_space<vmem>>, vector<8x128xf32>,
    return
  }
  func.func @transform_0(%arg0: i32) -> (i32, i32) {
    %c0_i32 = arith.constant 0 : i32
    %c0_i32_0 = arith.constant 0 : i32
    return %arg0, %c0_i32 : i32, i32
  }
  func.func @transform_1(%arg0: i32) -> (i32, i32, i32) {
    %c0_i32 = arith.constant 0 : i32
    %c0_i32_0 = arith.constant 0 : i32
    %c0_i32_1 = arith.constant 0 : i32
    %c0_i32_2 = arith.constant 0 : i32
    return %c0_i32, %c0_i32_0, %c0_i32_1 : i32, i32, i32
  }
  func.func @transform_2(%arg0: i32) -> (i32, i32, i32) {
    %c0_i32 = arith.constant 0 : i32
    %c0_i32_0 = arith.constant 0 : i32
    %c0_i32_1 = arith.constant 0 : i32
    %c0_i32_2 = arith.constant 0 : i32
    return %c0_i32, %c0_i32_0, %c0_i32_1 : i32, i32, i32
  }
  func.func @transform_3(%arg0: i32) -> (i32, i32) {
    %c0_i32 = arith.constant 0 : i32
    %c0_i32_0 = arith.constant 0 : i32
    %c0_i32_1 = arith.constant 0 : i32
    return %c0_i32, %c0_i32_0 : i32, i32
  }
  func.func @transform_4(%arg0: i32) -> (i32, i32) {
    %c0_i32 = arith.constant 0 : i32
    %c0_i32_0 = arith.constant 0 : i32
    return %arg0, %c0_i32 : i32, i32
  }
}

</mosaic_0001>

<bundles_post_ra>
// kernel: forward.1
= control target key start
LH: loop header
LB: loop body
LE: loop exit
PB: predicated region body
PF: predicated region fallthrough
CT: control target
= control target key end

     0   :  { %9 = vsyncpa [#allocation3], 0  ;;  %s4121_s0 = inlined_call_operand.vmem [shape: bf16[8,128], index: 0, kind: input, shape index: {}]   ;;  %s4122_s1 = inlined_call_operand.hbm [shape: bf16[14,128,128], index: 1, kind: input, shape index: {}]   ;;  %s4123_s2 = inlined_call_operand.hbm [shape: bf16[5,256,128], index: 2, kind: input, shape index: {}]   ;;  %s4124_s3 = inlined_call_operand.hbm [shape: f32[56,128], index: 3, kind: input, shape index: {}]   ;;  %s4125_s4 = inlined_call_operand.vmem [shape: f32[8,128], index: 4, kind: output, shape index: {}]  }
   0x1   :  { %10 = vsyncpa [#allocation5], 0  ;;  %s30_s17 = sshll.u32 %s4123_s2, 4  ;;  %s3894_s18 = smov [#allocation4]   ;;  %s31_s17 = int_to_ptr.hbm [resolvable:$true] %s30_s17 }
   0x2   :  { %s32_s19 = sshll.u32 %s3894_s18, 4  ;;  %s17_s22 = sshll.u32 %s4122_s1, 4  ;;  %s33_s19 = int_to_ptr.vmem [resolvable:$true] %s32_s19  ;;  %s18_s22 = int_to_ptr.hbm [resolvable:$true] %s17_s22 }
   0x3   :  { %s3895_s23 = smov 64   ;;  %s3896_s24 = smov 4  }
   0x4   :  { %38 = dma.hbm_to_vmem [thread:$0]  %s31_s17, 10240, %s33_s19, [#allocation5], %s3895_s23, %s3895_s23, %s3896_s24  }
   0x5   :  { %s3897_s25 = smov [#allocation2]   ;;  %s43_s29 = sshll.u32 %s4124_s3, 4  ;;  %s44_s29 = int_to_ptr.hbm [resolvable:$true] %s43_s29 }
   0x6   :  { %s19_s26 = sshll.u32 %s3897_s25, 4  ;;  %s3898_s2 = smov [#allocation6]   ;;  %s20_s26 = int_to_ptr.vmem [resolvable:$true] %s19_s26 }
   0x7   :  { %25 = dma.hbm_to_vmem [thread:$0]  %s18_s22, 14336, %s20_s26, [#allocation3], %s3895_s23, %s3895_s23, %s3896_s24  }
   0x8   :  { %s45_s30 = sshll.u32 %s3898_s2, 4  ;;  %s3899_s5 = smov 128   ;;  %s46_s30 = int_to_ptr.vmem [resolvable:$true] %s45_s30 }
   0x9   :  { %s3900_s6 = smov 8  }
   0xa   :  { %51 = dma.hbm_to_vmem [thread:$0]  %s44_s29, 896, %s46_s30, [#allocation5], %s3899_s5, %s3899_s5, %s3900_s6  }
   0xb   :  { %3890 = dma.done.wait [#allocation3], 14336  }
   0xc   :  { %3891 = vsyncadd [#allocation3], 4294952960 }
   0xd   :  { %3892 = dma.done.wait [#allocation5], 11136  }
   0xe   :  { %3893 = vsyncadd [#allocation5], 4294956160  ;;  %v3493_v0 = vld [vmem:[#allocation2 + $0x38] sm:$0xff]  ;;  %v3492_v1 = vld [vmem:[#allocation2 + $0x30] sm:$0xff] }
   0xf   :  { %131 = vmatpush.bf16.msra.mxu0 %v3493_v0  ;;  %v3501_v2 = vld [vmem:[#allocation4 + $0x38] sm:$0xff]  ;;  %v3491_v3 = vld [vmem:[#allocation2 + $0x28] sm:$0xff]  ;;  %v3500_v4 = vld [vmem:[#allocation4 + $0x30] sm:$0xff] }
  0x10   :  { %288 = vmatpush.bf16.msra.mxu1 %v3501_v2  ;;  %v3499_v5 = vld [vmem:[#allocation4 + $0x28] sm:$0xff]  ;;  %v3490_v6 = vld [vmem:[#allocation2 + $0x20] sm:$0xff]  ;;  %v3489_v8 = vld [vmem:[#allocation2 + $0x18] sm:$0xff] }
  0x11   :  { %v3498_v7 = vld [vmem:[#allocation4 + $0x20] sm:$0xff]  ;;  %v3497_v9 = vld [vmem:[#allocation4 + $0x18] sm:$0xff]  ;;  %v3488_v10 = vld [vmem:[#allocation2 + $0x10] sm:$0xff] }
  0x12   :  { %v3496_v11 = vld [vmem:[#allocation4 + $0x10] sm:$0xff]  ;;  %v3487_v12 = vld [vmem:[#allocation2 + $0x8] sm:$0xff]  ;;  %v3486_v14 = vld [vmem:[#allocation2] sm:$0xff] }
  0x13   :  { %132 = vmatpush.bf16.msra.mxu0 %v3492_v1  ;;  %v3495_v13 = vld [vmem:[#allocation4 + $0x8] sm:$0xff]  ;;  %v64_v15 = vld [vmem:[%s4121_s0] sm:$0xf]  ;;  %v3509_v17 = vld [vmem:[#allocation4 + $0x78] sm:$0xff] }
  0x14   :  { %289 = vmatpush.bf16.msra.mxu1 %v3500_v4  ;;  %v3494_v16 = vld [vmem:[#allocation4] sm:$0xff]  ;;  %301 = vmatpush.bf16.msra.mxu2 %v3509_v17  ;;  %v3508_v18 = vld [vmem:[#allocation4 + $0x70] sm:$0xff]  ;;  %v3507_v19 = vld [vmem:[#allocation4 + $0x68] sm:$0xff] }
  0x15   :  { %v3506_v20 = vld [vmem:[#allocation4 + $0x60] sm:$0xff]  ;;  %v3505_v21 = vld [vmem:[#allocation4 + $0x58] sm:$0xff]  ;;  %v3504_v22 = vld [vmem:[#allocation4 + $0x50] sm:$0xff] }
  0x16   :  { %v3503_v23 = vld [vmem:[#allocation4 + $0x48] sm:$0xff]  ;;  %v3685_v24 = vld [vmem:[#allocation6] ss:$0 sm:$0xff]  ;;  %v3517_v42 = vld [vmem:[#allocation2 + $0x78] sm:$0xff] }
  0x17   :  { %133 = vmatpush.bf16.msra.mxu0 %v3491_v3  ;;  %v3502_v25 = vld [vmem:[#allocation4 + $0x40] sm:$0xff]  ;;  %v3533_v43 = vld [vmem:[#allocation2 + $0xf8] sm:$0xff]  ;;  %382 = vmatpush.bf16.msra.mxu3 %v3517_v42  ;;  %v3516_v44 = vld [vmem:[#allocation2 + $0x70] sm:$0xff] }
  0x18   :  { %290 = vmatpush.bf16.msra.mxu1 %v3499_v5  ;;  %302 = vmatpush.bf16.msra.mxu2 %v3508_v18  ;;  %v3532_v45 = vld [vmem:[#allocation2 + $0xf0] sm:$0xff]  ;;  %v3515_v46 = vld [vmem:[#allocation2 + $0x68] sm:$0xff]  ;;  %v3514_v48 = vld [vmem:[#allocation2 + $0x60] sm:$0xff] }
  0x19   :  { %v3531_v47 = vld [vmem:[#allocation2 + $0xe8] sm:$0xff]  ;;  %v3530_v49 = vld [vmem:[#allocation2 + $0xe0] sm:$0xff]  ;;  %v3513_v50 = vld [vmem:[#allocation2 + $0x58] sm:$0xff] }
  0x1a   :  { %v3529_v51 = vld [vmem:[#allocation2 + $0xd8] sm:$0xff]  ;;  %v3512_v52 = vld [vmem:[#allocation2 + $0x50] sm:$0xff]  ;;  %v3511_v54 = vld [vmem:[#allocation2 + $0x48] sm:$0xff] }
  0x1b   :  { %134 = vmatpush.bf16.msra.mxu0 %v3490_v6  ;;  %383 = vmatpush.bf16.msra.mxu3 %v3516_v44  ;;  %v3528_v53 = vld [vmem:[#allocation2 + $0xd0] sm:$0xff]  ;;  %v3527_v55 = vld [vmem:[#allocation2 + $0xc8] sm:$0xff]  ;;  %v3510_v57 = vld [vmem:[#allocation2 + $0x40] sm:$0xff] }
  0x1c   :  { %291 = vmatpush.bf16.msra.mxu1 %v3498_v7  ;;  %303 = vmatpush.bf16.msra.mxu2 %v3507_v19  ;;  %v3526_v58 = vld [vmem:[#allocation2 + $0xc0] sm:$0xff]  ;;  %v3940_v4 = vld [vmem:[#allocation6 + $0x8] ss:$0 sm:$0xff]  ;;  %v3525_v19 = vld [vmem:[#allocation2 + $0xb8] sm:$0xff] }
  0x1d   :  { %v3686_v60 = vld [vmem:[#allocation6 + $0x1] ss:$0 sm:$0xff]  ;;  %v3688_v3 = vld [vmem:[#allocation6 + $0x2] ss:$0 sm:$0xff] }
  0x1f   :  { %135 = vmatpush.bf16.msra.mxu0 %v3489_v8  ;;  %384 = vmatpush.bf16.msra.mxu3 %v3515_v46 }
  0x20   :  { %292 = vmatpush.bf16.msra.mxu1 %v3497_v9  ;;  %304 = vmatpush.bf16.msra.mxu2 %v3506_v20 }
  0x23   :  { %136 = vmatpush.bf16.msra.mxu0 %v3488_v10  ;;  %385 = vmatpush.bf16.msra.mxu3 %v3514_v48 }
  0x24   :  { %293 = vmatpush.bf16.msra.mxu1 %v3496_v11  ;;  %305 = vmatpush.bf16.msra.mxu2 %v3505_v21 }
  0x27   :  { %137 = vmatpush.bf16.msra.mxu0 %v3487_v12  ;;  %386 = vmatpush.bf16.msra.mxu3 %v3513_v50 }
  0x28   :  { %294 = vmatpush.bf16.msra.mxu1 %v3495_v13  ;;  %306 = vmatpush.bf16.msra.mxu2 %v3504_v22  ;;  %v3524_v22 = vld [vmem:[#allocation2 + $0xb0] sm:$0xff] }
  0x2b   :  { %138 = vmatpush.bf16.msra.mxu0 %v3486_v14  ;;  %387 = vmatpush.bf16.msra.mxu3 %v3512_v52 }
  0x2c   :  { %295 = vmatpush.bf16.msra.mxu1 %v3494_v16  ;;  %307 = vmatpush.bf16.msra.mxu2 %v3503_v23 }
  0x2e   :  { %139 = vmatmul.bf16.vlgmr.msra.gmra.mxu0 %v64_v15 }
  0x2f   :  { %388 = vmatpush.bf16.msra.mxu3 %v3511_v54  ;;  %536 = vmatpush.bf16.msrb.mxu0 %v3525_v19 }
  0x30   :  { %308 = vmatpush.bf16.msra.mxu2 %v3502_v25  ;;  %673 = vmatpush.bf16.msrb.mxu1 %v3533_v43  ;;  %v3519_v43 = vld [vmem:[#allocation2 + $0x88] sm:$0xff] }
  0x33   :  { %389 = vmatpush.bf16.msra.mxu3 %v3510_v57  ;;  %537 = vmatpush.bf16.msrb.mxu0 %v3524_v22 }
  0x34   :  { %674 = vmatpush.bf16.msrb.mxu1 %v3532_v45 }
  0x38   :  { %675 = vmatpush.bf16.msrb.mxu1 %v3531_v47 }
  0x3c   :  { %676 = vmatpush.bf16.msrb.mxu1 %v3530_v49  ;;  %v3518_v49 = vld [vmem:[#allocation2 + $0x80] sm:$0xff] }
  0x40   :  { %677 = vmatpush.bf16.msrb.mxu1 %v3529_v51 }
  0x44   :  { %678 = vmatpush.bf16.msrb.mxu1 %v3528_v53 }
  0x48   :  { %679 = vmatpush.bf16.msrb.mxu1 %v3527_v55 }
  0x4c   :  { %680 = vmatpush.bf16.msrb.mxu1 %v3526_v58  ;;  %v3691_v58 = vld [vmem:[#allocation6 + $0x3] ss:$0 sm:$0xff] }
  0xab   :  { %v140_v26 = vpop.f32.mrf.mxu0 }
  0xac   :  { %v141_v27 = vadd.f32 %v3685_v24, %v140_v26 }
  0xae   :  { %v144_v28 = vmin.f32 %v141_v27, 20.0  ;;  %v156_v29 = vpack.c.bf16 %v141_v27, %v141_v27  ;;  %vm153_vm0 = vcmp.gt.f32.partialorder %v141_v27, 20.0 }
  0xb0   :  { %v145_v30 = vmul.f32 1.442695, %v144_v28  ;;  %296 = vmatmul.bf16.vlgmr.msra.gmra.mxu1 %v156_v29  ;;  %v3523_v28 = vld [vmem:[#allocation2 + $0xa8] sm:$0xff] }
  0xb1   :  { %538 = vmatpush.bf16.msrb.mxu0 %v3523_v28 }
  0xb2   :  { %3734 = vpow2.f32 %v145_v30 }
  0xb3   :  { %v142_v31 = vpop.f32.mrf.mxu0 }
  0xb8   :  { %v3735_v32 = vpop.eup %3734 }
  0xb9   :  { %v147_v33 = vadd.f32 1.0, %v3735_v32 }
  0xbb   :  { %v148_v34 = vmul.f32 %v147_v33, %v147_v33  ;;  %v3522_v33 = vld [vmem:[#allocation2 + $0xa0] sm:$0xff] }
  0xbc   :  { %539 = vmatpush.bf16.msrb.mxu0 %v3522_v33 }
  0xbd   :  { %v149_v35 = vadd.f32 1.0, %v148_v34 }
  0xbf   :  { %3736 = vrcp.f32 %v149_v35  ;;  %v3521_v35 = vld [vmem:[#allocation2 + $0x98] sm:$0xff] }
  0xc0   :  { %540 = vmatpush.bf16.msrb.mxu0 %v3521_v35 }
  0xc5   :  { %v3737_v36 = vpop.eup %3736 }
  0xc6   :  { %v151_v37 = vmul.f32 2.0, %v3737_v36 }
  0xc8   :  { %v152_v38 = vsub.f32 1.0, %v151_v37 }
  0xca   :  { %v154_v39 = vmul.f32 %v152_v38, %v141_v27  ;;  %v3520_v38 = vld [vmem:[#allocation2 + $0x90] sm:$0xff] }
  0xcb   :  { %541 = vmatpush.bf16.msrb.mxu0 %v3520_v38 }
  0xcc   :  { %v155_v40 = vsel %vm153_vm0, %v141_v27, %v154_v39 }
  0xcd   :  { %v157_v41 = vpack.c.bf16 %v155_v40, %v155_v40 }
  0xcf   :  { %309 = vmatmul.bf16.vlgmr.msra.gmra.mxu2 %v157_v41  ;;  %v3950_v41 = vld [vmem:[#allocation6 + $0x9] ss:$0 sm:$0xff]  ;;  %542 = vmatpush.bf16.msrb.mxu0 %v3519_v43 }
  0xd3   :  { %543 = vmatpush.bf16.msrb.mxu0 %v3518_v49  ;;  %v3554_v49 = vld [vmem:[#allocation2 + $0x1a0] sm:$0xff] }
 0x12d   :  { %v297_v56 = vpop.f32.mrf.mxu1 }
 0x12e   :  { %v298_v61 = vadd.f32 %v3686_v60, %v297_v56  ;;  %v3692_v60 = vld [vmem:[#allocation6 + $0x4] ss:$0 sm:$0xff] }
 0x135   :  { %v299_v59 = vpop.f32.mrf.mxu1 }
 0x152   :  { %v310_v62 = vpop.f32.mrf.mxu2 }
 0x153   :  { %v311_v63 = vadd.f32 %v310_v62, %v298_v61 }
 0x155   :  { %v314_v0 = vpack.c.bf16 %v311_v63, %v311_v63 }
 0x157   :  { %390 = vmatmul.bf16.vlgmr.msra.gmra.mxu3 %v314_v0  ;;  %681 = vmatmul.bf16.vlgmr.msrb.gmra.mxu1 %v314_v0 }
 0x15a   :  { %v312_v1 = vpop.f32.mrf.mxu2 }
 0x1d4   :  { %v3938_v2 = vpop.f32.mrf.mxu1 }
 0x1da   :  { %v391_v5 = vpop.f32.mrf.mxu3 }
 0x1db   :  { %v3942_v6 = vadd.f32 %v3688_v3, %v391_v5 }
 0x1dc   :  { %v684_v7 = vpop.f32.mrf.mxu1 }
 0x1dd   :  { %v400_v8 = vmul.f32 %v3940_v4, %v3942_v6  ;;  %v408_v11 = vmul.f32 %v3942_v6, %v3942_v6 }
 0x1df   :  { %401 = vadd.xlane.f32.xlu0 %v400_v8  ;;  %v405_v9 = vmul.f32 %v400_v8, %v3942_v6 }
 0x1e1   :  { %406 = vadd.xlane.f32.xlu1 %v405_v9 }
 0x1e2   :  { %v393_v10 = vpop.f32.mrf.mxu3 }
 0x1e7   :  { %403 = vadd.xlane.f32.xlu0 %v3942_v6 }
 0x1e9   :  { %409 = vadd.xlane.f32.xlu1 %v408_v11 }
 0x252   :  { %v402_v12 = vpop.xlane.xlu0 %401 }
 0x253   :  { %v411_v13 = vmul.f32 0.03125, %v402_v12 }
 0x254   :  { %v407_v14 = vpop.xlane.xlu1 %406 }
 0x255   :  { %v415_v15 = vmul.f32 %v411_v13, %v411_v13  ;;  %v414_v16 = vmul.f32 0.03125, %v407_v14  ;;  %v443_v48 = vmul.f32 %v3940_v4, %v411_v13  ;;  %v3693_v13 = vld [vmem:[#allocation6 + $0x5] ss:$0 sm:$0xff] }
 0x257   :  { %v416_v17 = vsub.f32 %v414_v16, %v415_v15 }
 0x259   :  { %v421_v18 = vadd.f32 1e-05, %v416_v17 }
 0x25a   :  { %v404_v20 = vpop.xlane.xlu0 %403 }
 0x25b   :  { %3738 = vrsqrt.f32 %v421_v18  ;;  %v412_v21 = vsub.f32 %v404_v20, %v402_v12  ;;  %vm428_vm2 = vweird.f32 %v421_v18 }
 0x25c   :  { %v410_v23 = vpop.xlane.xlu1 %409 }
 0x25d   :  { %v413_v24 = vmul.f32 0.03125, %v412_v21  ;;  %v417_v25 = vsub.f32 %v410_v23, %v407_v14 }
 0x25f   :  { %v419_v26 = vmul.f32 %v413_v24, %v413_v24  ;;  %v418_v27 = vmul.f32 0.03125, %v417_v25  ;;  %v445_v46 = vmul.f32 %v3950_v41, %v413_v24 }
 0x261   :  { %v3739_v29 = vpop.eup %3738  ;;  %v420_v30 = vsub.f32 %v418_v27, %v419_v26  ;;  %v446_v52 = vadd.f32 %v445_v46, %v443_v48  ;;  %v3538_v48 = vld [vmem:[#allocation2 + $0x120] sm:$0xff] }
 0x262   :  { %v423_v31 = vmul.f32 %v3739_v29, %v421_v18  ;;  %vm429_vm1 = vweird.f32 %v3739_v29 }
 0x263   :  { %v432_v32 = vadd.f32 1e-05, %v420_v30  ;;  %vm430_vm4 = vmor %vm428_vm2, %vm429_vm1  ;;  %v450_v56 = vsub.f32 %v3942_v6, %v446_v52 }
 0x264   :  { %v424_v34 = vmul.f32 %v3739_v29, %v423_v31 }
 0x265   :  { %3740 = vrsqrt.f32 %v432_v32  ;;  %vm439_vm5 = vweird.f32 %v432_v32 }
 0x266   :  { %v425_v36 = vmul.f32 0.5, %v424_v34 }
 0x268   :  { %v426_v39 = vsub.f32 1.5, %v425_v36  ;;  %v3541_v36 = vld [vmem:[#allocation2 + $0x138] sm:$0xff] }
 0x269   :  { %767 = vmatpush.bf16.msrb.mxu2 %v3541_v36 }
 0x26a   :  { %v427_v44 = vmul.f32 %v3739_v29, %v426_v39 }
 0x26b   :  { %v3741_v37 = vpop.eup %3740 }
 0x26c   :  { %v434_v40 = vmul.f32 %v3741_v37, %v432_v32  ;;  %vm440_vm3 = vweird.f32 %v3741_v37  ;;  %v431_v50 = vsel %vm430_vm4, %v3739_v29, %v427_v44  ;;  %v3539_v44 = vld [vmem:[#allocation2 + $0x128] sm:$0xff] }
 0x26d   :  { %vm441_vm6 = vmor %vm439_vm5, %vm440_vm3  ;;  %v447_v54 = vmul.f32 %v3940_v4, %v431_v50 }
 0x26e   :  { %v435_v42 = vmul.f32 %v3741_v37, %v434_v40  ;;  %v3540_v40 = vld [vmem:[#allocation2 + $0x130] sm:$0xff] }
 0x26f   :  { %768 = vmatpush.bf16.msrb.mxu2 %v3540_v40 }
 0x270   :  { %v436_v45 = vmul.f32 0.5, %v435_v42  ;;  %v3556_v42 = vld [vmem:[#allocation2 + $0x1b0] sm:$0xff] }
 0x272   :  { %v437_v47 = vsub.f32 1.5, %v436_v45  ;;  %v3555_v45 = vld [vmem:[#allocation2 + $0x1a8] sm:$0xff] }
 0x273   :  { %769 = vmatpush.bf16.msrb.mxu2 %v3539_v44 }
 0x274   :  { %v438_v51 = vmul.f32 %v3741_v37, %v437_v47 }
 0x276   :  { %v442_v53 = vsel %vm441_vm6, %v3741_v37, %v438_v51  ;;  %v3557_v37 = vld [vmem:[#allocation2 + $0x1b8] sm:$0xff] }
 0x277   :  { %v448_v55 = vmul.f32 %v3950_v41, %v442_v53  ;;  %1058 = vmatpush.bf16.msra.mxu0 %v3557_v37  ;;  %770 = vmatpush.bf16.msrb.mxu2 %v3538_v48  ;;  %v3537_v53 = vld [vmem:[#allocation2 + $0x118] sm:$0xff] }
 0x278   :  { %v3549_v48 = vld [vmem:[#allocation2 + $0x178] sm:$0xff] }
 0x279   :  { %v449_v57 = vadd.f32 %v448_v55, %v447_v54  ;;  %v3553_v54 = vld [vmem:[#allocation2 + $0x198] sm:$0xff]  ;;  %921 = vmatpush.bf16.msrb.mxu3 %v3549_v48 }
 0x27b   :  { %v451_v59 = vmul.f32 %v450_v56, %v449_v57  ;;  %1059 = vmatpush.bf16.msra.mxu0 %v3556_v42  ;;  %771 = vmatpush.bf16.msrb.mxu2 %v3537_v53 }
 0x27d   :  { %v453_v61 = vmul.f32 %v3691_v58, %v451_v59 }
 0x27f   :  { %v455_v62 = vadd.f32 %v3692_v60, %v453_v61  ;;  %1060 = vmatpush.bf16.msra.mxu0 %v3555_v45  ;;  %v3536_v60 = vld [vmem:[#allocation2 + $0x110] sm:$0xff] }
 0x280   :  { %v3552_v61 = vld [vmem:[#allocation2 + $0x190] sm:$0xff]  ;;  %772 = vmatpush.bf16.msrb.mxu2 %v3536_v60  ;;  %v3546_v60 = vld [vmem:[#allocation2 + $0x160] sm:$0xff] }
 0x281   :  { %v456_v63 = vmin.f32 %v455_v62, 20.0  ;;  %vm465_vm7 = vcmp.gt.f32.partialorder %v455_v62, 20.0 }
 0x283   :  { %v457_v0 = vmul.f32 1.442695, %v456_v63  ;;  %1061 = vmatpush.bf16.msra.mxu0 %v3554_v49 }
 0x285   :  { %3742 = vpow2.f32 %v457_v0 }
 0x287   :  { %1062 = vmatpush.bf16.msra.mxu0 %v3553_v54 }
 0x28b   :  { %v3743_v1 = vpop.eup %3742  ;;  %1063 = vmatpush.bf16.msra.mxu0 %v3552_v61 }
 0x28c   :  { %v459_v3 = vadd.f32 1.0, %v3743_v1 }
 0x28e   :  { %v460_v5 = vmul.f32 %v459_v3, %v459_v3 }
 0x290   :  { %v461_v7 = vadd.f32 1.0, %v460_v5 }
 0x292   :  { %3744 = vrcp.f32 %v461_v7  ;;  %v3535_v7 = vld [vmem:[#allocation2 + $0x108] sm:$0xff] }
 0x293   :  { %773 = vmatpush.bf16.msrb.mxu2 %v3535_v7 }
 0x298   :  { %v3745_v8 = vpop.eup %3744 }
 0x299   :  { %v463_v9 = vmul.f32 2.0, %v3745_v8  ;;  %v3551_v8 = vld [vmem:[#allocation2 + $0x188] sm:$0xff] }
 0x29a   :  { %1064 = vmatpush.bf16.msra.mxu0 %v3551_v8  ;;  %v3987_v8 = vld [vmem:[#allocation6 + $0x12] ss:$0 sm:$0xff] }
 0x29b   :  { %v464_v10 = vsub.f32 1.0, %v463_v9  ;;  %v3694_v9 = vld [vmem:[#allocation6 + $0x6] ss:$0 sm:$0xff] }
 0x29d   :  { %v466_v11 = vmul.f32 %v464_v10, %v455_v62 }
 0x29f   :  { %v467_v6 = vsel %vm465_vm7, %v455_v62, %v466_v11 }
 0x2a0   :  { %v468_v12 = vpack.c.bf16 %v467_v6, %v467_v6  ;;  %v3687_v6 = vld [vmem:[#allocation6 + $0xa] ss:$0 sm:$0xff] }
 0x2a2   :  { %544 = vmatmul.bf16.vlgmr.msrb.gmra.mxu0 %v468_v12  ;;  %v3695_v12 = vld [vmem:[#allocation6 + $0x7] ss:$0 sm:$0xff] }
 0x31f   :  { %v545_v14 = vpop.f32.mrf.mxu0 }
 0x320   :  { %v3957_v15 = vadd.f32 %v3693_v13, %v545_v14  ;;  %v3534_v14 = vld [vmem:[#allocation2 + $0x100] sm:$0xff] }
 0x321   :  { %774 = vmatpush.bf16.msrb.mxu2 %v3534_v14 }
 0x322   :  { %v559_v16 = vmul.f32 %v3957_v15, %v3957_v15  ;;  %v551_v17 = vmul.f32 %v3940_v4, %v3957_v15 }
 0x324   :  { %560 = vadd.xlane.f32.xlu1 %v559_v16  ;;  %552 = vadd.xlane.f32.xlu2 %v551_v17  ;;  %v556_v18 = vmul.f32 %v551_v17, %v3957_v15  ;;  %v3550_v16 = vld [vmem:[#allocation2 + $0x180] sm:$0xff] }
 0x325   :  { %1065 = vmatpush.bf16.msra.mxu0 %v3550_v16  ;;  %v3542_v16 = vld [vmem:[#allocation2 + $0x140] sm:$0xff] }
 0x326   :  { %557 = vadd.xlane.f32.xlu0 %v556_v18 }
 0x327   :  { %v547_v19 = vpop.f32.mrf.mxu0 }
 0x32c   :  { %554 = vadd.xlane.f32.xlu2 %v3957_v15 }
 0x397   :  { %v553_v20 = vpop.xlane.xlu2 %552  ;;  %v561_v27 = vpop.xlane.xlu1 %560 }
 0x398   :  { %v562_v21 = vmul.f32 0.03125, %v553_v20 }
 0x399   :  { %v558_v22 = vpop.xlane.xlu0 %557 }
 0x39a   :  { %v566_v23 = vmul.f32 %v562_v21, %v562_v21  ;;  %v565_v24 = vmul.f32 0.03125, %v558_v22  ;;  %v568_v29 = vsub.f32 %v561_v27, %v558_v22  ;;  %v594_v59 = vmul.f32 %v3940_v4, %v562_v21 }
 0x39c   :  { %v567_v25 = vsub.f32 %v565_v24, %v566_v23  ;;  %v569_v32 = vmul.f32 0.03125, %v568_v29 }
 0x39e   :  { %v572_v26 = vadd.f32 1e-05, %v567_v25 }
 0x39f   :  { %v555_v28 = vpop.xlane.xlu2 %554 }
 0x3a0   :  { %3746 = vrsqrt.f32 %v572_v26  ;;  %v563_v30 = vsub.f32 %v555_v28, %v553_v20  ;;  %vm579_vm9 = vweird.f32 %v572_v26 }
 0x3a2   :  { %v564_v31 = vmul.f32 0.03125, %v563_v30  ;;  %v3697_v30 = vld [vmem:[#allocation6 + $0xb] ss:$0 sm:$0xff] }
 0x3a4   :  { %v570_v33 = vmul.f32 %v564_v31, %v564_v31  ;;  %v595_v57 = vmul.f32 %v3950_v41, %v564_v31  ;;  %v3977_v31 = vld [vmem:[#allocation6 + $0x11] ss:$0 sm:$0xff] }
 0x3a6   :  { %v3747_v34 = vpop.eup %3746  ;;  %v571_v35 = vsub.f32 %v569_v32, %v570_v33  ;;  %v596_v0 = vadd.f32 %v595_v57, %v594_v59 }
 0x3a7   :  { %v574_v38 = vmul.f32 %v3747_v34, %v572_v26  ;;  %vm580_vm8 = vweird.f32 %v3747_v34 }
 0x3a8   :  { %v583_v39 = vadd.f32 1e-05, %v571_v35  ;;  %vm581_vm11 = vmor %vm579_vm9, %vm580_vm8  ;;  %v600_v11 = vsub.f32 %v3957_v15, %v596_v0 }
 0x3a9   :  { %v575_v43 = vmul.f32 %v3747_v34, %v574_v38 }
 0x3aa   :  { %3748 = vrsqrt.f32 %v583_v39  ;;  %vm590_vm12 = vweird.f32 %v583_v39 }
 0x3ab   :  { %v576_v46 = vmul.f32 0.5, %v575_v43 }
 0x3ad   :  { %v577_v50 = vsub.f32 1.5, %v576_v46 }
 0x3af   :  { %v578_v55 = vmul.f32 %v3747_v34, %v577_v50 }
 0x3b0   :  { %v3749_v47 = vpop.eup %3748 }
 0x3b1   :  { %v585_v51 = vmul.f32 %v3749_v47, %v583_v39  ;;  %vm591_vm10 = vweird.f32 %v3749_v47  ;;  %v582_v62 = vsel %vm581_vm11, %v3747_v34, %v578_v55 }
 0x3b2   :  { %vm592_vm13 = vmor %vm590_vm12, %vm591_vm10  ;;  %v597_v3 = vmul.f32 %v3940_v4, %v582_v62  ;;  %v683_v4 = vadd.f32 %v3687_v6, %v3938_v2 }
 0x3b3   :  { %v586_v52 = vmul.f32 %v3749_v47, %v585_v51  ;;  %v3548_v51 = vld [vmem:[#allocation2 + $0x170] sm:$0xff] }
 0x3b4   :  { %922 = vmatpush.bf16.msrb.mxu3 %v3548_v51 }
 0x3b5   :  { %v587_v56 = vmul.f32 0.5, %v586_v52 }
 0x3b7   :  { %v588_v58 = vsub.f32 1.5, %v587_v56  ;;  %v3547_v56 = vld [vmem:[#allocation2 + $0x168] sm:$0xff] }
 0x3b8   :  { %923 = vmatpush.bf16.msrb.mxu3 %v3547_v56 }
 0x3b9   :  { %v589_v63 = vmul.f32 %v3749_v47, %v588_v58 }
 0x3bb   :  { %v593_v1 = vsel %vm592_vm13, %v3749_v47, %v589_v63  ;;  %v3545_v63 = vld [vmem:[#allocation2 + $0x158] sm:$0xff] }
 0x3bc   :  { %v598_v5 = vmul.f32 %v3950_v41, %v593_v1  ;;  %924 = vmatpush.bf16.msrb.mxu3 %v3546_v60 }
 0x3be   :  { %v599_v10 = vadd.f32 %v598_v5, %v597_v3  ;;  %v3544_v3 = vld [vmem:[#allocation2 + $0x150] sm:$0xff] }
 0x3c0   :  { %v601_v13 = vmul.f32 %v600_v11, %v599_v10  ;;  %925 = vmatpush.bf16.msrb.mxu3 %v3545_v63  ;;  %v3543_v10 = vld [vmem:[#allocation2 + $0x148] sm:$0xff] }
 0x3c1   :  { %v3563_v63 = vld [vmem:[#allocation2 + $0x1e8] sm:$0xff] }
 0x3c2   :  { %v603_v17 = vmul.f32 %v3694_v9, %v601_v13 }
 0x3c4   :  { %v605_v18 = vadd.f32 %v3695_v12, %v603_v17  ;;  %926 = vmatpush.bf16.msrb.mxu3 %v3544_v3  ;;  %v3562_v3 = vld [vmem:[#allocation2 + $0x1e0] sm:$0xff] }
 0x3c6   :  { %v686_v41 = vadd.f32 %v683_v4, %v605_v18 }
 0x3c8   :  { %v687_v19 = vmin.f32 %v686_v41, 20.0  ;;  %vm696_vm14 = vcmp.gt.f32.partialorder %v686_v41, 20.0  ;;  %927 = vmatpush.bf16.msrb.mxu3 %v3543_v10 }
 0x3ca   :  { %v688_v20 = vmul.f32 1.442695, %v687_v19 }
 0x3cc   :  { %3750 = vpow2.f32 %v688_v20  ;;  %928 = vmatpush.bf16.msrb.mxu3 %v3542_v16 }
 0x3d2   :  { %v3751_v21 = vpop.eup %3750 }
 0x3d3   :  { %v690_v22 = vadd.f32 1.0, %v3751_v21 }
 0x3d5   :  { %v691_v15 = vmul.f32 %v690_v22, %v690_v22 }
 0x3d7   :  { %v692_v23 = vadd.f32 1.0, %v691_v15  ;;  %v3700_v15 = vld [vmem:[#allocation6 + $0xc] ss:$0 sm:$0xff] }
 0x3d9   :  { %3752 = vrcp.f32 %v692_v23 }
 0x3df   :  { %v3753_v24 = vpop.eup %3752 }
 0x3e0   :  { %v694_v25 = vmul.f32 2.0, %v3753_v24  ;;  %v3701_v24 = vld [vmem:[#allocation6 + $0xd] ss:$0 sm:$0xff] }
 0x3e2   :  { %v695_v26 = vsub.f32 1.0, %v694_v25 }
 0x3e4   :  { %v697_v27 = vmul.f32 %v695_v26, %v686_v41 }
 0x3e6   :  { %v698_v28 = vsel %vm696_vm14, %v686_v41, %v697_v27 }
 0x3e7   :  { %v3971_v29 = vpack.c.bf16 %v698_v28, %v698_v28 }
 0x3e9   :  { %775 = vmatmul.bf16.vlgmr.msrb.gmra.mxu2 %v3971_v29  ;;  %1066 = vmatmul.bf16.vlgmr.msra.gmra.mxu0 %v3971_v29 }
 0x466   :  { %v3975_v2 = vpop.f32.mrf.mxu0 }
 0x46c   :  { %v776_v32 = vpop.f32.mrf.mxu2 }
 0x46d   :  { %v3979_v33 = vadd.f32 %v3697_v30, %v776_v32 }
 0x46e   :  { %v1069_v34 = vpop.f32.mrf.mxu0 }
 0x46f   :  { %788 = vadd.xlane.f32.xlu0 %v3979_v33  ;;  %v785_v35 = vmul.f32 %v3977_v31, %v3979_v33  ;;  %v793_v38 = vmul.f32 %v3979_v33, %v3979_v33 }
 0x471   :  { %786 = vadd.xlane.f32.xlu2 %v785_v35  ;;  %v790_v36 = vmul.f32 %v785_v35, %v3979_v33 }
 0x473   :  { %791 = vadd.xlane.f32.xlu1 %v790_v36 }
 0x474   :  { %v778_v37 = vpop.f32.mrf.mxu2 }
 0x479   :  { %794 = vadd.xlane.f32.xlu2 %v793_v38 }
 0x4e2   :  { %v789_v42 = vpop.xlane.xlu0 %788 }
 0x4e4   :  { %v787_v39 = vpop.xlane.xlu2 %786 }
 0x4e5   :  { %v796_v40 = vmul.f32 0.015625, %v787_v39  ;;  %v797_v44 = vsub.f32 %v789_v42, %v787_v39  ;;  %v3702_v42 = vld [vmem:[#allocation6 + $0xe] ss:$0 sm:$0xff] }
 0x4e6   :  { %v792_v43 = vpop.xlane.xlu1 %791 }
 0x4e7   :  { %v800_v45 = vmul.f32 %v796_v40, %v796_v40  ;;  %v799_v46 = vmul.f32 0.015625, %v792_v43  ;;  %v798_v49 = vmul.f32 0.015625, %v797_v44  ;;  %v828_v14 = vmul.f32 %v3977_v31, %v796_v40 }
 0x4e9   :  { %v801_v47 = vsub.f32 %v799_v46, %v800_v45  ;;  %v804_v54 = vmul.f32 %v798_v49, %v798_v49  ;;  %v830_v12 = vmul.f32 %v3987_v8, %v798_v49 }
 0x4eb   :  { %v806_v50 = vadd.f32 1e-05, %v801_v47  ;;  %v831_v18 = vadd.f32 %v830_v12, %v828_v14 }
 0x4ec   :  { %v795_v52 = vpop.xlane.xlu2 %794 }
 0x4ed   :  { %3754 = vrsqrt.f32 %v806_v50  ;;  %v802_v53 = vsub.f32 %v795_v52, %v792_v43  ;;  %vm813_vm0 = vweird.f32 %v806_v50  ;;  %v835_v21 = vsub.f32 %v3979_v33, %v831_v18 }
 0x4ef   :  { %v803_v55 = vmul.f32 0.015625, %v802_v53  ;;  %v3565_v53 = vld [vmem:[#allocation2 + $0x1f8] sm:$0xff] }
 0x4f0   :  { %1152 = vmatpush.bf16.msra.mxu1 %v3565_v53 }
 0x4f1   :  { %v805_v57 = vsub.f32 %v803_v55, %v804_v54 }
 0x4f3   :  { %v3755_v58 = vpop.eup %3754  ;;  %v817_v59 = vadd.f32 1e-05, %v805_v57 }
 0x4f4   :  { %v808_v61 = vmul.f32 %v3755_v58, %v806_v50  ;;  %vm814_vm15 = vweird.f32 %v3755_v58 }
 0x4f5   :  { %3756 = vrsqrt.f32 %v817_v59  ;;  %vm815_vm2 = vmor %vm813_vm0, %vm814_vm15  ;;  %vm824_vm3 = vweird.f32 %v817_v59 }
 0x4f6   :  { %v809_v62 = vmul.f32 %v3755_v58, %v808_v61 }
 0x4f8   :  { %v810_v0 = vmul.f32 0.5, %v809_v62 }
 0x4fa   :  { %v811_v5 = vsub.f32 1.5, %v810_v0 }
 0x4fb   :  { %v3757_v1 = vpop.eup %3756 }
 0x4fc   :  { %v819_v7 = vmul.f32 %v3757_v1, %v817_v59  ;;  %v812_v11 = vmul.f32 %v3755_v58, %v811_v5  ;;  %vm825_vm1 = vweird.f32 %v3757_v1 }
 0x4fd   :  { %vm826_vm4 = vmor %vm824_vm3, %vm825_vm1 }
 0x4fe   :  { %v820_v9 = vmul.f32 %v3757_v1, %v819_v7  ;;  %v816_v17 = vsel %vm815_vm2, %v3755_v58, %v812_v11  ;;  %v3564_v58 = vld [vmem:[#allocation2 + $0x1f0] sm:$0xff]  ;;  %v3561_v11 = vld [vmem:[#allocation2 + $0x1d8] sm:$0xff] }
 0x4ff   :  { %v832_v19 = vmul.f32 %v3977_v31, %v816_v17  ;;  %1153 = vmatpush.bf16.msra.mxu1 %v3564_v58 }
 0x500   :  { %v821_v6 = vmul.f32 0.5, %v820_v9 }
 0x502   :  { %v822_v13 = vsub.f32 1.5, %v821_v6 }
 0x503   :  { %1154 = vmatpush.bf16.msra.mxu1 %v3563_v63 }
 0x504   :  { %v823_v4 = vmul.f32 %v3757_v1, %v822_v13  ;;  %v3560_v13 = vld [vmem:[#allocation2 + $0x1d0] sm:$0xff] }
 0x506   :  { %v827_v41 = vsel %vm826_vm4, %v3757_v1, %v823_v4  ;;  %v3559_v4 = vld [vmem:[#allocation2 + $0x1c8] sm:$0xff] }
 0x507   :  { %v833_v20 = vmul.f32 %v3987_v8, %v827_v41  ;;  %1155 = vmatpush.bf16.msra.mxu1 %v3562_v3 }
 0x509   :  { %v834_v22 = vadd.f32 %v833_v20, %v832_v19  ;;  %v3558_v20 = vld [vmem:[#allocation2 + $0x1c0] sm:$0xff] }
 0x50b   :  { %v836_v23 = vmul.f32 %v835_v21, %v834_v22  ;;  %1156 = vmatpush.bf16.msra.mxu1 %v3561_v11  ;;  %v3597_v22 = vld [vmem:[#allocation4 + $0xf8] sm:$0xff] }
 0x50d   :  { %v838_v25 = vmul.f32 %v3700_v15, %v836_v23 }
 0x50f   :  { %v840_v26 = vadd.f32 %v3701_v24, %v838_v25  ;;  %1157 = vmatpush.bf16.msra.mxu1 %v3560_v13 }
 0x511   :  { %v841_v27 = vmin.f32 %v840_v26, 20.0  ;;  %vm850_vm5 = vcmp.gt.f32.partialorder %v840_v26, 20.0 }
 0x513   :  { %v842_v28 = vmul.f32 1.442695, %v841_v27  ;;  %1158 = vmatpush.bf16.msra.mxu1 %v3559_v4  ;;  %v3596_v27 = vld [vmem:[#allocation4 + $0xf0] sm:$0xff] }
 0x515   :  { %3758 = vpow2.f32 %v842_v28 }
 0x517   :  { %1159 = vmatpush.bf16.msra.mxu1 %v3558_v20  ;;  %v3572_v20 = vld [vmem:[#allocation2 + $0x230] sm:$0xff] }
 0x51b   :  { %v3759_v30 = vpop.eup %3758  ;;  %1616 = vmatpush.bf16.msrb.mxu1 %v3597_v22 }
 0x51c   :  { %v844_v32 = vadd.f32 1.0, %v3759_v30 }
 0x51e   :  { %v845_v34 = vmul.f32 %v844_v32, %v844_v32 }
 0x51f   :  { %1617 = vmatpush.bf16.msrb.mxu1 %v3596_v27  ;;  %v3570_v27 = vld [vmem:[#allocation2 + $0x220] sm:$0xff] }
 0x520   :  { %v846_v35 = vadd.f32 1.0, %v845_v34 }
 0x522   :  { %3760 = vrcp.f32 %v846_v35  ;;  %v3703_v35 = vld [vmem:[#allocation6 + $0xf] ss:$0 sm:$0xff] }
 0x528   :  { %v3761_v36 = vpop.eup %3760 }
 0x529   :  { %v848_v37 = vmul.f32 2.0, %v3761_v36 }
 0x52b   :  { %v849_v38 = vsub.f32 1.0, %v848_v37  ;;  %v3595_v37 = vld [vmem:[#allocation4 + $0xe8] sm:$0xff] }
 0x52c   :  { %1618 = vmatpush.bf16.msrb.mxu1 %v3595_v37  ;;  %v4024_v37 = vld [vmem:[#allocation6 + $0x1b] ss:$0 sm:$0xff] }
 0x52d   :  { %v851_v39 = vmul.f32 %v849_v38, %v840_v26  ;;  %v3696_v38 = vld [vmem:[#allocation6 + $0x13] ss:$0 sm:$0xff] }
 0x52f   :  { %v852_v33 = vsel %vm850_vm5, %v840_v26, %v851_v39 }
 0x530   :  { %v853_v40 = vpack.c.bf16 %v852_v33, %v852_v33  ;;  %v3704_v33 = vld [vmem:[#allocation6 + $0x10] ss:$0 sm:$0xff] }
 0x532   :  { %929 = vmatmul.bf16.vlgmr.msrb.gmra.mxu3 %v853_v40 }
 0x5b5   :  { %v930_v43 = vpop.f32.mrf.mxu3 }
 0x5b6   :  { %v3994_v44 = vadd.f32 %v3702_v42, %v930_v43  ;;  %v3594_v42 = vld [vmem:[#allocation4 + $0xe0] sm:$0xff]  ;;  %v1068_v43 = vadd.f32 %v3696_v38, %v3975_v2  ;;  %v3568_v38 = vld [vmem:[#allocation2 + $0x210] sm:$0xff] }
 0x5b7   :  { %1619 = vmatpush.bf16.msrb.mxu1 %v3594_v42 }
 0x5b8   :  { %939 = vadd.xlane.f32.xlu1 %v3994_v44  ;;  %v936_v45 = vmul.f32 %v3977_v31, %v3994_v44  ;;  %v944_v48 = vmul.f32 %v3994_v44, %v3994_v44 }
 0x5ba   :  { %937 = vadd.xlane.f32.xlu0 %v936_v45  ;;  %v941_v46 = vmul.f32 %v936_v45, %v3994_v44 }
 0x5bc   :  { %942 = vadd.xlane.f32.xlu2 %v941_v46 }
 0x5bd   :  { %v932_v47 = vpop.f32.mrf.mxu3 }
 0x5be   :  { %v3593_v47 = vld [vmem:[#allocation4 + $0xd8] sm:$0xff] }
 0x5bf   :  { %1620 = vmatpush.bf16.msrb.mxu1 %v3593_v47 }
 0x5c2   :  { %945 = vadd.xlane.f32.xlu0 %v944_v48  ;;  %v3591_v48 = vld [vmem:[#allocation4 + $0xc8] sm:$0xff] }
 0x62b   :  { %v940_v51 = vpop.xlane.xlu1 %939 }
 0x62d   :  { %v938_v49 = vpop.xlane.xlu0 %937 }
 0x62e   :  { %v947_v50 = vmul.f32 0.015625, %v938_v49  ;;  %v948_v54 = vsub.f32 %v940_v51, %v938_v49 }
 0x62f   :  { %v943_v52 = vpop.xlane.xlu2 %942 }
 0x630   :  { %v951_v55 = vmul.f32 %v947_v50, %v947_v50  ;;  %v950_v56 = vmul.f32 0.015625, %v943_v52  ;;  %v949_v59 = vmul.f32 0.015625, %v948_v54  ;;  %v979_v23 = vmul.f32 %v3977_v31, %v947_v50  ;;  %v3590_v50 = vld [vmem:[#allocation4 + $0xc0] sm:$0xff] }
 0x632   :  { %v952_v57 = vsub.f32 %v950_v56, %v951_v55  ;;  %v955_v0 = vmul.f32 %v949_v59, %v949_v59  ;;  %v980_v21 = vmul.f32 %v3987_v8, %v949_v59  ;;  %v3705_v59 = vld [vmem:[#allocation6 + $0x14] ss:$0 sm:$0xff] }
 0x634   :  { %v957_v60 = vadd.f32 1e-05, %v952_v57  ;;  %v981_v26 = vadd.f32 %v980_v21, %v979_v23  ;;  %v3571_v23 = vld [vmem:[#allocation2 + $0x228] sm:$0xff] }
 0x635   :  { %v946_v61 = vpop.xlane.xlu0 %945 }
 0x636   :  { %3762 = vrsqrt.f32 %v957_v60  ;;  %v953_v62 = vsub.f32 %v946_v61, %v943_v52  ;;  %vm964_vm7 = vweird.f32 %v957_v60  ;;  %v985_v34 = vsub.f32 %v3994_v44, %v981_v26  ;;  %v3592_v44 = vld [vmem:[#allocation4 + $0xd0] sm:$0xff] }
 0x637   :  { %1621 = vmatpush.bf16.msrb.mxu1 %v3592_v44  ;;  %v3566_v44 = vld [vmem:[#allocation2 + $0x200] sm:$0xff] }
 0x638   :  { %v954_v1 = vmul.f32 0.015625, %v953_v62 }
 0x63a   :  { %v956_v5 = vsub.f32 %v954_v1, %v955_v0 }
 0x63b   :  { %1622 = vmatpush.bf16.msrb.mxu1 %v3591_v48 }
 0x63c   :  { %v3763_v7 = vpop.eup %3762  ;;  %v968_v9 = vadd.f32 1e-05, %v956_v5 }
 0x63d   :  { %v959_v10 = vmul.f32 %v3763_v7, %v957_v60  ;;  %vm965_vm6 = vweird.f32 %v3763_v7  ;;  %v4012_v60 = vld [vmem:[#allocation6 + $0x1a] ss:$0 sm:$0xff] }
 0x63e   :  { %3764 = vrsqrt.f32 %v968_v9  ;;  %vm966_vm9 = vmor %vm964_vm7, %vm965_vm6  ;;  %vm975_vm10 = vweird.f32 %v968_v9 }
 0x63f   :  { %v960_v6 = vmul.f32 %v3763_v7, %v959_v10  ;;  %1623 = vmatpush.bf16.msrb.mxu1 %v3590_v50 }
 0x641   :  { %v961_v12 = vmul.f32 0.5, %v960_v6 }
 0x643   :  { %v962_v16 = vsub.f32 1.5, %v961_v12 }
 0x644   :  { %v3765_v14 = vpop.eup %3764 }
 0x645   :  { %v970_v17 = vmul.f32 %v3765_v14, %v968_v9  ;;  %v963_v41 = vmul.f32 %v3763_v7, %v962_v16  ;;  %vm976_vm8 = vweird.f32 %v3765_v14 }
 0x646   :  { %vm977_vm11 = vmor %vm975_vm10, %vm976_vm8 }
 0x647   :  { %v971_v18 = vmul.f32 %v3765_v14, %v970_v17  ;;  %v967_v24 = vsel %vm966_vm9, %v3763_v7, %v963_v41 }
 0x648   :  { %v982_v30 = vmul.f32 %v3977_v31, %v967_v24 }
 0x649   :  { %v972_v19 = vmul.f32 0.5, %v971_v18  ;;  %v3573_v18 = vld [vmem:[#allocation2 + $0x238] sm:$0xff] }
 0x64a   :  { %1306 = vmatpush.bf16.msra.mxu2 %v3573_v18 }
 0x64b   :  { %v973_v15 = vsub.f32 1.5, %v972_v19 }
 0x64d   :  { %v974_v25 = vmul.f32 %v3765_v14, %v973_v15 }
 0x64e   :  { %1307 = vmatpush.bf16.msra.mxu2 %v3572_v20 }
 0x64f   :  { %v978_v28 = vsel %vm977_vm11, %v3765_v14, %v974_v25 }
 0x650   :  { %v983_v32 = vmul.f32 %v3987_v8, %v978_v28 }
 0x652   :  { %v984_v36 = vadd.f32 %v983_v32, %v982_v30  ;;  %1308 = vmatpush.bf16.msra.mxu2 %v3571_v23  ;;  %v3569_v32 = vld [vmem:[#allocation2 + $0x218] sm:$0xff] }
 0x654   :  { %v986_v39 = vmul.f32 %v985_v34, %v984_v36 }
 0x656   :  { %v988_v40 = vmul.f32 %v3703_v35, %v986_v39  ;;  %1309 = vmatpush.bf16.msra.mxu2 %v3570_v27 }
 0x658   :  { %v990_v45 = vadd.f32 %v3704_v33, %v988_v40 }
 0x65a   :  { %v1071_v46 = vadd.f32 %v1068_v43, %v990_v45  ;;  %1310 = vmatpush.bf16.msra.mxu2 %v3569_v32  ;;  %v3567_v43 = vld [vmem:[#allocation2 + $0x208] sm:$0xff] }
 0x65c   :  { %v1072_v31 = vmin.f32 %v1071_v46, 20.0  ;;  %vm1081_vm12 = vcmp.gt.f32.partialorder %v1071_v46, 20.0 }
 0x65e   :  { %v1073_v8 = vmul.f32 1.442695, %v1072_v31  ;;  %1311 = vmatpush.bf16.msra.mxu2 %v3568_v38 }
 0x660   :  { %3766 = vpow2.f32 %v1073_v8 }
 0x662   :  { %1312 = vmatpush.bf16.msra.mxu2 %v3567_v43 }
 0x666   :  { %v3767_v49 = vpop.eup %3766  ;;  %1313 = vmatpush.bf16.msra.mxu2 %v3566_v44  ;;  %v3576_v44 = vld [vmem:[#allocation2 + $0x250] sm:$0xff] }
 0x667   :  { %v1075_v51 = vadd.f32 1.0, %v3767_v49 }
 0x669   :  { %v1076_v52 = vmul.f32 %v1075_v51, %v1075_v51 }
 0x66b   :  { %v1077_v53 = vadd.f32 1.0, %v1076_v52 }
 0x66d   :  { %3768 = vrcp.f32 %v1077_v53  ;;  %v3708_v53 = vld [vmem:[#allocation6 + $0x15] ss:$0 sm:$0xff] }
 0x673   :  { %v3769_v2 = vpop.eup %3768 }
 0x674   :  { %v1079_v54 = vmul.f32 2.0, %v3769_v2 }
 0x676   :  { %v1080_v55 = vsub.f32 1.0, %v1079_v54  ;;  %v3709_v54 = vld [vmem:[#allocation6 + $0x16] ss:$0 sm:$0xff] }
 0x678   :  { %v1082_v56 = vmul.f32 %v1080_v55, %v1071_v46 }
 0x67a   :  { %v1083_v57 = vsel %vm1081_vm12, %v1071_v46, %v1082_v56 }
 0x67b   :  { %v4008_v58 = vpack.c.bf16 %v1083_v57, %v1083_v57 }
 0x67d   :  { %1160 = vmatmul.bf16.vlgmr.msra.gmra.mxu1 %v4008_v58 }
 0x68d   :  { %1624 = vmatmul.bf16.vlgmr.msrb.gmra.mxu1 %v4008_v58 }
 0x6fa   :  { %v1161_v61 = vpop.f32.mrf.mxu1 }
 0x6fb   :  { %v4014_v62 = vadd.f32 %v3705_v59, %v1161_v61 }
 0x6fd   :  { %1173 = vadd.xlane.f32.xlu2 %v4014_v62  ;;  %v1170_v63 = vmul.f32 %v4012_v60, %v4014_v62  ;;  %v1178_v3 = vmul.f32 %v4014_v62, %v4014_v62 }
 0x6ff   :  { %1171 = vadd.xlane.f32.xlu1 %v1170_v63  ;;  %v1175_v0 = vmul.f32 %v1170_v63, %v4014_v62 }
 0x701   :  { %1176 = vadd.xlane.f32.xlu0 %v1175_v0 }
 0x702   :  { %v1163_v1 = vpop.f32.mrf.mxu1 }
 0x707   :  { %1179 = vadd.xlane.f32.xlu1 %v1178_v3 }
 0x70a   :  { %v4022_v5 = vpop.f32.mrf.mxu1 }
 0x712   :  { %v1627_v7 = vpop.f32.mrf.mxu1 }
 0x770   :  { %v1174_v11 = vpop.xlane.xlu2 %1173 }
 0x772   :  { %v1172_v9 = vpop.xlane.xlu1 %1171 }
 0x773   :  { %v1181_v10 = vmul.f32 0.015625, %v1172_v9  ;;  %v1182_v12 = vsub.f32 %v1174_v11, %v1172_v9 }
 0x774   :  { %v1177_v6 = vpop.xlane.xlu0 %1176 }
 0x775   :  { %v1185_v13 = vmul.f32 %v1181_v10, %v1181_v10  ;;  %v1184_v14 = vmul.f32 0.015625, %v1177_v6  ;;  %v1183_v17 = vmul.f32 0.015625, %v1182_v12  ;;  %v1213_v46 = vmul.f32 %v4012_v60, %v1181_v10 }
 0x777   :  { %v1186_v16 = vsub.f32 %v1184_v14, %v1185_v13  ;;  %v1189_v21 = vmul.f32 %v1183_v17, %v1183_v17  ;;  %v1215_v42 = vmul.f32 %v4024_v37, %v1183_v17 }
 0x779   :  { %v1191_v4 = vadd.f32 1e-05, %v1186_v16  ;;  %v1216_v8 = vadd.f32 %v1215_v42, %v1213_v46  ;;  %v3578_v42 = vld [vmem:[#allocation2 + $0x260] sm:$0xff]  ;;  %v3577_v46 = vld [vmem:[#allocation2 + $0x258] sm:$0xff] }
 0x77a   :  { %v1180_v41 = vpop.xlane.xlu1 %1179 }
 0x77b   :  { %3770 = vrsqrt.f32 %v1191_v4  ;;  %v1187_v19 = vsub.f32 %v1180_v41, %v1177_v6  ;;  %vm1198_vm14 = vweird.f32 %v1191_v4  ;;  %v1220_v51 = vsub.f32 %v4014_v62, %v1216_v8  ;;  %v3710_v6 = vld [vmem:[#allocation6 + $0x17] ss:$0 sm:$0xff] }
 0x77d   :  { %v1188_v22 = vmul.f32 0.015625, %v1187_v19 }
 0x77f   :  { %v1190_v15 = vsub.f32 %v1188_v22, %v1189_v21 }
 0x781   :  { %v3771_v24 = vpop.eup %3770  ;;  %v1202_v25 = vadd.f32 1e-05, %v1190_v15 }
 0x782   :  { %v1193_v26 = vmul.f32 %v3771_v24, %v1191_v4  ;;  %vm1199_vm13 = vweird.f32 %v3771_v24 }
 0x783   :  { %3772 = vrsqrt.f32 %v1202_v25  ;;  %vm1200_vm0 = vmor %vm1198_vm14, %vm1199_vm13  ;;  %vm1209_vm1 = vweird.f32 %v1202_v25 }
 0x784   :  { %v1194_v28 = vmul.f32 %v3771_v24, %v1193_v26 }
 0x786   :  { %v1195_v30 = vmul.f32 0.5, %v1194_v28  ;;  %v3581_v28 = vld [vmem:[#allocation2 + $0x278] sm:$0xff] }
 0x787   :  { %1458 = vmatpush.bf16.msra.mxu3 %v3581_v28 }
 0x788   :  { %v1196_v35 = vsub.f32 1.5, %v1195_v30 }
 0x789   :  { %v3773_v34 = vpop.eup %3772 }
 0x78a   :  { %v1204_v36 = vmul.f32 %v3773_v34, %v1202_v25  ;;  %v1197_v33 = vmul.f32 %v3771_v24, %v1196_v35  ;;  %vm1210_vm15 = vweird.f32 %v3773_v34 }
 0x78b   :  { %vm1211_vm2 = vmor %vm1209_vm1, %vm1210_vm15 }
 0x78c   :  { %v1205_v39 = vmul.f32 %v3773_v34, %v1204_v36  ;;  %v1201_v31 = vsel %vm1200_vm0, %v3771_v24, %v1197_v33 }
 0x78d   :  { %v1217_v49 = vmul.f32 %v4012_v60, %v1201_v31 }
 0x78e   :  { %v1206_v40 = vmul.f32 0.5, %v1205_v39  ;;  %v3579_v39 = vld [vmem:[#allocation2 + $0x268] sm:$0xff] }
 0x790   :  { %v1207_v45 = vsub.f32 1.5, %v1206_v40 }
 0x792   :  { %v1208_v47 = vmul.f32 %v3773_v34, %v1207_v45 }
 0x794   :  { %v1212_v48 = vsel %vm1211_vm2, %v3773_v34, %v1208_v47  ;;  %v3580_v34 = vld [vmem:[#allocation2 + $0x270] sm:$0xff] }
 0x795   :  { %v1218_v50 = vmul.f32 %v4024_v37, %v1212_v48  ;;  %1459 = vmatpush.bf16.msra.mxu3 %v3580_v34  ;;  %v3606_v34 = vld [vmem:[#allocation4 + $0x100] sm:$0xff] }
 0x797   :  { %v1219_v52 = vadd.f32 %v1218_v50, %v1217_v49 }
 0x799   :  { %v1221_v2 = vmul.f32 %v1220_v51, %v1219_v52  ;;  %1460 = vmatpush.bf16.msra.mxu3 %v3579_v39  ;;  %v3645_v39 = vld [vmem:[#allocation4 + $0x1f8] sm:$0xff] }
 0x79b   :  { %v1223_v55 = vmul.f32 %v3708_v53, %v1221_v2  ;;  %v3575_v53 = vld [vmem:[#allocation2 + $0x248] sm:$0xff] }
 0x79d   :  { %v1225_v56 = vadd.f32 %v3709_v54, %v1223_v55  ;;  %1461 = vmatpush.bf16.msra.mxu3 %v3578_v42  ;;  %v3644_v42 = vld [vmem:[#allocation4 + $0x1f0] sm:$0xff] }
 0x79f   :  { %v1226_v57 = vmin.f32 %v1225_v56, 20.0  ;;  %vm1235_vm3 = vcmp.gt.f32.partialorder %v1225_v56, 20.0 }
 0x7a1   :  { %v1227_v59 = vmul.f32 1.442695, %v1226_v57  ;;  %1462 = vmatpush.bf16.msra.mxu3 %v3577_v46  ;;  %v3618_v46 = vld [vmem:[#allocation4 + $0x160] sm:$0xff] }
 0x7a3   :  { %3774 = vpow2.f32 %v1227_v59 }
 0x7a5   :  { %1463 = vmatpush.bf16.msra.mxu3 %v3576_v44  ;;  %v3616_v44 = vld [vmem:[#allocation4 + $0x150] sm:$0xff] }
 0x7a9   :  { %v3775_v61 = vpop.eup %3774  ;;  %1464 = vmatpush.bf16.msra.mxu3 %v3575_v53  ;;  %v3713_v53 = vld [vmem:[#allocation6 + $0x1c] ss:$0 sm:$0xff] }
 0x7aa   :  { %v1229_v63 = vadd.f32 1.0, %v3775_v61  ;;  %v3574_v61 = vld [vmem:[#allocation2 + $0x240] sm:$0xff] }
 0x7ac   :  { %v1230_v0 = vmul.f32 %v1229_v63, %v1229_v63 }
 0x7ad   :  { %1465 = vmatpush.bf16.msra.mxu3 %v3574_v61 }
 0x7ae   :  { %v1231_v1 = vadd.f32 1.0, %v1230_v0  ;;  %v3711_v0 = vld [vmem:[#allocation6 + $0x18] ss:$0 sm:$0xff] }
 0x7b0   :  { %3776 = vrcp.f32 %v1231_v1 }
 0x7b6   :  { %v3777_v3 = vpop.eup %3776 }
 0x7b7   :  { %v1233_v7 = vmul.f32 2.0, %v3777_v3 }
 0x7b9   :  { %v1234_v9 = vsub.f32 1.0, %v1233_v7  ;;  %v3712_v7 = vld [vmem:[#allocation6 + $0x19] ss:$0 sm:$0xff] }
 0x7bb   :  { %v1236_v10 = vmul.f32 %v1234_v9, %v1225_v56 }
 0x7bd   :  { %v1237_v62 = vsel %vm1235_vm3, %v1225_v56, %v1236_v10  ;;  %v1376_v10 = vunpack.c.l.bf16 %v4008_v58 }
 0x7be   :  { %v1238_v11 = vpack.c.bf16 %v1237_v62, %v1237_v62 }
 0x7c0   :  { %1314 = vmatmul.bf16.vlgmr.msra.gmra.mxu2 %v1238_v11 }
 0x843   :  { %v1315_v12 = vpop.f32.mrf.mxu2 }
 0x844   :  { %v4031_v13 = vadd.f32 %v3710_v6, %v1315_v12  ;;  %v3589_v12 = vld [vmem:[#allocation4 + $0xb8] sm:$0xff] }
 0x845   :  { %1603 = vmatpush.bf16.msrb.mxu0 %v3589_v12 }
 0x846   :  { %1324 = vadd.xlane.f32.xlu0 %v4031_v13  ;;  %v1321_v14 = vmul.f32 %v4012_v60, %v4031_v13  ;;  %v1329_v4 = vmul.f32 %v4031_v13, %v4031_v13 }
 0x848   :  { %1322 = vadd.xlane.f32.xlu2 %v1321_v14  ;;  %v1326_v16 = vmul.f32 %v1321_v14, %v4031_v13  ;;  %v3613_v14 = vld [vmem:[#allocation4 + $0x138] sm:$0xff] }
 0x849   :  { %1971 = vmatpush.bf16.msrb.mxu3 %v3613_v14 }
 0x84a   :  { %1327 = vadd.xlane.f32.xlu1 %v1326_v16  ;;  %v3612_v16 = vld [vmem:[#allocation4 + $0x130] sm:$0xff] }
 0x84b   :  { %v1317_v17 = vpop.f32.mrf.mxu2 }
 0x84c   :  { %v3611_v17 = vld [vmem:[#allocation4 + $0x128] sm:$0xff] }
 0x84d   :  { %1972 = vmatpush.bf16.msrb.mxu3 %v3612_v16 }
 0x850   :  { %1330 = vadd.xlane.f32.xlu2 %v1329_v4 }
 0x851   :  { %1973 = vmatpush.bf16.msrb.mxu3 %v3611_v17 }
 0x8b9   :  { %v1325_v19 = vpop.xlane.xlu0 %1324 }
 0x8bb   :  { %v1323_v18 = vpop.xlane.xlu2 %1322 }
 0x8bc   :  { %v1332_v41 = vmul.f32 0.015625, %v1323_v18  ;;  %v1333_v21 = vsub.f32 %v1325_v19, %v1323_v18  ;;  %v3610_v19 = vld [vmem:[#allocation4 + $0x120] sm:$0xff] }
 0x8bd   :  { %v1328_v20 = vpop.xlane.xlu1 %1327  ;;  %1974 = vmatpush.bf16.msrb.mxu3 %v3610_v19 }
 0x8be   :  { %v1336_v22 = vmul.f32 %v1332_v41, %v1332_v41  ;;  %v1335_v15 = vmul.f32 0.015625, %v1328_v20  ;;  %v1334_v24 = vmul.f32 0.015625, %v1333_v21  ;;  %v1364_v52 = vmul.f32 %v4012_v60, %v1332_v41  ;;  %v3586_v41 = vld [vmem:[#allocation4 + $0xa0] sm:$0xff] }
 0x8c0   :  { %v1337_v23 = vsub.f32 %v1335_v15, %v1336_v22  ;;  %v1340_v30 = vmul.f32 %v1334_v24, %v1334_v24  ;;  %v1365_v50 = vmul.f32 %v4024_v37, %v1334_v24  ;;  %v3585_v22 = vld [vmem:[#allocation4 + $0x98] sm:$0xff]  ;;  %v3608_v24 = vld [vmem:[#allocation4 + $0x110] sm:$0xff] }
 0x8c1   :  { %v3609_v15 = vld [vmem:[#allocation4 + $0x118] sm:$0xff] }
 0x8c2   :  { %v1342_v25 = vadd.f32 1e-05, %v1337_v23  ;;  %v1366_v55 = vadd.f32 %v1365_v50, %v1364_v52  ;;  %1975 = vmatpush.bf16.msrb.mxu3 %v3609_v15  ;;  %v3584_v23 = vld [vmem:[#allocation4 + $0x90] sm:$0xff]  ;;  %v3639_v50 = vld [vmem:[#allocation4 + $0x1c8] sm:$0xff]  ;;  %v3638_v52 = vld [vmem:[#allocation4 + $0x1c0] sm:$0xff] }
 0x8c3   :  { %v1331_v26 = vpop.xlane.xlu2 %1330 }
 0x8c4   :  { %3778 = vrsqrt.f32 %v1342_v25  ;;  %v1338_v27 = vsub.f32 %v1331_v26, %v1328_v20  ;;  %vm1349_vm5 = vweird.f32 %v1342_v25  ;;  %v1370_v63 = vsub.f32 %v4031_v13, %v1366_v55  ;;  %v3587_v13 = vld [vmem:[#allocation4 + $0xa8] sm:$0xff] }
 0x8c5   :  { %v3583_v26 = vld [vmem:[#allocation4 + $0x88] sm:$0xff] }
 0x8c6   :  { %v1339_v32 = vmul.f32 0.015625, %v1338_v27  ;;  %1976 = vmatpush.bf16.msrb.mxu3 %v3608_v24  ;;  %v3607_v27 = vld [vmem:[#allocation4 + $0x108] sm:$0xff]  ;;  %v3604_v24 = vld [vmem:[#allocation2 + $0x2b0] sm:$0xff] }
 0x8c8   :  { %v1341_v35 = vsub.f32 %v1339_v32, %v1340_v30  ;;  %v3582_v32 = vld [vmem:[#allocation4 + $0x80] sm:$0xff] }
 0x8ca   :  { %v3779_v36 = vpop.eup %3778  ;;  %v1353_v38 = vadd.f32 1e-05, %v1341_v35  ;;  %1977 = vmatpush.bf16.msrb.mxu3 %v3607_v27 }
 0x8cb   :  { %v1344_v33 = vmul.f32 %v3779_v36, %v1342_v25  ;;  %vm1350_vm4 = vweird.f32 %v3779_v36 }
 0x8cc   :  { %3780 = vrsqrt.f32 %v1353_v38  ;;  %vm1351_vm7 = vmor %vm1349_vm5, %vm1350_vm4  ;;  %vm1360_vm8 = vweird.f32 %v1353_v38 }
 0x8cd   :  { %v1345_v40 = vmul.f32 %v3779_v36, %v1344_v33 }
 0x8ce   :  { %1978 = vmatpush.bf16.msrb.mxu3 %v3606_v34 }
 0x8cf   :  { %v1346_v43 = vmul.f32 0.5, %v1345_v40  ;;  %v3620_v40 = vld [vmem:[#allocation4 + $0x170] sm:$0xff] }
 0x8d1   :  { %v1347_v31 = vsub.f32 1.5, %v1346_v43  ;;  %v3619_v43 = vld [vmem:[#allocation4 + $0x168] sm:$0xff] }
 0x8d2   :  { %v3781_v45 = vpop.eup %3780 }
 0x8d3   :  { %v1355_v47 = vmul.f32 %v3781_v45, %v1353_v38  ;;  %v1348_v48 = vmul.f32 %v3779_v36, %v1347_v31  ;;  %vm1361_vm6 = vweird.f32 %v3781_v45  ;;  %v3642_v31 = vld [vmem:[#allocation4 + $0x1e0] sm:$0xff] }
 0x8d4   :  { %vm1362_vm9 = vmor %vm1360_vm8, %vm1361_vm6 }
 0x8d5   :  { %v1356_v8 = vmul.f32 %v3781_v45, %v1355_v47  ;;  %v1352_v2 = vsel %vm1351_vm7, %v3779_v36, %v1348_v48  ;;  %v3621_v36 = vld [vmem:[#allocation4 + $0x178] sm:$0xff]  ;;  %v3640_v48 = vld [vmem:[#allocation4 + $0x1d0] sm:$0xff] }
 0x8d6   :  { %v1367_v57 = vmul.f32 %v4012_v60, %v1352_v2  ;;  %v3617_v47 = vld [vmem:[#allocation4 + $0x158] sm:$0xff] }
 0x8d7   :  { %v1357_v49 = vmul.f32 0.5, %v1356_v8  ;;  %v3641_v8 = vld [vmem:[#allocation4 + $0x1d8] sm:$0xff] }
 0x8d9   :  { %v1358_v51 = vsub.f32 1.5, %v1357_v49  ;;  %v3615_v49 = vld [vmem:[#allocation4 + $0x148] sm:$0xff] }
 0x8db   :  { %v1359_v54 = vmul.f32 %v3781_v45, %v1358_v51  ;;  %v3614_v51 = vld [vmem:[#allocation4 + $0x140] sm:$0xff] }
 0x8dd   :  { %v1363_v56 = vsel %vm1362_vm9, %v3781_v45, %v1359_v54  ;;  %v3643_v45 = vld [vmem:[#allocation4 + $0x1e8] sm:$0xff] }
 0x8de   :  { %v1368_v59 = vmul.f32 %v4024_v37, %v1363_v56  ;;  %v3588_v37 = vld [vmem:[#allocation4 + $0xb0] sm:$0xff] }
 0x8df   :  { %1604 = vmatpush.bf16.msrb.mxu0 %v3588_v37 }
 0x8e0   :  { %v1369_v1 = vadd.f32 %v1368_v59, %v1367_v57  ;;  %v3714_v57 = vld [vmem:[#allocation6 + $0x1d] ss:$0 sm:$0xff] }
 0x8e2   :  { %v1371_v3 = vmul.f32 %v1370_v63, %v1369_v1  ;;  %v4047_v63 = vld [vmem:[#allocation6 + $0x23] ss:$0 sm:$0xff] }
 0x8e3   :  { %1605 = vmatpush.bf16.msrb.mxu0 %v3587_v13 }
 0x8e4   :  { %v1373_v9 = vmul.f32 %v3711_v0, %v1371_v3 }
 0x8e6   :  { %v1375_v62 = vadd.f32 %v3712_v7, %v1373_v9  ;;  %v3715_v9 = vld [vmem:[#allocation6 + $0x25] ss:$0 sm:$0xff] }
 0x8e7   :  { %1606 = vmatpush.bf16.msrb.mxu0 %v3586_v41 }
 0x8e8   :  { %v1377_v11 = vadd.f32 %v1376_v10, %v1375_v62 }
 0x8ea   :  { %v1378_v6 = vmin.f32 %v1377_v11, 20.0  ;;  %vm1387_vm10 = vcmp.gt.f32.partialorder %v1377_v11, 20.0 }
 0x8eb   :  { %1607 = vmatpush.bf16.msrb.mxu0 %v3585_v22  ;;  %v3605_v22 = vld [vmem:[#allocation2 + $0x2b8] sm:$0xff] }
 0x8ec   :  { %v1379_v60 = vmul.f32 1.442695, %v1378_v6  ;;  %1770 = vmatpush.bf16.msrb.mxu2 %v3605_v22 }
 0x8ee   :  { %3782 = vpow2.f32 %v1379_v60 }
 0x8ef   :  { %1608 = vmatpush.bf16.msrb.mxu0 %v3584_v23 }
 0x8f0   :  { %1771 = vmatpush.bf16.msrb.mxu2 %v3604_v24 }
 0x8f3   :  { %1609 = vmatpush.bf16.msrb.mxu0 %v3583_v26 }
 0x8f4   :  { %v3783_v4 = vpop.eup %3782 }
 0x8f5   :  { %v1381_v18 = vadd.f32 1.0, %v3783_v4 }
 0x8f7   :  { %v1382_v20 = vmul.f32 %v1381_v18, %v1381_v18  ;;  %1610 = vmatpush.bf16.msrb.mxu0 %v3582_v32 }
 0x8f9   :  { %v1383_v21 = vadd.f32 1.0, %v1382_v20 }
 0x8fb   :  { %3784 = vrcp.f32 %v1383_v21  ;;  %1984 = vmatpush.bf16.msra.mxu0 %v3621_v36 }
 0x8ff   :  { %1985 = vmatpush.bf16.msra.mxu0 %v3620_v40 }
 0x901   :  { %v3785_v25 = vpop.eup %3784 }
 0x902   :  { %v1385_v28 = vmul.f32 2.0, %v3785_v25 }
 0x903   :  { %1986 = vmatpush.bf16.msra.mxu0 %v3619_v43  ;;  %v4062_v43 = vld [vmem:[#allocation6 + $0x24] ss:$0 sm:$0xff] }
 0x904   :  { %v1386_v30 = vsub.f32 1.0, %v1385_v28  ;;  %v3603_v28 = vld [vmem:[#allocation2 + $0x2a8] sm:$0xff] }
 0x905   :  { %1772 = vmatpush.bf16.msrb.mxu2 %v3603_v28 }
 0x906   :  { %v1388_v35 = vmul.f32 %v1386_v30, %v1377_v11 }
 0x907   :  { %1987 = vmatpush.bf16.msra.mxu0 %v3618_v46 }
 0x908   :  { %v1389_v38 = vsel %vm1387_vm10, %v1377_v11, %v1388_v35  ;;  %v3602_v35 = vld [vmem:[#allocation2 + $0x2a0] sm:$0xff] }
 0x909   :  { %v1390_v33 = vpack.c.bf16 %v1389_v38, %v1389_v38  ;;  %1773 = vmatpush.bf16.msrb.mxu2 %v3602_v35 }
 0x90b   :  { %1466 = vmatmul.bf16.vlgmr.msra.gmra.mxu3 %v1390_v33  ;;  %1988 = vmatpush.bf16.msra.mxu0 %v3617_v47 }
 0x90c   :  { %2236 = vmatpush.bf16.msra.mxu3 %v3645_v39  ;;  %v3601_v39 = vld [vmem:[#allocation2 + $0x298] sm:$0xff] }
 0x90d   :  { %1774 = vmatpush.bf16.msrb.mxu2 %v3601_v39 }
 0x90f   :  { %1989 = vmatpush.bf16.msra.mxu0 %v3616_v44  ;;  %v3599_v44 = vld [vmem:[#allocation2 + $0x288] sm:$0xff] }
 0x910   :  { %2237 = vmatpush.bf16.msra.mxu3 %v3644_v42 }
 0x913   :  { %1990 = vmatpush.bf16.msra.mxu0 %v3615_v49 }
 0x914   :  { %2238 = vmatpush.bf16.msra.mxu3 %v3643_v45  ;;  %v3600_v45 = vld [vmem:[#allocation2 + $0x290] sm:$0xff] }
 0x915   :  { %1775 = vmatpush.bf16.msrb.mxu2 %v3600_v45 }
 0x917   :  { %1991 = vmatpush.bf16.msra.mxu0 %v3614_v51 }
 0x918   :  { %2239 = vmatpush.bf16.msra.mxu3 %v3642_v31 }
 0x919   :  { %1776 = vmatpush.bf16.msrb.mxu2 %v3599_v44 }
 0x91c   :  { %2240 = vmatpush.bf16.msra.mxu3 %v3641_v8 }
 0x920   :  { %2241 = vmatpush.bf16.msra.mxu3 %v3640_v48 }
 0x924   :  { %2242 = vmatpush.bf16.msra.mxu3 %v3639_v50 }
 0x928   :  { %2243 = vmatpush.bf16.msra.mxu3 %v3638_v52 }
 0x98e   :  { %v1467_v2 = vpop.f32.mrf.mxu3 }
 0x98f   :  { %v1468_v54 = vadd.f32 %v3713_v53, %v1467_v2  ;;  %v3598_v53 = vld [vmem:[#allocation2 + $0x280] sm:$0xff] }
 0x990   :  { %1777 = vmatpush.bf16.msrb.mxu2 %v3598_v53  ;;  %v3624_v53 = vld [vmem:[#allocation2 + $0x2d0] sm:$0xff] }
 0x991   :  { %v1471_v55 = vpack.c.bf16 %v1468_v54, %v1468_v54 }
 0x993   :  { %1611 = vmatmul.bf16.vlgmr.msrb.gmra.mxu0 %v1471_v55  ;;  %1979 = vmatmul.bf16.vlgmr.msrb.gmra.mxu3 %v1471_v55 }
 0x996   :  { %v1469_v56 = vpop.f32.mrf.mxu3 }
 0x9a3   :  { %1992 = vmatmul.bf16.vlgmr.msra.gmra.mxu0 %v4008_v58  ;;  %2244 = vmatmul.bf16.vlgmr.msra.gmra.mxu3 %v3971_v29 }
 0xa10   :  { %v1612_v59 = vpop.f32.mrf.mxu0 }
 0xa11   :  { %v1613_v61 = vadd.f32 %v3714_v57, %v1612_v59  ;;  %v3718_v59 = vld [vmem:[#allocation6 + $0x1e] ss:$0 sm:$0xff] }
 0xa13   :  { %v4050_v0 = vadd.f32 %v4022_v5, %v1613_v61 }
 0xa15   :  { %1637 = vadd.xlane.f32.xlu1 %v4050_v0  ;;  %v1634_v1 = vmul.f32 %v4047_v63, %v4050_v0  ;;  %v1642_v10 = vmul.f32 %v4050_v0, %v4050_v0 }
 0xa16   :  { %v1980_v3 = vpop.f32.mrf.mxu3 }
 0xa17   :  { %1635 = vadd.xlane.f32.xlu0 %v1634_v1  ;;  %v1639_v7 = vmul.f32 %v1634_v1, %v4050_v0  ;;  %v1981_v11 = vadd.f32 %v3715_v9, %v1980_v3  ;;  %v3719_v1 = vld [vmem:[#allocation6 + $0x1f] ss:$0 sm:$0xff] }
 0xa18   :  { %v1614_v58 = vpop.f32.mrf.mxu0 }
 0xa19   :  { %1640 = vadd.xlane.f32.xlu2 %v1639_v7 }
 0xa1e   :  { %v1982_v62 = vpop.f32.mrf.mxu3 }
 0xa1f   :  { %1643 = vadd.xlane.f32.xlu0 %v1642_v10 }
 0xa20   :  { %v1993_v5 = vpop.f32.mrf.mxu0 }
 0xa21   :  { %v4058_v6 = vadd.f32 %v1993_v5, %v1981_v11 }
 0xa26   :  { %v4060_v12 = vpop.f32.mrf.mxu3 }
 0xa28   :  { %v1995_v14 = vpop.f32.mrf.mxu0 }
 0xa2e   :  { %v2247_v60 = vpop.f32.mrf.mxu3 }
 0xa88   :  { %v1638_v13 = vpop.xlane.xlu1 %1637 }
 0xa8a   :  { %v1636_v37 = vpop.xlane.xlu0 %1635 }
 0xa8b   :  { %v1645_v16 = vmul.f32 0.03125, %v1636_v37  ;;  %v1646_v4 = vsub.f32 %v1638_v13, %v1636_v37 }
 0xa8c   :  { %v1641_v17 = vpop.xlane.xlu2 %1640 }
 0xa8d   :  { %v1649_v18 = vmul.f32 %v1645_v16, %v1645_v16  ;;  %v1648_v41 = vmul.f32 0.03125, %v1641_v17  ;;  %v1647_v20 = vmul.f32 0.03125, %v1646_v4  ;;  %v1677_v49 = vmul.f32 %v4047_v63, %v1645_v16 }
 0xa8f   :  { %v1650_v19 = vsub.f32 %v1648_v41, %v1649_v18  ;;  %v1653_v25 = vmul.f32 %v1647_v20, %v1647_v20  ;;  %v1679_v8 = vmul.f32 %v4062_v43, %v1647_v20 }
 0xa91   :  { %v1655_v21 = vadd.f32 1e-05, %v1650_v19  ;;  %v1680_v52 = vadd.f32 %v1679_v8, %v1677_v49  ;;  %v3626_v8 = vld [vmem:[#allocation2 + $0x2e0] sm:$0xff]  ;;  %v3625_v49 = vld [vmem:[#allocation2 + $0x2d8] sm:$0xff] }
 0xa92   :  { %v1644_v15 = vpop.xlane.xlu0 %1643 }
 0xa93   :  { %3786 = vrsqrt.f32 %v1655_v21  ;;  %v1651_v23 = vsub.f32 %v1644_v15, %v1641_v17  ;;  %vm1662_vm12 = vweird.f32 %v1655_v21  ;;  %v1684_v56 = vsub.f32 %v4050_v0, %v1680_v52  ;;  %v3720_v17 = vld [vmem:[#allocation6 + $0x20] ss:$0 sm:$0xff] }
 0xa95   :  { %v1652_v26 = vmul.f32 0.03125, %v1651_v23 }
 0xa97   :  { %v1654_v27 = vsub.f32 %v1652_v26, %v1653_v25 }
 0xa99   :  { %v3787_v30 = vpop.eup %3786  ;;  %v1666_v32 = vadd.f32 1e-05, %v1654_v27 }
 0xa9a   :  { %v1657_v34 = vmul.f32 %v3787_v30, %v1655_v21  ;;  %vm1663_vm11 = vweird.f32 %v3787_v30 }
 0xa9b   :  { %3788 = vrsqrt.f32 %v1666_v32  ;;  %vm1664_vm14 = vmor %vm1662_vm12, %vm1663_vm11  ;;  %vm1673_vm15 = vweird.f32 %v1666_v32 }
 0xa9c   :  { %v1658_v36 = vmul.f32 %v3787_v30, %v1657_v34 }
 0xa9e   :  { %v1659_v38 = vmul.f32 0.5, %v1658_v36  ;;  %v3629_v36 = vld [vmem:[#allocation2 + $0x2f8] sm:$0xff] }
 0xa9f   :  { %2078 = vmatpush.bf16.msra.mxu1 %v3629_v36  ;;  %v3630_v36 = vld [vmem:[#allocation4 + $0x180] sm:$0xff] }
 0xaa0   :  { %v1660_v40 = vsub.f32 1.5, %v1659_v38 }
 0xaa1   :  { %v3789_v33 = vpop.eup %3788 }
 0xaa2   :  { %v1668_v42 = vmul.f32 %v3789_v33, %v1666_v32  ;;  %v1661_v31 = vmul.f32 %v3787_v30, %v1660_v40  ;;  %vm1674_vm13 = vweird.f32 %v3789_v33 }
 0xaa3   :  { %vm1675_vm0 = vmor %vm1673_vm15, %vm1674_vm13 }
 0xaa4   :  { %v1669_v46 = vmul.f32 %v3789_v33, %v1668_v42  ;;  %v1665_v50 = vsel %vm1664_vm14, %v3787_v30, %v1661_v31 }
 0xaa5   :  { %v1681_v54 = vmul.f32 %v4047_v63, %v1665_v50 }
 0xaa6   :  { %v1670_v47 = vmul.f32 0.5, %v1669_v46  ;;  %v3627_v46 = vld [vmem:[#allocation2 + $0x2e8] sm:$0xff] }
 0xaa8   :  { %v1671_v48 = vsub.f32 1.5, %v1670_v47 }
 0xaaa   :  { %v1672_v51 = vmul.f32 %v3789_v33, %v1671_v48 }
 0xaac   :  { %v1676_v2 = vsel %vm1675_vm0, %v3789_v33, %v1672_v51  ;;  %v3628_v33 = vld [vmem:[#allocation2 + $0x2f0] sm:$0xff] }
 0xaad   :  { %v1682_v55 = vmul.f32 %v4062_v43, %v1676_v2  ;;  %2079 = vmatpush.bf16.msra.mxu1 %v3628_v33 }
 0xaaf   :  { %v1683_v57 = vadd.f32 %v1682_v55, %v1681_v54 }
 0xab1   :  { %v1685_v61 = vmul.f32 %v1684_v56, %v1683_v57  ;;  %2080 = vmatpush.bf16.msra.mxu1 %v3627_v46  ;;  %v3654_v46 = vld [vmem:[#allocation4 + $0x200] sm:$0xff] }
 0xab3   :  { %v1687_v3 = vmul.f32 %v3718_v59, %v1685_v61  ;;  %v3623_v59 = vld [vmem:[#allocation2 + $0x2c8] sm:$0xff] }
 0xab5   :  { %v1689_v7 = vadd.f32 %v3719_v1, %v1687_v3  ;;  %2081 = vmatpush.bf16.msra.mxu1 %v3626_v8  ;;  %v3664_v8 = vld [vmem:[#allocation4 + $0x250] sm:$0xff] }
 0xab7   :  { %v1690_v58 = vmin.f32 %v1689_v7, 20.0  ;;  %vm1699_vm1 = vcmp.gt.f32.partialorder %v1689_v7, 20.0 }
 0xab9   :  { %v1691_v9 = vmul.f32 1.442695, %v1690_v58  ;;  %2082 = vmatpush.bf16.msra.mxu1 %v3625_v49  ;;  %v3723_v49 = vld [vmem:[#allocation6 + $0x26] ss:$0 sm:$0xff] }
 0xabb   :  { %3790 = vpow2.f32 %v1691_v9 }
 0xabd   :  { %2083 = vmatpush.bf16.msra.mxu1 %v3624_v53 }
 0xac1   :  { %v3791_v10 = vpop.eup %3790  ;;  %2084 = vmatpush.bf16.msra.mxu1 %v3623_v59 }
 0xac2   :  { %v1693_v62 = vadd.f32 1.0, %v3791_v10  ;;  %v3622_v10 = vld [vmem:[#allocation2 + $0x2c0] sm:$0xff] }
 0xac4   :  { %v1694_v11 = vmul.f32 %v1693_v62, %v1693_v62 }
 0xac5   :  { %2085 = vmatpush.bf16.msra.mxu1 %v3622_v10 }
 0xac6   :  { %v1695_v5 = vadd.f32 1.0, %v1694_v11  ;;  %v3721_v11 = vld [vmem:[#allocation6 + $0x21] ss:$0 sm:$0xff] }
 0xac8   :  { %3792 = vrcp.f32 %v1695_v5 }
 0xace   :  { %v3793_v14 = vpop.eup %3792 }
 0xacf   :  { %v1697_v60 = vmul.f32 2.0, %v3793_v14 }
 0xad1   :  { %v1698_v37 = vsub.f32 1.0, %v1697_v60  ;;  %v3722_v60 = vld [vmem:[#allocation6 + $0x22] ss:$0 sm:$0xff] }
 0xad3   :  { %v1700_v16 = vmul.f32 %v1698_v37, %v1689_v7 }
 0xad5   :  { %v1701_v0 = vsel %vm1699_vm1, %v1689_v7, %v1700_v16 }
 0xad6   :  { %v1702_v13 = vpack.c.bf16 %v1701_v0, %v1701_v0 }
 0xad8   :  { %1778 = vmatmul.bf16.vlgmr.msrb.gmra.mxu2 %v1702_v13 }
 0xb5b   :  { %v1779_v4 = vpop.f32.mrf.mxu2 }
 0xb5c   :  { %v4069_v18 = vadd.f32 %v3720_v17, %v1779_v4  ;;  %v3637_v17 = vld [vmem:[#allocation4 + $0x1b8] sm:$0xff] }
 0xb5d   :  { %2223 = vmatpush.bf16.msra.mxu2 %v3637_v17 }
 0xb5e   :  { %1788 = vadd.xlane.f32.xlu2 %v4069_v18  ;;  %v1785_v41 = vmul.f32 %v4047_v63, %v4069_v18  ;;  %v1793_v21 = vmul.f32 %v4069_v18, %v4069_v18 }
 0xb60   :  { %1786 = vadd.xlane.f32.xlu1 %v1785_v41  ;;  %v1790_v19 = vmul.f32 %v1785_v41, %v4069_v18  ;;  %v3661_v41 = vld [vmem:[#allocation4 + $0x238] sm:$0xff] }
 0xb61   :  { %2591 = vmatpush.bf16.msrb.mxu1 %v3661_v41  ;;  %v3653_v41 = vld [vmem:[#allocation2 + $0x338] sm:$0xff] }
 0xb62   :  { %1791 = vadd.xlane.f32.xlu0 %v1790_v19  ;;  %v3659_v19 = vld [vmem:[#allocation4 + $0x228] sm:$0xff]  ;;  %2390 = vmatpush.bf16.msrb.mxu0 %v3653_v41 }
 0xb63   :  { %v1781_v20 = vpop.f32.mrf.mxu2 }
 0xb68   :  { %1794 = vadd.xlane.f32.xlu1 %v1793_v21 }
 0xbd1   :  { %v1789_v23 = vpop.xlane.xlu2 %1788 }
 0xbd3   :  { %v1787_v22 = vpop.xlane.xlu1 %1786 }
 0xbd4   :  { %v1796_v15 = vmul.f32 0.03125, %v1787_v22  ;;  %v1797_v25 = vsub.f32 %v1789_v23, %v1787_v22  ;;  %v3634_v22 = vld [vmem:[#allocation4 + $0x1a0] sm:$0xff] }
 0xbd5   :  { %v1792_v24 = vpop.xlane.xlu0 %1791 }
 0xbd6   :  { %v1800_v26 = vmul.f32 %v1796_v15, %v1796_v15  ;;  %v1799_v27 = vmul.f32 0.03125, %v1792_v24  ;;  %v1798_v30 = vmul.f32 0.03125, %v1797_v25  ;;  %v1828_v57 = vmul.f32 %v4047_v63, %v1796_v15  ;;  %v3658_v15 = vld [vmem:[#allocation4 + $0x220] sm:$0xff]  ;;  %v3657_v25 = vld [vmem:[#allocation4 + $0x218] sm:$0xff] }
 0xbd8   :  { %v1801_v28 = vsub.f32 %v1799_v27, %v1800_v26  ;;  %v1804_v38 = vmul.f32 %v1798_v30, %v1798_v30  ;;  %v1829_v55 = vmul.f32 %v4062_v43, %v1798_v30  ;;  %v3632_v26 = vld [vmem:[#allocation4 + $0x190] sm:$0xff]  ;;  %v3631_v30 = vld [vmem:[#allocation4 + $0x188] sm:$0xff] }
 0xbd9   :  { %v3656_v27 = vld [vmem:[#allocation4 + $0x210] sm:$0xff] }
 0xbda   :  { %v1806_v32 = vadd.f32 1e-05, %v1801_v28  ;;  %v1830_v3 = vadd.f32 %v1829_v55, %v1828_v57  ;;  %v4084_v57 = vld [vmem:[#allocation6 + $0x2d] ss:$0 sm:$0xff] }
 0xbdb   :  { %v1795_v34 = vpop.xlane.xlu1 %1794 }
 0xbdc   :  { %3794 = vrsqrt.f32 %v1806_v32  ;;  %v1802_v35 = vsub.f32 %v1795_v34, %v1792_v24  ;;  %vm1813_vm3 = vweird.f32 %v1806_v32  ;;  %v1834_v62 = vsub.f32 %v4069_v18, %v1830_v3  ;;  %v3635_v18 = vld [vmem:[#allocation4 + $0x1a8] sm:$0xff]  ;;  %v3633_v24 = vld [vmem:[#allocation4 + $0x198] sm:$0xff] }
 0xbdd   :  { %v3655_v34 = vld [vmem:[#allocation4 + $0x208] sm:$0xff] }
 0xbde   :  { %v1803_v39 = vmul.f32 0.03125, %v1802_v35 }
 0xbe0   :  { %v1805_v40 = vsub.f32 %v1803_v39, %v1804_v38  ;;  %v3669_v39 = vld [vmem:[#allocation4 + $0x278] sm:$0xff] }
 0xbe2   :  { %v3795_v42 = vpop.eup %3794  ;;  %v1817_v45 = vadd.f32 1e-05, %v1805_v40 }
 0xbe3   :  { %v1808_v31 = vmul.f32 %v3795_v42, %v1806_v32  ;;  %vm1814_vm2 = vweird.f32 %v3795_v42 }
 0xbe4   :  { %3796 = vrsqrt.f32 %v1817_v45  ;;  %vm1815_vm5 = vmor %vm1813_vm3, %vm1814_vm2  ;;  %vm1824_vm6 = vweird.f32 %v1817_v45 }
 0xbe5   :  { %v1809_v47 = vmul.f32 %v3795_v42, %v1808_v31  ;;  %v3666_v31 = vld [vmem:[#allocation4 + $0x260] sm:$0xff] }
 0xbe7   :  { %v1810_v44 = vmul.f32 0.5, %v1809_v47  ;;  %v3665_v47 = vld [vmem:[#allocation4 + $0x258] sm:$0xff] }
 0xbe9   :  { %v1811_v50 = vsub.f32 1.5, %v1810_v44  ;;  %v3663_v44 = vld [vmem:[#allocation4 + $0x248] sm:$0xff] }
 0xbea   :  { %v3797_v48 = vpop.eup %3796 }
 0xbeb   :  { %v1819_v51 = vmul.f32 %v3797_v48, %v1817_v45  ;;  %v1812_v2 = vmul.f32 %v3795_v42, %v1811_v50  ;;  %vm1825_vm4 = vweird.f32 %v3797_v48  ;;  %v3667_v45 = vld [vmem:[#allocation4 + $0x268] sm:$0xff] }
 0xbec   :  { %vm1826_vm7 = vmor %vm1824_vm6, %vm1825_vm4 }
 0xbed   :  { %v1820_v52 = vmul.f32 %v3797_v48, %v1819_v51  ;;  %v1816_v61 = vsel %vm1815_vm5, %v3795_v42, %v1812_v2  ;;  %v3668_v42 = vld [vmem:[#allocation4 + $0x270] sm:$0xff] }
 0xbee   :  { %v1831_v58 = vmul.f32 %v4047_v63, %v1816_v61  ;;  %v3636_v63 = vld [vmem:[#allocation4 + $0x1b0] sm:$0xff] }
 0xbef   :  { %v1821_v54 = vmul.f32 0.5, %v1820_v52  ;;  %2224 = vmatpush.bf16.msra.mxu2 %v3636_v63 }
 0xbf1   :  { %v1822_v56 = vsub.f32 1.5, %v1821_v54  ;;  %v3725_v54 = vld [vmem:[#allocation6 + $0x27] ss:$0 sm:$0xff] }
 0xbf3   :  { %v1823_v1 = vmul.f32 %v3797_v48, %v1822_v56  ;;  %2225 = vmatpush.bf16.msra.mxu2 %v3635_v18  ;;  %v3652_v18 = vld [vmem:[#allocation2 + $0x330] sm:$0xff] }
 0xbf4   :  { %2391 = vmatpush.bf16.msrb.mxu0 %v3652_v18 }
 0xbf5   :  { %v1827_v7 = vsel %vm1826_vm7, %v3797_v48, %v1823_v1  ;;  %v3662_v48 = vld [vmem:[#allocation4 + $0x240] sm:$0xff] }
 0xbf6   :  { %v1832_v9 = vmul.f32 %v4062_v43, %v1827_v7  ;;  %v3660_v43 = vld [vmem:[#allocation4 + $0x230] sm:$0xff] }
 0xbf7   :  { %2592 = vmatpush.bf16.msrb.mxu1 %v3660_v43  ;;  %2226 = vmatpush.bf16.msra.mxu2 %v3634_v22  ;;  %v3651_v22 = vld [vmem:[#allocation2 + $0x328] sm:$0xff] }
 0xbf8   :  { %v1833_v5 = vadd.f32 %v1832_v9, %v1831_v58  ;;  %2392 = vmatpush.bf16.msrb.mxu0 %v3651_v22 }
 0xbfa   :  { %v1835_v14 = vmul.f32 %v1834_v62, %v1833_v5 }
 0xbfb   :  { %2593 = vmatpush.bf16.msrb.mxu1 %v3659_v19  ;;  %2227 = vmatpush.bf16.msra.mxu2 %v3633_v24  ;;  %v3650_v24 = vld [vmem:[#allocation2 + $0x320] sm:$0xff] }
 0xbfc   :  { %v1837_v37 = vmul.f32 %v3721_v11, %v1835_v14  ;;  %2393 = vmatpush.bf16.msrb.mxu0 %v3650_v24 }
 0xbfe   :  { %v1839_v16 = vadd.f32 %v3722_v60, %v1837_v37 }
 0xbff   :  { %2594 = vmatpush.bf16.msrb.mxu1 %v3658_v15  ;;  %2228 = vmatpush.bf16.msra.mxu2 %v3632_v26 }
 0xc00   :  { %v1997_v0 = vadd.f32 %v4058_v6, %v1839_v16 }
 0xc02   :  { %v1998_v13 = vmin.f32 %v1997_v0, 20.0  ;;  %vm2007_vm8 = vcmp.gt.f32.partialorder %v1997_v0, 20.0 }
 0xc03   :  { %2595 = vmatpush.bf16.msrb.mxu1 %v3657_v25  ;;  %2229 = vmatpush.bf16.msra.mxu2 %v3631_v30 }
 0xc04   :  { %v1999_v4 = vmul.f32 1.442695, %v1998_v13 }
 0xc06   :  { %3798 = vpow2.f32 %v1999_v4 }
 0xc07   :  { %2596 = vmatpush.bf16.msrb.mxu1 %v3656_v27  ;;  %2230 = vmatpush.bf16.msra.mxu2 %v3630_v36  ;;  %v3649_v27 = vld [vmem:[#allocation2 + $0x318] sm:$0xff] }
 0xc08   :  { %2394 = vmatpush.bf16.msrb.mxu0 %v3649_v27 }
 0xc0b   :  { %2597 = vmatpush.bf16.msrb.mxu1 %v3655_v34  ;;  %2604 = vmatpush.bf16.msrb.mxu2 %v3669_v39  ;;  %v4097_v34 = vld [vmem:[#allocation6 + $0x2e] ss:$0 sm:$0xff] }
 0xc0c   :  { %v3799_v20 = vpop.eup %3798 }
 0xc0d   :  { %v2001_v21 = vadd.f32 1.0, %v3799_v20 }
 0xc0f   :  { %v2002_v6 = vmul.f32 %v2001_v21, %v2001_v21  ;;  %2605 = vmatpush.bf16.msrb.mxu2 %v3668_v42  ;;  %2598 = vmatpush.bf16.msrb.mxu1 %v3654_v46 }
 0xc11   :  { %v2003_v23 = vadd.f32 1.0, %v2002_v6 }
 0xc13   :  { %3800 = vrcp.f32 %v2003_v23  ;;  %2606 = vmatpush.bf16.msrb.mxu2 %v3667_v45 }
 0xc17   :  { %2607 = vmatpush.bf16.msrb.mxu2 %v3666_v31 }
 0xc19   :  { %v3801_v28 = vpop.eup %3800 }
 0xc1a   :  { %v2005_v32 = vmul.f32 2.0, %v3801_v28 }
 0xc1b   :  { %2608 = vmatpush.bf16.msrb.mxu2 %v3665_v47 }
 0xc1c   :  { %v2006_v35 = vsub.f32 1.0, %v2005_v32 }
 0xc1e   :  { %v2008_v38 = vmul.f32 %v2006_v35, %v1997_v0  ;;  %v3648_v35 = vld [vmem:[#allocation2 + $0x310] sm:$0xff] }
 0xc1f   :  { %2609 = vmatpush.bf16.msrb.mxu2 %v3664_v8  ;;  %2395 = vmatpush.bf16.msrb.mxu0 %v3648_v35  ;;  %v3646_v8 = vld [vmem:[#allocation2 + $0x300] sm:$0xff] }
 0xc20   :  { %v2009_v33 = vsel %vm2007_vm8, %v1997_v0, %v2008_v38 }
 0xc21   :  { %v2010_v40 = vpack.c.bf16 %v2009_v33, %v2009_v33 }
 0xc23   :  { %2086 = vmatmul.bf16.vlgmr.msra.gmra.mxu1 %v2010_v40  ;;  %2610 = vmatpush.bf16.msrb.mxu2 %v3663_v44  ;;  %v3647_v40 = vld [vmem:[#allocation2 + $0x308] sm:$0xff] }
 0xc24   :  { %2396 = vmatpush.bf16.msrb.mxu0 %v3647_v40  ;;  %v3673_v40 = vld [vmem:[#allocation2 + $0x358] sm:$0xff] }
 0xc27   :  { %2611 = vmatpush.bf16.msrb.mxu2 %v3662_v48 }
 0xc28   :  { %2397 = vmatpush.bf16.msrb.mxu0 %v3646_v8 }
 0xca0   :  { %v2087_v50 = vpop.f32.mrf.mxu1 }
 0xca1   :  { %v2088_v51 = vadd.f32 %v3723_v49, %v2087_v50 }
 0xca3   :  { %v2091_v52 = vpack.c.bf16 %v2088_v51, %v2088_v51 }
 0xca5   :  { %2231 = vmatmul.bf16.vlgmr.msra.gmra.mxu2 %v2091_v52  ;;  %2599 = vmatmul.bf16.vlgmr.msrb.gmra.mxu1 %v2091_v52  ;;  %v3728_v52 = vld [vmem:[#allocation6 + $0x28] ss:$0 sm:$0xff] }
 0xca8   :  { %v2089_v53 = vpop.f32.mrf.mxu1 }
 0xcb5   :  { %2612 = vmatmul.bf16.vlgmr.msrb.gmra.mxu2 %v3971_v29  ;;  %v3724_v29 = vld [vmem:[#allocation6 + $0x2f] ss:$0 sm:$0xff] }
 0xd22   :  { %v2600_v2 = vpop.f32.mrf.mxu1 }
 0xd23   :  { %v2601_v9 = vadd.f32 %v3724_v29, %v2600_v2  ;;  %v3729_v2 = vld [vmem:[#allocation6 + $0x29] ss:$0 sm:$0xff] }
 0xd28   :  { %v2232_v55 = vpop.f32.mrf.mxu2 }
 0xd29   :  { %v2233_v56 = vadd.f32 %v3725_v54, %v2232_v55 }
 0xd2a   :  { %v2602_v59 = vpop.f32.mrf.mxu1 }
 0xd2b   :  { %v4087_v61 = vadd.f32 %v4060_v12, %v2233_v56 }
 0xd2d   :  { %2257 = vadd.xlane.f32.xlu0 %v4087_v61  ;;  %v2254_v1 = vmul.f32 %v4084_v57, %v4087_v61  ;;  %v2262_v58 = vmul.f32 %v4087_v61, %v4087_v61 }
 0xd2f   :  { %2255 = vadd.xlane.f32.xlu2 %v2254_v1  ;;  %v2259_v3 = vmul.f32 %v2254_v1, %v4087_v61 }
 0xd30   :  { %v2234_v7 = vpop.f32.mrf.mxu2 }
 0xd31   :  { %2260 = vadd.xlane.f32.xlu1 %v2259_v3 }
 0xd37   :  { %2263 = vadd.xlane.f32.xlu2 %v2262_v58 }
 0xd38   :  { %v2613_v10 = vpop.f32.mrf.mxu2 }
 0xd39   :  { %v4095_v62 = vadd.f32 %v2613_v10, %v2601_v9 }
 0xd40   :  { %v2615_v12 = vpop.f32.mrf.mxu2 }
 0xda0   :  { %v2258_v14 = vpop.xlane.xlu0 %2257 }
 0xda2   :  { %v2256_v11 = vpop.xlane.xlu2 %2255 }
 0xda3   :  { %v2265_v5 = vmul.f32 0.0625, %v2256_v11  ;;  %v2266_v37 = vsub.f32 %v2258_v14, %v2256_v11 }
 0xda4   :  { %v2261_v60 = vpop.xlane.xlu1 %2260 }
 0xda5   :  { %v2269_v16 = vmul.f32 %v2265_v5, %v2265_v5  ;;  %v2268_v0 = vmul.f32 0.0625, %v2261_v60  ;;  %v2267_v17 = vmul.f32 0.0625, %v2266_v37  ;;  %v2297_v45 = vmul.f32 %v4084_v57, %v2265_v5  ;;  %v3730_v5 = vld [vmem:[#allocation6 + $0x2a] ss:$0 sm:$0xff] }
 0xda7   :  { %v2270_v13 = vsub.f32 %v2268_v0, %v2269_v16  ;;  %v2273_v19 = vmul.f32 %v2267_v17, %v2267_v17  ;;  %v2299_v33 = vmul.f32 %v4097_v34, %v2267_v17 }
 0xda9   :  { %v2275_v4 = vadd.f32 1e-05, %v2270_v13  ;;  %v2300_v47 = vadd.f32 %v2299_v33, %v2297_v45 }
 0xdaa   :  { %v2264_v63 = vpop.xlane.xlu2 %2263 }
 0xdab   :  { %3802 = vrsqrt.f32 %v2275_v4  ;;  %v2271_v43 = vsub.f32 %v2264_v63, %v2261_v60  ;;  %vm2282_vm10 = vweird.f32 %v2275_v4  ;;  %v2304_v50 = vsub.f32 %v4087_v61, %v2300_v47 }
 0xdad   :  { %v2272_v20 = vmul.f32 0.0625, %v2271_v43 }
 0xdaf   :  { %v2274_v21 = vsub.f32 %v2272_v20, %v2273_v19 }
 0xdb1   :  { %v3803_v15 = vpop.eup %3802  ;;  %v2286_v6 = vadd.f32 1e-05, %v2274_v21 }
 0xdb2   :  { %v2277_v23 = vmul.f32 %v3803_v15, %v2275_v4  ;;  %vm2283_vm9 = vweird.f32 %v3803_v15 }
 0xdb3   :  { %3804 = vrsqrt.f32 %v2286_v6  ;;  %vm2284_vm12 = vmor %vm2282_vm10, %vm2283_vm9  ;;  %vm2293_vm13 = vweird.f32 %v2286_v6 }
 0xdb4   :  { %v2278_v25 = vmul.f32 %v3803_v15, %v2277_v23  ;;  %v3677_v23 = vld [vmem:[#allocation2 + $0x378] sm:$0xff] }
 0xdb5   :  { %2698 = vmatpush.bf16.msrb.mxu3 %v3677_v23 }
 0xdb6   :  { %v2279_v26 = vmul.f32 0.5, %v2278_v25 }
 0xdb8   :  { %v2280_v30 = vsub.f32 1.5, %v2279_v26  ;;  %v3676_v26 = vld [vmem:[#allocation2 + $0x370] sm:$0xff] }
 0xdb9   :  { %v3805_v28 = vpop.eup %3804  ;;  %2699 = vmatpush.bf16.msrb.mxu3 %v3676_v26 }
 0xdba   :  { %v2288_v32 = vmul.f32 %v3805_v28, %v2286_v6  ;;  %v2281_v38 = vmul.f32 %v3803_v15, %v2280_v30  ;;  %vm2294_vm11 = vweird.f32 %v3805_v28 }
 0xdbb   :  { %vm2295_vm14 = vmor %vm2293_vm13, %vm2294_vm11 }
 0xdbc   :  { %v2289_v36 = vmul.f32 %v3805_v28, %v2288_v32  ;;  %v2285_v46 = vsel %vm2284_vm12, %v3803_v15, %v2281_v38  ;;  %v3675_v32 = vld [vmem:[#allocation2 + $0x368] sm:$0xff]  ;;  %v3674_v38 = vld [vmem:[#allocation2 + $0x360] sm:$0xff] }
 0xdbd   :  { %v2301_v48 = vmul.f32 %v4084_v57, %v2285_v46  ;;  %2700 = vmatpush.bf16.msrb.mxu3 %v3675_v32 }
 0xdbe   :  { %v2290_v39 = vmul.f32 0.5, %v2289_v36 }
 0xdc0   :  { %v2291_v42 = vsub.f32 1.5, %v2290_v39 }
 0xdc1   :  { %2701 = vmatpush.bf16.msrb.mxu3 %v3674_v38 }
 0xdc2   :  { %v2292_v31 = vmul.f32 %v3805_v28, %v2291_v42 }
 0xdc4   :  { %v2296_v44 = vsel %vm2295_vm14, %v3805_v28, %v2292_v31  ;;  %v3672_v31 = vld [vmem:[#allocation2 + $0x350] sm:$0xff] }
 0xdc5   :  { %v2302_v49 = vmul.f32 %v4097_v34, %v2296_v44  ;;  %2702 = vmatpush.bf16.msrb.mxu3 %v3673_v40 }
 0xdc7   :  { %v2303_v51 = vadd.f32 %v2302_v49, %v2301_v48 }
 0xdc9   :  { %v2305_v53 = vmul.f32 %v2304_v50, %v2303_v51  ;;  %2703 = vmatpush.bf16.msrb.mxu3 %v3672_v31  ;;  %v3671_v50 = vld [vmem:[#allocation2 + $0x348] sm:$0xff] }
 0xdcb   :  { %v2307_v54 = vmul.f32 %v3728_v52, %v2305_v53 }
 0xdcd   :  { %v2309_v55 = vadd.f32 %v3729_v2, %v2307_v54  ;;  %2704 = vmatpush.bf16.msrb.mxu3 %v3671_v50 }
 0xdcf   :  { %v2310_v56 = vmin.f32 %v2309_v55, 20.0  ;;  %vm2319_vm15 = vcmp.gt.f32.partialorder %v2309_v55, 20.0 }
 0xdd1   :  { %v2311_v59 = vmul.f32 1.442695, %v2310_v56  ;;  %v3670_v56 = vld [vmem:[#allocation2 + $0x340] sm:$0xff] }
 0xdd2   :  { %2705 = vmatpush.bf16.msrb.mxu3 %v3670_v56 }
 0xdd3   :  { %3806 = vpow2.f32 %v2311_v59 }
 0xdd9   :  { %v3807_v1 = vpop.eup %3806 }
 0xdda   :  { %v2313_v3 = vadd.f32 1.0, %v3807_v1  ;;  %v3731_v1 = vld [vmem:[#allocation6 + $0x2b] ss:$0 sm:$0xff] }
 0xddc   :  { %v2314_v7 = vmul.f32 %v2313_v3, %v2313_v3 }
 0xdde   :  { %v2315_v29 = vadd.f32 1.0, %v2314_v7 }
 0xde0   :  { %3808 = vrcp.f32 %v2315_v29  ;;  %v3732_v29 = vld [vmem:[#allocation6 + $0x2c] ss:$0 sm:$0xff] }
 0xde6   :  { %v3809_v58 = vpop.eup %3808 }
 0xde7   :  { %v2317_v9 = vmul.f32 2.0, %v3809_v58 }
 0xde9   :  { %v2318_v10 = vsub.f32 1.0, %v2317_v9 }
 0xdeb   :  { %v2320_v12 = vmul.f32 %v2318_v10, %v2309_v55 }
 0xded   :  { %v2321_v61 = vsel %vm2319_vm15, %v2309_v55, %v2320_v12 }
 0xdee   :  { %v2322_v11 = vpack.c.bf16 %v2321_v61, %v2321_v61 }
 0xdf0   :  { %2398 = vmatmul.bf16.vlgmr.msrb.gmra.mxu0 %v2322_v11 }
 0xe6d   :  { %v2399_v14 = vpop.f32.mrf.mxu0 }
 0xe6e   :  { %v4104_v60 = vadd.f32 %v3730_v5, %v2399_v14 }
 0xe70   :  { %2408 = vadd.xlane.f32.xlu1 %v4104_v60  ;;  %v2405_v37 = vmul.f32 %v4084_v57, %v4104_v60  ;;  %v2413_v13 = vmul.f32 %v4104_v60, %v4104_v60 }
 0xe72   :  { %2406 = vadd.xlane.f32.xlu0 %v2405_v37  ;;  %v2410_v16 = vmul.f32 %v2405_v37, %v4104_v60 }
 0xe74   :  { %2411 = vadd.xlane.f32.xlu2 %v2410_v16 }
 0xe75   :  { %v2401_v0 = vpop.f32.mrf.mxu0 }
 0xe7a   :  { %2414 = vadd.xlane.f32.xlu0 %v2413_v13 }
 0xee3   :  { %v2409_v41 = vpop.xlane.xlu1 %2408 }
 0xee5   :  { %v2407_v17 = vpop.xlane.xlu0 %2406 }
 0xee6   :  { %v2416_v4 = vmul.f32 0.0625, %v2407_v17  ;;  %v2417_v43 = vsub.f32 %v2409_v41, %v2407_v17  ;;  %v3733_v17 = vld [vmem:[#allocation6 + $0x30] ss:$0 sm:$0xff] }
 0xee7   :  { %v2412_v63 = vpop.xlane.xlu2 %2411 }
 0xee8   :  { %v2420_v18 = vmul.f32 %v2416_v4, %v2416_v4  ;;  %v2419_v19 = vmul.f32 0.0625, %v2412_v63  ;;  %v2418_v21 = vmul.f32 0.0625, %v2417_v43  ;;  %v2448_v49 = vmul.f32 %v4084_v57, %v2416_v4 }
 0xeea   :  { %v2421_v20 = vsub.f32 %v2419_v19, %v2420_v18  ;;  %v2424_v24 = vmul.f32 %v2418_v21, %v2418_v21  ;;  %v2449_v44 = vmul.f32 %v4097_v34, %v2418_v21 }
 0xeec   :  { %v2426_v22 = vadd.f32 1e-05, %v2421_v20  ;;  %v2450_v53 = vadd.f32 %v2449_v44, %v2448_v49 }
 0xeed   :  { %v2415_v15 = vpop.xlane.xlu0 %2414 }
 0xeee   :  { %3810 = vrsqrt.f32 %v2426_v22  ;;  %v2422_v6 = vsub.f32 %v2415_v15, %v2412_v63  ;;  %vm2433_vm1 = vweird.f32 %v2426_v22  ;;  %v2454_v59 = vsub.f32 %v4104_v60, %v2450_v53 }
 0xef0   :  { %v2423_v25 = vmul.f32 0.0625, %v2422_v6 }
 0xef2   :  { %v2425_v27 = vsub.f32 %v2423_v25, %v2424_v24 }
 0xef4   :  { %v3811_v28 = vpop.eup %3810  ;;  %v2437_v30 = vadd.f32 1e-05, %v2425_v27 }
 0xef5   :  { %v2428_v35 = vmul.f32 %v3811_v28, %v2426_v22  ;;  %vm2434_vm0 = vweird.f32 %v3811_v28 }
 0xef6   :  { %3812 = vrsqrt.f32 %v2437_v30  ;;  %vm2435_vm3 = vmor %vm2433_vm1, %vm2434_vm0  ;;  %vm2444_vm4 = vweird.f32 %v2437_v30 }
 0xef7   :  { %v2429_v36 = vmul.f32 %v3811_v28, %v2428_v35 }
 0xef9   :  { %v2430_v39 = vmul.f32 0.5, %v2429_v36 }
 0xefb   :  { %v2431_v42 = vsub.f32 1.5, %v2430_v39 }
 0xefc   :  { %v3813_v33 = vpop.eup %3812 }
 0xefd   :  { %v2439_v45 = vmul.f32 %v3813_v33, %v2437_v30  ;;  %v2432_v47 = vmul.f32 %v3811_v28, %v2431_v42  ;;  %vm2445_vm2 = vweird.f32 %v3813_v33 }
 0xefe   :  { %vm2446_vm5 = vmor %vm2444_vm4, %vm2445_vm2 }
 0xeff   :  { %v2440_v46 = vmul.f32 %v3813_v33, %v2439_v45  ;;  %v2436_v51 = vsel %vm2435_vm3, %v3811_v28, %v2432_v47 }
 0xf00   :  { %v2451_v54 = vmul.f32 %v4084_v57, %v2436_v51 }
 0xf01   :  { %v2441_v8 = vmul.f32 0.5, %v2440_v46 }
 0xf03   :  { %v2442_v48 = vsub.f32 1.5, %v2441_v8 }
 0xf05   :  { %v2443_v52 = vmul.f32 %v3813_v33, %v2442_v48 }
 0xf07   :  { %v2447_v2 = vsel %vm2446_vm5, %v3813_v33, %v2443_v52 }
 0xf08   :  { %v2452_v55 = vmul.f32 %v4097_v34, %v2447_v2 }
 0xf0a   :  { %v2453_v3 = vadd.f32 %v2452_v55, %v2451_v54 }
 0xf0c   :  { %v2455_v7 = vmul.f32 %v2454_v59, %v2453_v3 }
 0xf0e   :  { %v2457_v58 = vmul.f32 %v3731_v1, %v2455_v7 }
 0xf10   :  { %v2459_v9 = vadd.f32 %v3732_v29, %v2457_v58 }
 0xf12   :  { %v2617_v10 = vadd.f32 %v4095_v62, %v2459_v9 }
 0xf14   :  { %v2618_v12 = vmin.f32 %v2617_v10, 20.0  ;;  %vm2627_vm6 = vcmp.gt.f32.partialorder %v2617_v10, 20.0 }
 0xf16   :  { %v2619_v61 = vmul.f32 1.442695, %v2618_v12 }
 0xf18   :  { %3814 = vpow2.f32 %v2619_v61 }
 0xf1e   :  { %v3815_v11 = vpop.eup %3814 }
 0xf1f   :  { %v2621_v57 = vadd.f32 1.0, %v3815_v11 }
 0xf21   :  { %v2622_v5 = vmul.f32 %v2621_v57, %v2621_v57 }
 0xf23   :  { %v2623_v34 = vadd.f32 1.0, %v2622_v5 }
 0xf25   :  { %3816 = vrcp.f32 %v2623_v34 }
 0xf2b   :  { %v3817_v14 = vpop.eup %3816 }
 0xf2c   :  { %v2625_v37 = vmul.f32 2.0, %v3817_v14 }
 0xf2e   :  { %v2626_v60 = vsub.f32 1.0, %v2625_v37 }
 0xf30   :  { %v2628_v16 = vmul.f32 %v2626_v60, %v2617_v10 }
 0xf32   :  { %v2629_v0 = vsel %vm2627_vm6, %v2617_v10, %v2628_v16 }
 0xf33   :  { %v2630_v13 = vpack.c.bf16 %v2629_v0, %v2629_v0 }
 0xf35   :  { %2706 = vmatmul.bf16.vlgmr.msrb.gmra.mxu3 %v2630_v13 }
 0xfb8   :  { %v2707_v4 = vpop.f32.mrf.mxu3 }
 0xfb9   :  { %v2708_v41 = vadd.f32 %v3733_v17, %v2707_v4 }
 0xfbb   :  { %2711 = vst [vmem:[%s4125_s4] sm:$0xff] %v2708_v41 }
 0xfc0   :  { %v2709_v62 = vpop.f32.mrf.mxu3 }
 0xfc1   :  { %2716 = vsyncpa [#allocation3], 1 }
 0xfc2   :  { %2717 = vsyncpa [#allocation5], 1 }

</bundles_post_ra>
